<compile_context>
chip_gen: v6e
topology: v6e:2x2x1
jax: 0.10.0
libtpu: 0.0.40
codegen_flags: <defaults>
</compile_context>

<pallas_src>
import functools

import jax
import jax.numpy as jnp
from jax.experimental import pallas as pl
from jax.experimental.pallas import tpu as pltpu


# --------------------------- fused Pallas kernel ---------------------------

def _fused_kernel(p0_ref, wf_ref, w16_ref, w4c_ref, w4l_ref,
                  b3c_ref, b3l_ref, b4c_ref, b4l_ref,
                  out_c_ref, out_l_ref, *, H, W):
    f32 = jnp.float32
    HW = H * W
    LPAD = 128  # lane-tile-aligned zero padding used for the spatial shifts

    # Flattened-column -> x coordinate; masks that kill reads that would wrap
    # across the left / right image border (hoisted: reused by every conv).
    ox = jax.lax.broadcasted_iota(jnp.int32, (1, HW), 1) % W
    mask_l = (ox != 0).astype(f32)       # taps with kx == 0 read ix = ox - 1
    mask_r = (ox != W - 1).astype(f32)   # taps with kx == 2 read ix = ox + 1
    zpad16 = jnp.zeros((16, LPAD), f32)  # all in-kernel activations have C=16

    def im2col(h):
        """(16, H*W) activation -> (144, H*W) patch matrix of a 3x3/pad=1 conv."""
        hp = jnp.concatenate([zpad16, h, zpad16], axis=1)  # lane-aligned concat
        slabs = []
        for ky in range(3):
            for kx in range(3):
                s = (ky - 1) * W + (kx - 1)                # flat spatial shift
                sh = hp[:, LPAD + s:LPAD + s + HW]         # zero-filled ends
                if kx == 0:
                    sh = sh * mask_l
                elif kx == 2:
                    sh = sh * mask_r
                slabs.append(sh)
        return jnp.concatenate(slabs, axis=0)              # (144, H*W)

    def mm(w, p):  # (Cout, K) @ (K, H*W) on the MXU, f32 accumulation
        return jnp.dot(w, p, preferred_element_type=f32)

    relu = lambda v: jnp.maximum(v, 0.0)

    p0 = p0_ref[0]                               # (32, H*W): im2col of the input

    # ---- layer1 : Block(3, 16, same_shape=False) ----
    sc = mm(wf_ref[1], p0)                       # shortcut conv3(x)
    h = relu(mm(wf_ref[0], p0))                  # conv1 + ReLU
    h = relu(mm(w16_ref[0], im2col(h)) + sc)     # conv2 + residual + ReLU
    # ---- layer1 : Block(16, 16, same_shape=True) ----
    res = h
    h = relu(mm(w16_ref[1], im2col(h)))
    h = relu(mm(w16_ref[2], im2col(h)) + res)
    # ---- layer2 : Block(16, 16, same_shape=False) ----
    p = im2col(h)                                # shared by conv1 and conv3
    sc = mm(w16_ref[5], p)                       # shortcut conv3(x)
    h = relu(mm(w16_ref[3], p))
    h = relu(mm(w16_ref[4], im2col(h)) + sc)
    # ---- layer2 : Block(16, 16, same_shape=True) ----
    res = h
    h = relu(mm(w16_ref[6], im2col(h)))
    h = relu(mm(w16_ref[7], im2col(h)) + res)
    # ---- heads (convs with bias, no activation) ----
    p = im2col(h)                                # shared by both layer3 heads
    xc = mm(w16_ref[8], p) + b3c_ref[...]        # layer3_class
    xl = mm(w16_ref[9], p) + b3l_ref[...]        # layer3_line
    out_c = mm(w4c_ref[...], im2col(xc)) + b4c_ref[...]   # (3, H*W)
    out_l = mm(w4l_ref[...], im2col(xl)) + b4l_ref[...]   # (1, H*W)

    out_c_ref[0] = out_c
    out_l_ref[0] = out_l


def fused_forward(p0, wf, w16, w4c, w4l, b3c, b3l, b4c, b4l, *, H, W):
    N = p0.shape[0]
    HW = H * W
    kernel = functools.partial(_fused_kernel, H=H, W=W)
    const3 = lambda n: (0, 0, 0)
    const2 = lambda n: (0, 0)
    grid_spec = pltpu.PrefetchScalarGridSpec(
        num_scalar_prefetch=0,
        grid=(N,),
        in_specs=[
            pl.BlockSpec((1,) + p0.shape[1:], lambda n: (n, 0, 0)),
            pl.BlockSpec(wf.shape, const3),       # weights: constant index_map
            pl.BlockSpec(w16.shape, const3),      #   -> DMA'd once, VMEM-resident
            pl.BlockSpec(w4c.shape, const2),
            pl.BlockSpec(w4l.shape, const2),
            pl.BlockSpec(b3c.shape, const2),
            pl.BlockSpec(b3l.shape, const2),
            pl.BlockSpec(b4c.shape, const2),
            pl.BlockSpec(b4l.shape, const2),
        ],
        out_specs=[
            pl.BlockSpec((1, 3, HW), lambda n: (n, 0, 0)),
            pl.BlockSpec((1, 1, HW), lambda n: (n, 0, 0)),
        ],
    )
    out_c, out_l = pl.pallas_call(
        kernel,
        out_shape=[jax.ShapeDtypeStruct((N, 3, HW), jnp.float32),
                   jax.ShapeDtypeStruct((N, 1, HW), jnp.float32)],
        grid_spec=grid_spec,
        compiler_params=pltpu.CompilerParams(
            dimension_semantics=("parallel",)),   # v7x: one image per TensorCore
    )(p0, wf, w16, w4c, w4l, b3c, b3l, b4c, b4l)
    return out_c, out_l


# ------------------------------ plain-JAX glue ------------------------------

def _pack_weight(w, k_pad=None):
    """(3, 3, Cin, Cout) HWIO -> (Cout, 9*Cin) matmul weight, tap-major then
    input-channel; optionally zero-padded along K."""
    kh, kw, cin, cout = w.shape
    wm = jnp.transpose(w.reshape(kh * kw, cin, cout), (2, 0, 1))
    wm = wm.reshape(cout, kh * kw * cin)
    if k_pad is not None and k_pad > kh * kw * cin:
        wm = jnp.pad(wm, ((0, 0), (0, k_pad - kh * kw * cin)))
    return wm


def _im2col_input(x, k_pad):
    """NCHW image batch -> (N, k_pad, H*W) patch matrix of a 3x3/pad=1 conv."""
    N, C, H, W = x.shape
    xp = jnp.pad(x, ((0, 0), (0, 0), (1, 1), (1, 1)))
    slabs = []
    for ky in range(3):
        for kx in range(3):
            slabs.append(xp[:, :, ky:ky + H, kx:kx + W].reshape(N, C, H * W))
    p = jnp.concatenate(slabs, axis=1)            # (N, 9*C, H*W)
    if k_pad > 9 * C:
        p = jnp.pad(p, ((0, 0), (0, k_pad - 9 * C), (0, 0)))
    return p


_W16_ORDER = ("l1b1_w2", "l1b2_w1", "l1b2_w2", "l2b1_w1", "l2b1_w2",
              "l2b1_w3", "l2b2_w1", "l2b2_w2", "l3c_w", "l3l_w")


@jax.jit
def model_forward(params, x_nchw):
    x = x_nchw.astype(jnp.float32)
    N, C, H, W = x.shape
    assert C == 3 and W + 1 <= 128 and (H * W) % 128 == 0

    # Glue: im2col of the network input + weight packing (all tiny).
    p0 = _im2col_input(x, k_pad=32)                                 # (N, 32, HW)
    wf = jnp.stack([_pack_weight(params["l1b1_w1"], 32),
                    _pack_weight(params["l1b1_w3"], 32)])           # (2, 16, 32)
    w16 = jnp.stack([_pack_weight(params[k]) for k in _W16_ORDER])  # (10, 16, 144)
    w4c = _pack_weight(params["l4c_w"])                             # (3, 144)
    w4l = _pack_weight(params["l4l_w"])                             # (1, 144)
    b3c = params["l3c_b"].reshape(-1, 1)
    b3l = params["l3l_b"].reshape(-1, 1)
    b4c = params["l4c_b"].reshape(-1, 1)
    b4l = params["l4l_b"].reshape(-1, 1)

    out_c, out_l = fused_forward(p0, wf, w16, w4c, w4l,
                                 b3c, b3l, b4c, b4l, H=H, W=W)
    # (N, C, H*W) is already NCHW-ordered -> just reshape.
    return out_c.reshape(N, 3, H, W), out_l.reshape(N, 1, H, W)


# ------------------------- parameters & XLA reference ------------------------

def _conv_weight(key, cin, cout):
    fan_in = cin * 9
    return jax.random.normal(key, (3, 3, cin, cout), jnp.float32) * (
        1.0 / jnp.sqrt(fan_in))


def init_params(key):
    keys = jax.random.split(key, 16)
    p = {}
    # layer1: Block(3, 16, same_shape=False), Block(16, 16, same_shape=True)
    p["l1b1_w1"] = _conv_weight(keys[0], 3, 16)
    p["l1b1_w2"] = _conv_weight(keys[1], 16, 16)
    p["l1b1_w3"] = _conv_weight(keys[2], 3, 16)     # shortcut conv
    p["l1b2_w1"] = _conv_weight(keys[3], 16, 16)
    p["l1b2_w2"] = _conv_weight(keys[4], 16, 16)
    # layer2: Block(16, 16, same_shape=False), Block(16, 16, same_shape=True)
    p["l2b1_w1"] = _conv_weight(keys[5], 16, 16)
    p["l2b1_w2"] = _conv_weight(keys[6], 16, 16)
    p["l2b1_w3"] = _conv_weight(keys[7], 16, 16)    # shortcut conv
    p["l2b2_w1"] = _conv_weight(keys[8], 16, 16)
    p["l2b2_w2"] = _conv_weight(keys[9], 16, 16)
    # heads (with bias, nn.Conv2d default)
    p["l3c_w"] = _conv_weight(keys[10], 16, 16)
    p["l3c_b"] = jax.random.normal(keys[11], (16,), jnp.float32) * 0.01
    p["l3l_w"] = _conv_weight(keys[12], 16, 16)
    p["l3l_b"] = jax.random.normal(keys[13], (16,), jnp.float32) * 0.01
    p["l4c_w"] = _conv_weight(keys[14], 16, 3)
    p["l4c_b"] = jnp.zeros((3,), jnp.float32)
    p["l4l_w"] = _conv_weight(keys[15], 16, 1)
    p["l4l_b"] = jnp.zeros((1,), jnp.float32)
    return p


def _conv_ref(x, w, b=None):
    out = jax.lax.conv_general_dilated(
        x, w, (1, 1), ((1, 1), (1, 1)),
        dimension_numbers=("NCHW", "HWIO", "NCHW"),
        precision=jax.lax.Precision.HIGHEST)
    if b is not None:
        out = out + b[None, :, None, None]
    return out


@jax.jit
def reference_forward(params, x):
    def block(x, w1, w2, w3=None):
        out = _conv_ref(jax.nn.relu(_conv_ref(x, w1)), w2)
        sc = x if w3 is None else _conv_ref(x, w3)
        return jax.nn.relu(out + sc)

    x = x.astype(jnp.float32)
    x = block(x, params["l1b1_w1"], params["l1b1_w2"], params["l1b1_w3"])
    x = block(x, params["l1b2_w1"], params["l1b2_w2"])
    x = block(x, params["l2b1_w1"], params["l2b1_w2"], params["l2b1_w3"])
    x = block(x, params["l2b2_w1"], params["l2b2_w2"])
    xc = _conv_ref(x, params["l3c_w"], params["l3c_b"])
    xl = _conv_ref(x, params["l3l_w"], params["l3l_b"])
    xc = _conv_ref(xc, params["l4c_w"], params["l4c_b"])
    xl = _conv_ref(xl, params["l4l_w"], params["l4l_b"])
    return xc, xl


if __name__ == "__main__":
    key = jax.random.PRNGKey(0)
    k_param, k_input = jax.random.split(key)
    params = init_params(k_param)
    # Input: batch=2, channels=3, spatial=16x16 (NCHW, PyTorch convention).
    x = jax.random.normal(k_input, (2, 3, 16, 16), jnp.float32)

    x_class, x_line = model_forward(params, x)
    jax.block_until_ready((x_class, x_line))

    assert x_class.shape == (2, 3, 16, 16)
    assert x_line.shape == (2, 1, 16, 16)

    # Numerical check against a plain-XLA reference of the same forward pass.
    ref_class, ref_line = reference_forward(params, x)
    assert jnp.allclose(x_class, ref_class, atol=1e-2, rtol=1e-2), (
        float(jnp.max(jnp.abs(x_class - ref_class))))
    assert jnp.allclose(x_line, ref_line, atol=1e-2, rtol=1e-2), (
        float(jnp.max(jnp.abs(x_line - ref_line))))

    print("KERNEL_OK")
</pallas_src>

<mosaic_0001>
module attributes {stable_mosaic.version = 11 : i64} {
  func.func @_fused_kernel(%arg0: i32, %arg1: memref<1x32x256xf32, #tpu.memory_space<vmem>>, %arg2: memref<2x16x32xf32, #tpu.memory_space<vmem>>, %arg3: memref<10x16x144xf32, #tpu.memory_space<vmem>>, %arg4: memref<3x144xf32, #tpu.memory_space<vmem>>, %arg5: memref<1x144xf32, #tpu.memory_space<vmem>>, %arg6: memref<16x1xf32, #tpu.memory_space<vmem>>, %arg7: memref<16x1xf32, #tpu.memory_space<vmem>>, %arg8: memref<3x1xf32, #tpu.memory_space<vmem>>, %arg9: memref<1x1xf32, #tpu.memory_space<vmem>>, %arg10: memref<1x3x256xf32, #tpu.memory_space<vmem>>, %arg11: memref<1x1x256xf32, #tpu.memory_space<vmem>>) attributes {dimension_semantics = [#tpu.dimension_semantics<parallel>], iteration_bounds = array<i64: 2>, scalar_prefetch = 0 : i64, scratch_operands = 0 : i64, tpu.core_type = #tpu.core_type<tc>, window_params = [{transform_indices = @transform_0, window_bounds = array<i64: 1, 32, 256>}, {pipeline_mode = #tpu.pipeline_mode<synchronous>, transform_indices = @transform_1, window_bounds = array<i64: 2, 16, 32>}, {pipeline_mode = #tpu.pipeline_mode<synchronous>, transform_indices = @transform_2, window_bounds = array<i64: 10, 16, 144>}, {pipeline_mode = #tpu.pipeline_mode<synchronous>, transform_indices = @transform_3, window_bounds = array<i64: 3, 144>}, {pipeline_mode = #tpu.pipeline_mode<synchronous>, transform_indices = @transform_4, window_bounds = array<i64: 1, 144>}, {pipeline_mode = #tpu.pipeline_mode<synchronous>, transform_indices = @transform_5, window_bounds = array<i64: 16, 1>}, {pipeline_mode = #tpu.pipeline_mode<synchronous>, transform_indices = @transform_6, window_bounds = array<i64: 16, 1>}, {pipeline_mode = #tpu.pipeline_mode<synchronous>, transform_indices = @transform_7, window_bounds = array<i64: 3, 1>}, {pipeline_mode = #tpu.pipeline_mode<synchronous>, transform_indices = @transform_8, window_bounds = array<i64: 1, 1>}, {transform_indices = @transform_9, window_bounds = array<i64: 1, 3, 256>}, {transform_indices = @transform_10, window_bounds = array<i64: 1, 1, 256>}]} {
    %0 = tpu.iota {dimensions = array<i32: 1>} : vector<1x256xi32>
    %c16_i32 = arith.constant 16 : i32
    %c0_i32 = arith.constant 0 : i32
    %1 = arith.cmpi eq, %c16_i32, %c0_i32 : i32
    %c1_i32 = arith.constant 1 : i32
    %2 = arith.select %1, %c1_i32, %c16_i32 : i32
    %3 = vector.broadcast %2 : i32 to vector<1x256xi32>
    %4 = arith.remsi %0, %3 : vector<1x256xi32>
    %c0_i32_0 = arith.constant 0 : i32
    %5 = vector.broadcast %c0_i32_0 : i32 to vector<1x256xi32>
    %6 = arith.cmpi ne, %4, %5 : vector<1x256xi32>
    %c0_i32_1 = arith.constant 0 : i32
    %7 = vector.broadcast %c0_i32_1 : i32 to vector<1x256xi32>
    %8 = arith.cmpi slt, %4, %7 : vector<1x256xi32>
    %c0_i32_2 = arith.constant 0 : i32
    %9 = arith.cmpi slt, %2, %c0_i32_2 : i32
    %10 = vector.broadcast %9 : i1 to vector<1x256xi1>
    %11 = vector.broadcast %10 : vector<1x256xi1> to vector<1x256xi1>
    %12 = arith.xori %8, %11 : vector<1x256xi1>
    %13 = arith.andi %12, %6 : vector<1x256xi1>
    %14 = vector.broadcast %2 : i32 to vector<1x256xi32>
    %15 = arith.addi %4, %14 : vector<1x256xi32>
    %16 = arith.select %13, %15, %4 : vector<1x256xi1>, vector<1x256xi32>
    %c0_i32_3 = arith.constant 0 : i32
    %17 = vector.broadcast %c0_i32_3 : i32 to vector<1x256xi32>
    %18 = arith.cmpi ne, %16, %17 : vector<1x256xi32>
    %19 = arith.extui %18 : vector<1x256xi1> to vector<1x256xi32>
    %20 = arith.sitofp %19 : vector<1x256xi32> to vector<1x256xf32>
    %c15_i32 = arith.constant 15 : i32
    %21 = vector.broadcast %c15_i32 : i32 to vector<1x256xi32>
    %22 = arith.cmpi ne, %16, %21 : vector<1x256xi32>
    %23 = arith.extui %22 : vector<1x256xi1> to vector<1x256xi32>
    %24 = arith.sitofp %23 : vector<1x256xi32> to vector<1x256xf32>
    %cst = arith.constant 0.000000e+00 : f32
    %25 = vector.broadcast %cst : f32 to vector<16x128xf32>
    %c0 = arith.constant 0 : index
    %c0_4 = arith.constant 0 : index
    %c0_5 = arith.constant 0 : index
    %26 = vector.load %arg1[%c0, %c0_4, %c0_5] : memref<1x32x256xf32, #tpu.memory_space<vmem>>, vector<1x32x256xf32>
    %27 = vector.shape_cast %26 : vector<1x32x256xf32> to vector<32x256xf32>
    %c1 = arith.constant 1 : index
    %c0_6 = arith.constant 0 : index
    %c0_7 = arith.constant 0 : index
    %28 = vector.load %arg2[%c1, %c0_6, %c0_7] : memref<2x16x32xf32, #tpu.memory_space<vmem>>, vector<1x16x32xf32>
    %29 = vector.shape_cast %28 : vector<1x16x32xf32> to vector<16x32xf32>
    %cst_8 = arith.constant dense<0.000000e+00> : vector<16x256xf32>
    %30 = tpu.matmul %29, %27, %cst_8 {dimension_numbers = #tpu.dot_dimension_numbers<[1], [0], [0], [1], [0, 0, 1, 1], [], []>} : vector<16x32xf32>, vector<32x256xf32>, vector<16x256xf32> -> vector<16x256xf32>
    %c0_9 = arith.constant 0 : index
    %c0_10 = arith.constant 0 : index
    %c0_11 = arith.constant 0 : index
    %31 = vector.load %arg2[%c0_9, %c0_10, %c0_11] : memref<2x16x32xf32, #tpu.memory_space<vmem>>, vector<1x16x32xf32>
    %32 = vector.shape_cast %31 : vector<1x16x32xf32> to vector<16x32xf32>
    %cst_12 = arith.constant dense<0.000000e+00> : vector<16x256xf32>
    %33 = tpu.matmul %32, %27, %cst_12 {dimension_numbers = #tpu.dot_dimension_numbers<[1], [0], [0], [1], [0, 0, 1, 1], [], []>} : vector<16x32xf32>, vector<32x256xf32>, vector<16x256xf32> -> vector<16x256xf32>
    %cst_13 = arith.constant 0.000000e+00 : f32
    %34 = vector.broadcast %cst_13 : f32 to vector<16x256xf32>
    %35 = arith.maximumf %33, %34 : vector<16x256xf32>
    %c0_14 = arith.constant 0 : index
    %c0_15 = arith.constant 0 : index
    %c0_16 = arith.constant 0 : index
    %36 = vector.load %arg3[%c0_14, %c0_15, %c0_16] : memref<10x16x144xf32, #tpu.memory_space<vmem>>, vector<1x16x144xf32>
    %37 = vector.shape_cast %36 : vector<1x16x144xf32> to vector<16x144xf32>
    %38 = tpu.concatenate %25, %35, %25 in 1 : vector<16x128xf32>, vector<16x256xf32>, vector<16x128xf32> -> vector<16x512xf32>
    %39 = vector.extract_strided_slice %38 {offsets = [0, 111], sizes = [16, 256], strides = [1, 1]} : vector<16x512xf32> to vector<16x256xf32>
    %40 = vector.broadcast %20 : vector<1x256xf32> to vector<16x256xf32>
    %41 = arith.mulf %39, %40 : vector<16x256xf32>
    %42 = vector.extract_strided_slice %38 {offsets = [0, 112], sizes = [16, 256], strides = [1, 1]} : vector<16x512xf32> to vector<16x256xf32>
    %43 = vector.extract_strided_slice %38 {offsets = [0, 113], sizes = [16, 256], strides = [1, 1]} : vector<16x512xf32> to vector<16x256xf32>
    %44 = vector.broadcast %24 : vector<1x256xf32> to vector<16x256xf32>
    %45 = arith.mulf %43, %44 : vector<16x256xf32>
    %46 = vector.extract_strided_slice %38 {offsets = [0, 127], sizes = [16, 256], strides = [1, 1]} : vector<16x512xf32> to vector<16x256xf32>
    %47 = vector.broadcast %20 : vector<1x256xf32> to vector<16x256xf32>
    %48 = arith.mulf %46, %47 : vector<16x256xf32>
    %49 = vector.extract_strided_slice %38 {offsets = [0, 128], sizes = [16, 256], strides = [1, 1]} : vector<16x512xf32> to vector<16x256xf32>
    %50 = vector.extract_strided_slice %38 {offsets = [0, 129], sizes = [16, 256], strides = [1, 1]} : vector<16x512xf32> to vector<16x256xf32>
    %51 = vector.broadcast %24 : vector<1x256xf32> to vector<16x256xf32>
    %52 = arith.mulf %50, %51 : vector<16x256xf32>
    %53 = vector.extract_strided_slice %38 {offsets = [0, 143], sizes = [16, 256], strides = [1, 1]} : vector<16x512xf32> to vector<16x256xf32>
    %54 = vector.broadcast %20 : vector<1x256xf32> to vector<16x256xf32>
    %55 = arith.mulf %53, %54 : vector<16x256xf32>
    %56 = vector.extract_strided_slice %38 {offsets = [0, 144], sizes = [16, 256], strides = [1, 1]} : vector<16x512xf32> to vector<16x256xf32>
    %57 = vector.extract_strided_slice %38 {offsets = [0, 145], sizes = [16, 256], strides = [1, 1]} : vector<16x512xf32> to vector<16x256xf32>
    %58 = vector.broadcast %24 : vector<1x256xf32> to vector<16x256xf32>
    %59 = arith.mulf %57, %58 : vector<16x256xf32>
    %60 = tpu.concatenate %41, %42, %45, %48, %49, %52, %55, %56, %59 in 0 : vector<16x256xf32>, vector<16x256xf32>, vector<16x256xf32>, vector<16x256xf32>, vector<16x256xf32>, vector<16x256xf32>, vector<16x256xf32>, vector<16x256xf32>, vector<16x256xf32> -> vector<144x256xf32>
    %cst_17 = arith.constant dense<0.000000e+00> : vector<16x256xf32>
    %61 = tpu.matmul %37, %60, %cst_17 {dimension_numbers = #tpu.dot_dimension_numbers<[1], [0], [0], [1], [0, 0, 1, 1], [], []>} : vector<16x144xf32>, vector<144x256xf32>, vector<16x256xf32> -> vector<16x256xf32>
    %62 = arith.addf %61, %30 : vector<16x256xf32>
    %cst_18 = arith.constant 0.000000e+00 : f32
    %63 = vector.broadcast %cst_18 : f32 to vector<16x256xf32>
    %64 = arith.maximumf %62, %63 : vector<16x256xf32>
    %c1_19 = arith.constant 1 : index
    %c0_20 = arith.constant 0 : index
    %c0_21 = arith.constant 0 : index
    %65 = vector.load %arg3[%c1_19, %c0_20, %c0_21] : memref<10x16x144xf32, #tpu.memory_space<vmem>>, vector<1x16x144xf32>
    %66 = vector.shape_cast %65 : vector<1x16x144xf32> to vector<16x144xf32>
    %67 = tpu.concatenate %25, %64, %25 in 1 : vector<16x128xf32>, vector<16x256xf32>, vector<16x128xf32> -> vector<16x512xf32>
    %68 = vector.extract_strided_slice %67 {offsets = [0, 111], sizes = [16, 256], strides = [1, 1]} : vector<16x512xf32> to vector<16x256xf32>
    %69 = vector.broadcast %20 : vector<1x256xf32> to vector<16x256xf32>
    %70 = arith.mulf %68, %69 : vector<16x256xf32>
    %71 = vector.extract_strided_slice %67 {offsets = [0, 112], sizes = [16, 256], strides = [1, 1]} : vector<16x512xf32> to vector<16x256xf32>
    %72 = vector.extract_strided_slice %67 {offsets = [0, 113], sizes = [16, 256], strides = [1, 1]} : vector<16x512xf32> to vector<16x256xf32>
    %73 = vector.broadcast %24 : vector<1x256xf32> to vector<16x256xf32>
    %74 = arith.mulf %72, %73 : vector<16x256xf32>
    %75 = vector.extract_strided_slice %67 {offsets = [0, 127], sizes = [16, 256], strides = [1, 1]} : vector<16x512xf32> to vector<16x256xf32>
    %76 = vector.broadcast %20 : vector<1x256xf32> to vector<16x256xf32>
    %77 = arith.mulf %75, %76 : vector<16x256xf32>
    %78 = vector.extract_strided_slice %67 {offsets = [0, 128], sizes = [16, 256], strides = [1, 1]} : vector<16x512xf32> to vector<16x256xf32>
    %79 = vector.extract_strided_slice %67 {offsets = [0, 129], sizes = [16, 256], strides = [1, 1]} : vector<16x512xf32> to vector<16x256xf32>
    %80 = vector.broadcast %24 : vector<1x256xf32> to vector<16x256xf32>
    %81 = arith.mulf %79, %80 : vector<16x256xf32>
    %82 = vector.extract_strided_slice %67 {offsets = [0, 143], sizes = [16, 256], strides = [1, 1]} : vector<16x512xf32> to vector<16x256xf32>
    %83 = vector.broadcast %20 : vector<1x256xf32> to vector<16x256xf32>
    %84 = arith.mulf %82, %83 : vector<16x256xf32>
    %85 = vector.extract_strided_slice %67 {offsets = [0, 144], sizes = [16, 256], strides = [1, 1]} : vector<16x512xf32> to vector<16x256xf32>
    %86 = vector.extract_strided_slice %67 {offsets = [0, 145], sizes = [16, 256], strides = [1, 1]} : vector<16x512xf32> to vector<16x256xf32>
    %87 = vector.broadcast %24 : vector<1x256xf32> to vector<16x256xf32>
    %88 = arith.mulf %86, %87 : vector<16x256xf32>
    %89 = tpu.concatenate %70, %71, %74, %77, %78, %81, %84, %85, %88 in 0 : vector<16x256xf32>, vector<16x256xf32>, vector<16x256xf32>, vector<16x256xf32>, vector<16x256xf32>, vector<16x256xf32>, vector<16x256xf32>, vector<16x256xf32>, vector<16x256xf32> -> vector<144x256xf32>
    %cst_22 = arith.constant dense<0.000000e+00> : vector<16x256xf32>
    %90 = tpu.matmul %66, %89, %cst_22 {dimension_numbers = #tpu.dot_dimension_numbers<[1], [0], [0], [1], [0, 0, 1, 1], [], []>} : vector<16x144xf32>, vector<144x256xf32>, vector<16x256xf32> -> vector<16x256xf32>
    %cst_23 = arith.constant 0.000000e+00 : f32
    %91 = vector.broadcast %cst_23 : f32 to vector<16x256xf32>
    %92 = arith.maximumf %90, %91 : vector<16x256xf32>
    %c2 = arith.constant 2 : index
    %c0_24 = arith.constant 0 : index
    %c0_25 = arith.constant 0 : index
    %93 = vector.load %arg3[%c2, %c0_24, %c0_25] : memref<10x16x144xf32, #tpu.memory_space<vmem>>, vector<1x16x144xf32>
    %94 = vector.shape_cast %93 : vector<1x16x144xf32> to vector<16x144xf32>
    %95 = tpu.concatenate %25, %92, %25 in 1 : vector<16x128xf32>, vector<16x256xf32>, vector<16x128xf32> -> vector<16x512xf32>
    %96 = vector.extract_strided_slice %95 {offsets = [0, 111], sizes = [16, 256], strides = [1, 1]} : vector<16x512xf32> to vector<16x256xf32>
    %97 = vector.broadcast %20 : vector<1x256xf32> to vector<16x256xf32>
    %98 = arith.mulf %96, %97 : vector<16x256xf32>
    %99 = vector.extract_strided_slice %95 {offsets = [0, 112], sizes = [16, 256], strides = [1, 1]} : vector<16x512xf32> to vector<16x256xf32>
    %100 = vector.extract_strided_slice %95 {offsets = [0, 113], sizes = [16, 256], strides = [1, 1]} : vector<16x512xf32> to vector<16x256xf32>
    %101 = vector.broadcast %24 : vector<1x256xf32> to vector<16x256xf32>
    %102 = arith.mulf %100, %101 : vector<16x256xf32>
    %103 = vector.extract_strided_slice %95 {offsets = [0, 127], sizes = [16, 256], strides = [1, 1]} : vector<16x512xf32> to vector<16x256xf32>
    %104 = vector.broadcast %20 : vector<1x256xf32> to vector<16x256xf32>
    %105 = arith.mulf %103, %104 : vector<16x256xf32>
    %106 = vector.extract_strided_slice %95 {offsets = [0, 128], sizes = [16, 256], strides = [1, 1]} : vector<16x512xf32> to vector<16x256xf32>
    %107 = vector.extract_strided_slice %95 {offsets = [0, 129], sizes = [16, 256], strides = [1, 1]} : vector<16x512xf32> to vector<16x256xf32>
    %108 = vector.broadcast %24 : vector<1x256xf32> to vector<16x256xf32>
    %109 = arith.mulf %107, %108 : vector<16x256xf32>
    %110 = vector.extract_strided_slice %95 {offsets = [0, 143], sizes = [16, 256], strides = [1, 1]} : vector<16x512xf32> to vector<16x256xf32>
    %111 = vector.broadcast %20 : vector<1x256xf32> to vector<16x256xf32>
    %112 = arith.mulf %110, %111 : vector<16x256xf32>
    %113 = vector.extract_strided_slice %95 {offsets = [0, 144], sizes = [16, 256], strides = [1, 1]} : vector<16x512xf32> to vector<16x256xf32>
    %114 = vector.extract_strided_slice %95 {offsets = [0, 145], sizes = [16, 256], strides = [1, 1]} : vector<16x512xf32> to vector<16x256xf32>
    %115 = vector.broadcast %24 : vector<1x256xf32> to vector<16x256xf32>
    %116 = arith.mulf %114, %115 : vector<16x256xf32>
    %117 = tpu.concatenate %98, %99, %102, %105, %106, %109, %112, %113, %116 in 0 : vector<16x256xf32>, vector<16x256xf32>, vector<16x256xf32>, vector<16x256xf32>, vector<16x256xf32>, vector<16x256xf32>, vector<16x256xf32>, vector<16x256xf32>, vector<16x256xf32> -> vector<144x256xf32>
    %cst_26 = arith.constant dense<0.000000e+00> : vector<16x256xf32>
    %118 = tpu.matmul %94, %117, %cst_26 {dimension_numbers = #tpu.dot_dimension_numbers<[1], [0], [0], [1], [0, 0, 1, 1], [], []>} : vector<16x144xf32>, vector<144x256xf32>, vector<16x256xf32> -> vector<16x256xf32>
    %119 = arith.addf %118, %64 : vector<16x256xf32>
    %cst_27 = arith.constant 0.000000e+00 : f32
    %120 = vector.broadcast %cst_27 : f32 to vector<16x256xf32>
    %121 = arith.maximumf %119, %120 : vector<16x256xf32>
    %122 = tpu.concatenate %25, %121, %25 in 1 : vector<16x128xf32>, vector<16x256xf32>, vector<16x128xf32> -> vector<16x512xf32>
    %123 = vector.extract_strided_slice %122 {offsets = [0, 111], sizes = [16, 256], strides = [1, 1]} : vector<16x512xf32> to vector<16x256xf32>
    %124 = vector.broadcast %20 : vector<1x256xf32> to vector<16x256xf32>
    %125 = arith.mulf %123, %124 : vector<16x256xf32>
    %126 = vector.extract_strided_slice %122 {offsets = [0, 112], sizes = [16, 256], strides = [1, 1]} : vector<16x512xf32> to vector<16x256xf32>
    %127 = vector.extract_strided_slice %122 {offsets = [0, 113], sizes = [16, 256], strides = [1, 1]} : vector<16x512xf32> to vector<16x256xf32>
    %128 = vector.broadcast %24 : vector<1x256xf32> to vector<16x256xf32>
    %129 = arith.mulf %127, %128 : vector<16x256xf32>
    %130 = vector.extract_strided_slice %122 {offsets = [0, 127], sizes = [16, 256], strides = [1, 1]} : vector<16x512xf32> to vector<16x256xf32>
    %131 = vector.broadcast %20 : vector<1x256xf32> to vector<16x256xf32>
    %132 = arith.mulf %130, %131 : vector<16x256xf32>
    %133 = vector.extract_strided_slice %122 {offsets = [0, 128], sizes = [16, 256], strides = [1, 1]} : vector<16x512xf32> to vector<16x256xf32>
    %134 = vector.extract_strided_slice %122 {offsets = [0, 129], sizes = [16, 256], strides = [1, 1]} : vector<16x512xf32> to vector<16x256xf32>
    %135 = vector.broadcast %24 : vector<1x256xf32> to vector<16x256xf32>
    %136 = arith.mulf %134, %135 : vector<16x256xf32>
    %137 = vector.extract_strided_slice %122 {offsets = [0, 143], sizes = [16, 256], strides = [1, 1]} : vector<16x512xf32> to vector<16x256xf32>
    %138 = vector.broadcast %20 : vector<1x256xf32> to vector<16x256xf32>
    %139 = arith.mulf %137, %138 : vector<16x256xf32>
    %140 = vector.extract_strided_slice %122 {offsets = [0, 144], sizes = [16, 256], strides = [1, 1]} : vector<16x512xf32> to vector<16x256xf32>
    %141 = vector.extract_strided_slice %122 {offsets = [0, 145], sizes = [16, 256], strides = [1, 1]} : vector<16x512xf32> to vector<16x256xf32>
    %142 = vector.broadcast %24 : vector<1x256xf32> to vector<16x256xf32>
    %143 = arith.mulf %141, %142 : vector<16x256xf32>
    %144 = tpu.concatenate %125, %126, %129, %132, %133, %136, %139, %140, %143 in 0 : vector<16x256xf32>, vector<16x256xf32>, vector<16x256xf32>, vector<16x256xf32>, vector<16x256xf32>, vector<16x256xf32>, vector<16x256xf32>, vector<16x256xf32>, vector<16x256xf32> -> vector<144x256xf32>
    %c5 = arith.constant 5 : index
    %c0_28 = arith.constant 0 : index
    %c0_29 = arith.constant 0 : index
    %145 = vector.load %arg3[%c5, %c0_28, %c0_29] : memref<10x16x144xf32, #tpu.memory_space<vmem>>, vector<1x16x144xf32>
    %146 = vector.shape_cast %145 : vector<1x16x144xf32> to vector<16x144xf32>
    %cst_30 = arith.constant dense<0.000000e+00> : vector<16x256xf32>
    %147 = tpu.matmul %146, %144, %cst_30 {dimension_numbers = #tpu.dot_dimension_numbers<[1], [0], [0], [1], [0, 0, 1, 1], [], []>} : vector<16x144xf32>, vector<144x256xf32>, vector<16x256xf32> -> vector<16x256xf32>
    %c3 = arith.constant 3 : index
    %c0_31 = arith.constant 0 : index
    %c0_32 = arith.constant 0 : index
    %148 = vector.load %arg3[%c3, %c0_31, %c0_32] : memref<10x16x144xf32, #tpu.memory_space<vmem>>, vector<1x16x144xf32>
    %149 = vector.shape_cast %148 : vector<1x16x144xf32> to vector<16x144xf32>
    %cst_33 = arith.constant dense<0.000000e+00> : vector<16x256xf32>
    %150 = tpu.matmul %149, %144, %cst_33 {dimension_numbers = #tpu.dot_dimension_numbers<[1], [0], [0], [1], [0, 0, 1, 1], [], []>} : vector<16x144xf32>, vector<144x256xf32>, vector<16x256xf32> -> vector<16x256xf32>
    %cst_34 = arith.constant 0.000000e+00 : f32
    %151 = vector.broadcast %cst_34 : f32 to vector<16x256xf32>
    %152 = arith.maximumf %150, %151 : vector<16x256xf32>
    %c4 = arith.constant 4 : index
    %c0_35 = arith.constant 0 : index
    %c0_36 = arith.constant 0 : index
    %153 = vector.load %arg3[%c4, %c0_35, %c0_36] : memref<10x16x144xf32, #tpu.memory_space<vmem>>, vector<1x16x144xf32>
    %154 = vector.shape_cast %153 : vector<1x16x144xf32> to vector<16x144xf32>
    %155 = tpu.concatenate %25, %152, %25 in 1 : vector<16x128xf32>, vector<16x256xf32>, vector<16x128xf32> -> vector<16x512xf32>
    %156 = vector.extract_strided_slice %155 {offsets = [0, 111], sizes = [16, 256], strides = [1, 1]} : vector<16x512xf32> to vector<16x256xf32>
    %157 = vector.broadcast %20 : vector<1x256xf32> to vector<16x256xf32>
    %158 = arith.mulf %156, %157 : vector<16x256xf32>
    %159 = vector.extract_strided_slice %155 {offsets = [0, 112], sizes = [16, 256], strides = [1, 1]} : vector<16x512xf32> to vector<16x256xf32>
    %160 = vector.extract_strided_slice %155 {offsets = [0, 113], sizes = [16, 256], strides = [1, 1]} : vector<16x512xf32> to vector<16x256xf32>
    %161 = vector.broadcast %24 : vector<1x256xf32> to vector<16x256xf32>
    %162 = arith.mulf %160, %161 : vector<16x256xf32>
    %163 = vector.extract_strided_slice %155 {offsets = [0, 127], sizes = [16, 256], strides = [1, 1]} : vector<16x512xf32> to vector<16x256xf32>
    %164 = vector.broadcast %20 : vector<1x256xf32> to vector<16x256xf32>
    %165 = arith.mulf %163, %164 : vector<16x256xf32>
    %166 = vector.extract_strided_slice %155 {offsets = [0, 128], sizes = [16, 256], strides = [1, 1]} : vector<16x512xf32> to vector<16x256xf32>
    %167 = vector.extract_strided_slice %155 {offsets = [0, 129], sizes = [16, 256], strides = [1, 1]} : vector<16x512xf32> to vector<16x256xf32>
    %168 = vector.broadcast %24 : vector<1x256xf32> to vector<16x256xf32>
    %169 = arith.mulf %167, %168 : vector<16x256xf32>
    %170 = vector.extract_strided_slice %155 {offsets = [0, 143], sizes = [16, 256], strides = [1, 1]} : vector<16x512xf32> to vector<16x256xf32>
    %171 = vector.broadcast %20 : vector<1x256xf32> to vector<16x256xf32>
    %172 = arith.mulf %170, %171 : vector<16x256xf32>
    %173 = vector.extract_strided_slice %155 {offsets = [0, 144], sizes = [16, 256], strides = [1, 1]} : vector<16x512xf32> to vector<16x256xf32>
    %174 = vector.extract_strided_slice %155 {offsets = [0, 145], sizes = [16, 256], strides = [1, 1]} : vector<16x512xf32> to vector<16x256xf32>
    %175 = vector.broadcast %24 : vector<1x256xf32> to vector<16x256xf32>
    %176 = arith.mulf %174, %175 : vector<16x256xf32>
    %177 = tpu.concatenate %158, %159, %162, %165, %166, %169, %172, %173, %176 in 0 : vector<16x256xf32>, vector<16x256xf32>, vector<16x256xf32>, vector<16x256xf32>, vector<16x256xf32>, vector<16x256xf32>, vector<16x256xf32>, vector<16x256xf32>, vector<16x256xf32> -> vector<144x256xf32>
    %cst_37 = arith.constant dense<0.000000e+00> : vector<16x256xf32>
    %178 = tpu.matmul %154, %177, %cst_37 {dimension_numbers = #tpu.dot_dimension_numbers<[1], [0], [0], [1], [0, 0, 1, 1], [], []>} : vector<16x144xf32>, vector<144x256xf32>, vector<16x256xf32> -> vector<16x256xf32>
    %179 = arith.addf %178, %147 : vector<16x256xf32>
    %cst_38 = arith.constant 0.000000e+00 : f32
    %180 = vector.broadcast %cst_38 : f32 to vector<16x256xf32>
    %181 = arith.maximumf %179, %180 : vector<16x256xf32>
    %c6 = arith.constant 6 : index
    %c0_39 = arith.constant 0 : index
    %c0_40 = arith.constant 0 : index
    %182 = vector.load %arg3[%c6, %c0_39, %c0_40] : memref<10x16x144xf32, #tpu.memory_space<vmem>>, vector<1x16x144xf32>
    %183 = vector.shape_cast %182 : vector<1x16x144xf32> to vector<16x144xf32>
    %184 = tpu.concatenate %25, %181, %25 in 1 : vector<16x128xf32>, vector<16x256xf32>, vector<16x128xf32> -> vector<16x512xf32>
    %185 = vector.extract_strided_slice %184 {offsets = [0, 111], sizes = [16, 256], strides = [1, 1]} : vector<16x512xf32> to vector<16x256xf32>
    %186 = vector.broadcast %20 : vector<1x256xf32> to vector<16x256xf32>
    %187 = arith.mulf %185, %186 : vector<16x256xf32>
    %188 = vector.extract_strided_slice %184 {offsets = [0, 112], sizes = [16, 256], strides = [1, 1]} : vector<16x512xf32> to vector<16x256xf32>
    %189 = vector.extract_strided_slice %184 {offsets = [0, 113], sizes = [16, 256], strides = [1, 1]} : vector<16x512xf32> to vector<16x256xf32>
    %190 = vector.broadcast %24 : vector<1x256xf32> to vector<16x256xf32>
    %191 = arith.mulf %189, %190 : vector<16x256xf32>
    %192 = vector.extract_strided_slice %184 {offsets = [0, 127], sizes = [16, 256], strides = [1, 1]} : vector<16x512xf32> to vector<16x256xf32>
    %193 = vector.broadcast %20 : vector<1x256xf32> to vector<16x256xf32>
    %194 = arith.mulf %192, %193 : vector<16x256xf32>
    %195 = vector.extract_strided_slice %184 {offsets = [0, 128], sizes = [16, 256], strides = [1, 1]} : vector<16x512xf32> to vector<16x256xf32>
    %196 = vector.extract_strided_slice %184 {offsets = [0, 129], sizes = [16, 256], strides = [1, 1]} : vector<16x512xf32> to vector<16x256xf32>
    %197 = vector.broadcast %24 : vector<1x256xf32> to vector<16x256xf32>
    %198 = arith.mulf %196, %197 : vector<16x256xf32>
    %199 = vector.extract_strided_slice %184 {offsets = [0, 143], sizes = [16, 256], strides = [1, 1]} : vector<16x512xf32> to vector<16x256xf32>
    %200 = vector.broadcast %20 : vector<1x256xf32> to vector<16x256xf32>
    %201 = arith.mulf %199, %200 : vector<16x256xf32>
    %202 = vector.extract_strided_slice %184 {offsets = [0, 144], sizes = [16, 256], strides = [1, 1]} : vector<16x512xf32> to vector<16x256xf32>
    %203 = vector.extract_strided_slice %184 {offsets = [0, 145], sizes = [16, 256], strides = [1, 1]} : vector<16x512xf32> to vector<16x256xf32>
    %204 = vector.broadcast %24 : vector<1x256xf32> to vector<16x256xf32>
    %205 = arith.mulf %203, %204 : vector<16x256xf32>
    %206 = tpu.concatenate %187, %188, %191, %194, %195, %198, %201, %202, %205 in 0 : vector<16x256xf32>, vector<16x256xf32>, vector<16x256xf32>, vector<16x256xf32>, vector<16x256xf32>, vector<16x256xf32>, vector<16x256xf32>, vector<16x256xf32>, vector<16x256xf32> -> vector<144x256xf32>
    %cst_41 = arith.constant dense<0.000000e+00> : vector<16x256xf32>
    %207 = tpu.matmul %183, %206, %cst_41 {dimension_numbers = #tpu.dot_dimension_numbers<[1], [0], [0], [1], [0, 0, 1, 1], [], []>} : vector<16x144xf32>, vector<144x256xf32>, vector<16x256xf32> -> vector<16x256xf32>
    %cst_42 = arith.constant 0.000000e+00 : f32
    %208 = vector.broadcast %cst_42 : f32 to vector<16x256xf32>
    %209 = arith.maximumf %207, %208 : vector<16x256xf32>
    %c7 = arith.constant 7 : index
    %c0_43 = arith.constant 0 : index
    %c0_44 = arith.constant 0 : index
    %210 = vector.load %arg3[%c7, %c0_43, %c0_44] : memref<10x16x144xf32, #tpu.memory_space<vmem>>, vector<1x16x144xf32>
    %211 = vector.shape_cast %210 : vector<1x16x144xf32> to vector<16x144xf32>
    %212 = tpu.concatenate %25, %209, %25 in 1 : vector<16x128xf32>, vector<16x256xf32>, vector<16x128xf32> -> vector<16x512xf32>
    %213 = vector.extract_strided_slice %212 {offsets = [0, 111], sizes = [16, 256], strides = [1, 1]} : vector<16x512xf32> to vector<16x256xf32>
    %214 = vector.broadcast %20 : vector<1x256xf32> to vector<16x256xf32>
    %215 = arith.mulf %213, %214 : vector<16x256xf32>
    %216 = vector.extract_strided_slice %212 {offsets = [0, 112], sizes = [16, 256], strides = [1, 1]} : vector<16x512xf32> to vector<16x256xf32>
    %217 = vector.extract_strided_slice %212 {offsets = [0, 113], sizes = [16, 256], strides = [1, 1]} : vector<16x512xf32> to vector<16x256xf32>
    %218 = vector.broadcast %24 : vector<1x256xf32> to vector<16x256xf32>
    %219 = arith.mulf %217, %218 : vector<16x256xf32>
    %220 = vector.extract_strided_slice %212 {offsets = [0, 127], sizes = [16, 256], strides = [1, 1]} : vector<16x512xf32> to vector<16x256xf32>
    %221 = vector.broadcast %20 : vector<1x256xf32> to vector<16x256xf32>
    %222 = arith.mulf %220, %221 : vector<16x256xf32>
    %223 = vector.extract_strided_slice %212 {offsets = [0, 128], sizes = [16, 256], strides = [1, 1]} : vector<16x512xf32> to vector<16x256xf32>
    %224 = vector.extract_strided_slice %212 {offsets = [0, 129], sizes = [16, 256], strides = [1, 1]} : vector<16x512xf32> to vector<16x256xf32>
    %225 = vector.broadcast %24 : vector<1x256xf32> to vector<16x256xf32>
    %226 = arith.mulf %224, %225 : vector<16x256xf32>
    %227 = vector.extract_strided_slice %212 {offsets = [0, 143], sizes = [16, 256], strides = [1, 1]} : vector<16x512xf32> to vector<16x256xf32>
    %228 = vector.broadcast %20 : vector<1x256xf32> to vector<16x256xf32>
    %229 = arith.mulf %227, %228 : vector<16x256xf32>
    %230 = vector.extract_strided_slice %212 {offsets = [0, 144], sizes = [16, 256], strides = [1, 1]} : vector<16x512xf32> to vector<16x256xf32>
    %231 = vector.extract_strided_slice %212 {offsets = [0, 145], sizes = [16, 256], strides = [1, 1]} : vector<16x512xf32> to vector<16x256xf32>
    %232 = vector.broadcast %24 : vector<1x256xf32> to vector<16x256xf32>
    %233 = arith.mulf %231, %232 : vector<16x256xf32>
    %234 = tpu.concatenate %215, %216, %219, %222, %223, %226, %229, %230, %233 in 0 : vector<16x256xf32>, vector<16x256xf32>, vector<16x256xf32>, vector<16x256xf32>, vector<16x256xf32>, vector<16x256xf32>, vector<16x256xf32>, vector<16x256xf32>, vector<16x256xf32> -> vector<144x256xf32>
    %cst_45 = arith.constant dense<0.000000e+00> : vector<16x256xf32>
    %235 = tpu.matmul %211, %234, %cst_45 {dimension_numbers = #tpu.dot_dimension_numbers<[1], [0], [0], [1], [0, 0, 1, 1], [], []>} : vector<16x144xf32>, vector<144x256xf32>, vector<16x256xf32> -> vector<16x256xf32>
    %236 = arith.addf %235, %181 : vector<16x256xf32>
    %cst_46 = arith.constant 0.000000e+00 : f32
    %237 = vector.broadcast %cst_46 : f32 to vector<16x256xf32>
    %238 = arith.maximumf %236, %237 : vector<16x256xf32>
    %239 = tpu.concatenate %25, %238, %25 in 1 : vector<16x128xf32>, vector<16x256xf32>, vector<16x128xf32> -> vector<16x512xf32>
    %240 = vector.extract_strided_slice %239 {offsets = [0, 111], sizes = [16, 256], strides = [1, 1]} : vector<16x512xf32> to vector<16x256xf32>
    %241 = vector.broadcast %20 : vector<1x256xf32> to vector<16x256xf32>
    %242 = arith.mulf %240, %241 : vector<16x256xf32>
    %243 = vector.extract_strided_slice %239 {offsets = [0, 112], sizes = [16, 256], strides = [1, 1]} : vector<16x512xf32> to vector<16x256xf32>
    %244 = vector.extract_strided_slice %239 {offsets = [0, 113], sizes = [16, 256], strides = [1, 1]} : vector<16x512xf32> to vector<16x256xf32>
    %245 = vector.broadcast %24 : vector<1x256xf32> to vector<16x256xf32>
    %246 = arith.mulf %244, %245 : vector<16x256xf32>
    %247 = vector.extract_strided_slice %239 {offsets = [0, 127], sizes = [16, 256], strides = [1, 1]} : vector<16x512xf32> to vector<16x256xf32>
    %248 = vector.broadcast %20 : vector<1x256xf32> to vector<16x256xf32>
    %249 = arith.mulf %247, %248 : vector<16x256xf32>
    %250 = vector.extract_strided_slice %239 {offsets = [0, 128], sizes = [16, 256], strides = [1, 1]} : vector<16x512xf32> to vector<16x256xf32>
    %251 = vector.extract_strided_slice %239 {offsets = [0, 129], sizes = [16, 256], strides = [1, 1]} : vector<16x512xf32> to vector<16x256xf32>
    %252 = vector.broadcast %24 : vector<1x256xf32> to vector<16x256xf32>
    %253 = arith.mulf %251, %252 : vector<16x256xf32>
    %254 = vector.extract_strided_slice %239 {offsets = [0, 143], sizes = [16, 256], strides = [1, 1]} : vector<16x512xf32> to vector<16x256xf32>
    %255 = vector.broadcast %20 : vector<1x256xf32> to vector<16x256xf32>
    %256 = arith.mulf %254, %255 : vector<16x256xf32>
    %257 = vector.extract_strided_slice %239 {offsets = [0, 144], sizes = [16, 256], strides = [1, 1]} : vector<16x512xf32> to vector<16x256xf32>
    %258 = vector.extract_strided_slice %239 {offsets = [0, 145], sizes = [16, 256], strides = [1, 1]} : vector<16x512xf32> to vector<16x256xf32>
    %259 = vector.broadcast %24 : vector<1x256xf32> to vector<16x256xf32>
    %260 = arith.mulf %258, %259 : vector<16x256xf32>
    %261 = tpu.concatenate %242, %243, %246, %249, %250, %253, %256, %257, %260 in 0 : vector<16x256xf32>, vector<16x256xf32>, vector<16x256xf32>, vector<16x256xf32>, vector<16x256xf32>, vector<16x256xf32>, vector<16x256xf32>, vector<16x256xf32>, vector<16x256xf32> -> vector<144x256xf32>
    %c8 = arith.constant 8 : index
    %c0_47 = arith.constant 0 : index
    %c0_48 = arith.constant 0 : index
    %262 = vector.load %arg3[%c8, %c0_47, %c0_48] : memref<10x16x144xf32, #tpu.memory_space<vmem>>, vector<1x16x144xf32>
    %263 = vector.shape_cast %262 : vector<1x16x144xf32> to vector<16x144xf32>
    %cst_49 = arith.constant dense<0.000000e+00> : vector<16x256xf32>
    %264 = tpu.matmul %263, %261, %cst_49 {dimension_numbers = #tpu.dot_dimension_numbers<[1], [0], [0], [1], [0, 0, 1, 1], [], []>} : vector<16x144xf32>, vector<144x256xf32>, vector<16x256xf32> -> vector<16x256xf32>
    %c0_50 = arith.constant 0 : index
    %c0_51 = arith.constant 0 : index
    %265 = vector.load %arg6[%c0_50, %c0_51] : memref<16x1xf32, #tpu.memory_space<vmem>>, vector<16x1xf32>
    %266 = vector.broadcast %265 : vector<16x1xf32> to vector<16x256xf32>
    %267 = arith.addf %264, %266 : vector<16x256xf32>
    %c9 = arith.constant 9 : index
    %c0_52 = arith.constant 0 : index
    %c0_53 = arith.constant 0 : index
    %268 = vector.load %arg3[%c9, %c0_52, %c0_53] : memref<10x16x144xf32, #tpu.memory_space<vmem>>, vector<1x16x144xf32>
    %269 = vector.shape_cast %268 : vector<1x16x144xf32> to vector<16x144xf32>
    %cst_54 = arith.constant dense<0.000000e+00> : vector<16x256xf32>
    %270 = tpu.matmul %269, %261, %cst_54 {dimension_numbers = #tpu.dot_dimension_numbers<[1], [0], [0], [1], [0, 0, 1, 1], [], []>} : vector<16x144xf32>, vector<144x256xf32>, vector<16x256xf32> -> vector<16x256xf32>
    %c0_55 = arith.constant 0 : index
    %c0_56 = arith.constant 0 : index
    %271 = vector.load %arg7[%c0_55, %c0_56] : memref<16x1xf32, #tpu.memory_space<vmem>>, vector<16x1xf32>
    %272 = vector.broadcast %271 : vector<16x1xf32> to vector<16x256xf32>
    %273 = arith.addf %270, %272 : vector<16x256xf32>
    %c0_57 = arith.constant 0 : index
    %c0_58 = arith.constant 0 : index
    %274 = vector.load %arg4[%c0_57, %c0_58] : memref<3x144xf32, #tpu.memory_space<vmem>>, vector<3x144xf32>
    %275 = tpu.concatenate %25, %267, %25 in 1 : vector<16x128xf32>, vector<16x256xf32>, vector<16x128xf32> -> vector<16x512xf32>
    %276 = vector.extract_strided_slice %275 {offsets = [0, 111], sizes = [16, 256], strides = [1, 1]} : vector<16x512xf32> to vector<16x256xf32>
    %277 = vector.broadcast %20 : vector<1x256xf32> to vector<16x256xf32>
    %278 = arith.mulf %276, %277 : vector<16x256xf32>
    %279 = vector.extract_strided_slice %275 {offsets = [0, 112], sizes = [16, 256], strides = [1, 1]} : vector<16x512xf32> to vector<16x256xf32>
    %280 = vector.extract_strided_slice %275 {offsets = [0, 113], sizes = [16, 256], strides = [1, 1]} : vector<16x512xf32> to vector<16x256xf32>
    %281 = vector.broadcast %24 : vector<1x256xf32> to vector<16x256xf32>
    %282 = arith.mulf %280, %281 : vector<16x256xf32>
    %283 = vector.extract_strided_slice %275 {offsets = [0, 127], sizes = [16, 256], strides = [1, 1]} : vector<16x512xf32> to vector<16x256xf32>
    %284 = vector.broadcast %20 : vector<1x256xf32> to vector<16x256xf32>
    %285 = arith.mulf %283, %284 : vector<16x256xf32>
    %286 = vector.extract_strided_slice %275 {offsets = [0, 128], sizes = [16, 256], strides = [1, 1]} : vector<16x512xf32> to vector<16x256xf32>
    %287 = vector.extract_strided_slice %275 {offsets = [0, 129], sizes = [16, 256], strides = [1, 1]} : vector<16x512xf32> to vector<16x256xf32>
    %288 = vector.broadcast %24 : vector<1x256xf32> to vector<16x256xf32>
    %289 = arith.mulf %287, %288 : vector<16x256xf32>
    %290 = vector.extract_strided_slice %275 {offsets = [0, 143], sizes = [16, 256], strides = [1, 1]} : vector<16x512xf32> to vector<16x256xf32>
    %291 = vector.broadcast %20 : vector<1x256xf32> to vector<16x256xf32>
    %292 = arith.mulf %290, %291 : vector<16x256xf32>
    %293 = vector.extract_strided_slice %275 {offsets = [0, 144], sizes = [16, 256], strides = [1, 1]} : vector<16x512xf32> to vector<16x256xf32>
    %294 = vector.extract_strided_slice %275 {offsets = [0, 145], sizes = [16, 256], strides = [1, 1]} : vector<16x512xf32> to vector<16x256xf32>
    %295 = vector.broadcast %24 : vector<1x256xf32> to vector<16x256xf32>
    %296 = arith.mulf %294, %295 : vector<16x256xf32>
    %297 = tpu.concatenate %278, %279, %282, %285, %286, %289, %292, %293, %296 in 0 : vector<16x256xf32>, vector<16x256xf32>, vector<16x256xf32>, vector<16x256xf32>, vector<16x256xf32>, vector<16x256xf32>, vector<16x256xf32>, vector<16x256xf32>, vector<16x256xf32> -> vector<144x256xf32>
    %cst_59 = arith.constant dense<0.000000e+00> : vector<3x256xf32>
    %298 = tpu.matmul %274, %297, %cst_59 {dimension_numbers = #tpu.dot_dimension_numbers<[1], [0], [0], [1], [0, 0, 1, 1], [], []>} : vector<3x144xf32>, vector<144x256xf32>, vector<3x256xf32> -> vector<3x256xf32>
    %c0_60 = arith.constant 0 : index
    %c0_61 = arith.constant 0 : index
    %299 = vector.load %arg8[%c0_60, %c0_61] : memref<3x1xf32, #tpu.memory_space<vmem>>, vector<3x1xf32>
    %300 = vector.broadcast %299 : vector<3x1xf32> to vector<3x256xf32>
    %301 = arith.addf %298, %300 : vector<3x256xf32>
    %c0_62 = arith.constant 0 : index
    %c0_63 = arith.constant 0 : index
    %302 = vector.load %arg5[%c0_62, %c0_63] : memref<1x144xf32, #tpu.memory_space<vmem>>, vector<1x144xf32>
    %303 = tpu.concatenate %25, %273, %25 in 1 : vector<16x128xf32>, vector<16x256xf32>, vector<16x128xf32> -> vector<16x512xf32>
    %304 = vector.extract_strided_slice %303 {offsets = [0, 111], sizes = [16, 256], strides = [1, 1]} : vector<16x512xf32> to vector<16x256xf32>
    %305 = vector.broadcast %20 : vector<1x256xf32> to vector<16x256xf32>
    %306 = arith.mulf %304, %305 : vector<16x256xf32>
    %307 = vector.extract_strided_slice %303 {offsets = [0, 112], sizes = [16, 256], strides = [1, 1]} : vector<16x512xf32> to vector<16x256xf32>
    %308 = vector.extract_strided_slice %303 {offsets = [0, 113], sizes = [16, 256], strides = [1, 1]} : vector<16x512xf32> to vector<16x256xf32>
    %309 = vector.broadcast %24 : vector<1x256xf32> to vector<16x256xf32>
    %310 = arith.mulf %308, %309 : vector<16x256xf32>
    %311 = vector.extract_strided_slice %303 {offsets = [0, 127], sizes = [16, 256], strides = [1, 1]} : vector<16x512xf32> to vector<16x256xf32>
    %312 = vector.broadcast %20 : vector<1x256xf32> to vector<16x256xf32>
    %313 = arith.mulf %311, %312 : vector<16x256xf32>
    %314 = vector.extract_strided_slice %303 {offsets = [0, 128], sizes = [16, 256], strides = [1, 1]} : vector<16x512xf32> to vector<16x256xf32>
    %315 = vector.extract_strided_slice %303 {offsets = [0, 129], sizes = [16, 256], strides = [1, 1]} : vector<16x512xf32> to vector<16x256xf32>
    %316 = vector.broadcast %24 : vector<1x256xf32> to vector<16x256xf32>
    %317 = arith.mulf %315, %316 : vector<16x256xf32>
    %318 = vector.extract_strided_slice %303 {offsets = [0, 143], sizes = [16, 256], strides = [1, 1]} : vector<16x512xf32> to vector<16x256xf32>
    %319 = vector.broadcast %20 : vector<1x256xf32> to vector<16x256xf32>
    %320 = arith.mulf %318, %319 : vector<16x256xf32>
    %321 = vector.extract_strided_slice %303 {offsets = [0, 144], sizes = [16, 256], strides = [1, 1]} : vector<16x512xf32> to vector<16x256xf32>
    %322 = vector.extract_strided_slice %303 {offsets = [0, 145], sizes = [16, 256], strides = [1, 1]} : vector<16x512xf32> to vector<16x256xf32>
    %323 = vector.broadcast %24 : vector<1x256xf32> to vector<16x256xf32>
    %324 = arith.mulf %322, %323 : vector<16x256xf32>
    %325 = tpu.concatenate %306, %307, %310, %313, %314, %317, %320, %321, %324 in 0 : vector<16x256xf32>, vector<16x256xf32>, vector<16x256xf32>, vector<16x256xf32>, vector<16x256xf32>, vector<16x256xf32>, vector<16x256xf32>, vector<16x256xf32>, vector<16x256xf32> -> vector<144x256xf32>
    %cst_64 = arith.constant dense<0.000000e+00> : vector<1x256xf32>
    %326 = tpu.matmul %302, %325, %cst_64 {dimension_numbers = #tpu.dot_dimension_numbers<[1], [0], [0], [1], [0, 0, 1, 1], [], []>} : vector<1x144xf32>, vector<144x256xf32>, vector<1x256xf32> -> vector<1x256xf32>
    %c0_65 = arith.constant 0 : index
    %c0_66 = arith.constant 0 : index
    %327 = vector.load %arg9[%c0_65, %c0_66] : memref<1x1xf32, #tpu.memory_space<vmem>>, vector<1x1xf32>
    %328 = vector.broadcast %327 : vector<1x1xf32> to vector<1x256xf32>
    %329 = arith.addf %326, %328 : vector<1x256xf32>
    %c0_67 = arith.constant 0 : index
    %c0_68 = arith.constant 0 : index
    %c0_69 = arith.constant 0 : index
    %330 = vector.load %arg10[%c0_67, %c0_68, %c0_69] : memref<1x3x256xf32, #tpu.memory_space<vmem>>, vector<1x3x256xf32>
    %331 = vector.shape_cast %330 : vector<1x3x256xf32> to vector<3x256xf32>
    %332 = vector.shape_cast %301 : vector<3x256xf32> to vector<1x3x256xf32>
    tpu.vector_store %arg10[%c0_67, %c0_68, %c0_69], %332 {strides = array<i32>} : memref<1x3x256xf32, #tpu.memory_space<vmem>>, vector<1x3x256xf32>,
    %c0_70 = arith.constant 0 : index
    %c0_71 = arith.constant 0 : index
    %c0_72 = arith.constant 0 : index
    %333 = vector.load %arg11[%c0_70, %c0_71, %c0_72] : memref<1x1x256xf32, #tpu.memory_space<vmem>>, vector<1x1x256xf32>
    %334 = vector.shape_cast %333 : vector<1x1x256xf32> to vector<1x256xf32>
    %335 = vector.shape_cast %329 : vector<1x256xf32> to vector<1x1x256xf32>
    tpu.vector_store %arg11[%c0_70, %c0_71, %c0_72], %335 {strides = array<i32>} : memref<1x1x256xf32, #tpu.memory_space<vmem>>, vector<1x1x256xf32>,
    return
  }
  func.func @transform_0(%arg0: i32) -> (i32, i32, i32) {
    %c0_i32 = arith.constant 0 : i32
    %c0_i32_0 = arith.constant 0 : i32
    %c0_i32_1 = arith.constant 0 : i32
    return %arg0, %c0_i32, %c0_i32_0 : i32, i32, i32
  }
  func.func @transform_1(%arg0: i32) -> (i32, i32, i32) {
    %c0_i32 = arith.constant 0 : i32
    %c0_i32_0 = arith.constant 0 : i32
    %c0_i32_1 = arith.constant 0 : i32
    %c0_i32_2 = arith.constant 0 : i32
    return %c0_i32, %c0_i32_0, %c0_i32_1 : i32, i32, i32
  }
  func.func @transform_2(%arg0: i32) -> (i32, i32, i32) {
    %c0_i32 = arith.constant 0 : i32
    %c0_i32_0 = arith.constant 0 : i32
    %c0_i32_1 = arith.constant 0 : i32
    %c0_i32_2 = arith.constant 0 : i32
    return %c0_i32, %c0_i32_0, %c0_i32_1 : i32, i32, i32
  }
  func.func @transform_3(%arg0: i32) -> (i32, i32) {
    %c0_i32 = arith.constant 0 : i32
    %c0_i32_0 = arith.constant 0 : i32
    %c0_i32_1 = arith.constant 0 : i32
    return %c0_i32, %c0_i32_0 : i32, i32
  }
  func.func @transform_4(%arg0: i32) -> (i32, i32) {
    %c0_i32 = arith.constant 0 : i32
    %c0_i32_0 = arith.constant 0 : i32
    %c0_i32_1 = arith.constant 0 : i32
    return %c0_i32, %c0_i32_0 : i32, i32
  }
  func.func @transform_5(%arg0: i32) -> (i32, i32) {
    %c0_i32 = arith.constant 0 : i32
    %c0_i32_0 = arith.constant 0 : i32
    %c0_i32_1 = arith.constant 0 : i32
    return %c0_i32, %c0_i32_0 : i32, i32
  }
  func.func @transform_6(%arg0: i32) -> (i32, i32) {
    %c0_i32 = arith.constant 0 : i32
    %c0_i32_0 = arith.constant 0 : i32
    %c0_i32_1 = arith.constant 0 : i32
    return %c0_i32, %c0_i32_0 : i32, i32
  }
  func.func @transform_7(%arg0: i32) -> (i32, i32) {
    %c0_i32 = arith.constant 0 : i32
    %c0_i32_0 = arith.constant 0 : i32
    %c0_i32_1 = arith.constant 0 : i32
    return %c0_i32, %c0_i32_0 : i32, i32
  }
  func.func @transform_8(%arg0: i32) -> (i32, i32) {
    %c0_i32 = arith.constant 0 : i32
    %c0_i32_0 = arith.constant 0 : i32
    %c0_i32_1 = arith.constant 0 : i32
    return %c0_i32, %c0_i32_0 : i32, i32
  }
  func.func @transform_9(%arg0: i32) -> (i32, i32, i32) {
    %c0_i32 = arith.constant 0 : i32
    %c0_i32_0 = arith.constant 0 : i32
    %c0_i32_1 = arith.constant 0 : i32
    return %arg0, %c0_i32, %c0_i32_0 : i32, i32, i32
  }
  func.func @transform_10(%arg0: i32) -> (i32, i32, i32) {
    %c0_i32 = arith.constant 0 : i32
    %c0_i32_0 = arith.constant 0 : i32
    %c0_i32_1 = arith.constant 0 : i32
    return %arg0, %c0_i32, %c0_i32_0 : i32, i32, i32
  }
}

</mosaic_0001>

<bundles_post_ra>
// kernel: model_forward.1
= control target key start
LH: loop header
LB: loop body
LE: loop exit
PB: predicated region body
PF: predicated region fallthrough
CT: control target
= control target key end

     0   :  { %s5350_s15 = smov 0   ;;  %s8896_s0 = inlined_call_operand.vmem [shape: f32[2,32,256], index: 0, kind: input, shape index: {}]   ;;  %s8897_s1 = inlined_call_operand.vmem [shape: f32[2,16,32], index: 1, kind: input, shape index: {}]   ;;  %s8898_s2 = inlined_call_operand.vmem [shape: f32[10,16,144], index: 2, kind: input, shape index: {}]   ;;  %s8899_s3 = inlined_call_operand.vmem [shape: f32[3,144], index: 3, kind: input, shape index: {}]   ;;  %s8900_s4 = inlined_call_operand.vmem [shape: f32[1,144], index: 4, kind: input, shape index: {}]   ;;  %s8901_s5 = inlined_call_operand.vmem [shape: f32[16,1], index: 5, kind: input, shape index: {}]   ;;  %s8902_s6 = inlined_call_operand.vmem [shape: f32[16,1], index: 6, kind: input, shape index: {}]   ;;  %s8903_s7 = inlined_call_operand.vmem [shape: f32[3,1], index: 7, kind: input, shape index: {}]   ;;  %s8904_s8 = inlined_call_operand.<no memory space> [shape: f32[1,1], index: 8, kind: input, shape index: {}]   ;;  %s8905_s9 = inlined_call_operand.vmem [shape: f32[2,3,256], index: 9, kind: output, shape index: {0}]   ;;  %s8906_s10 = inlined_call_operand.vmem [shape: f32[2,1,256], index: 10, kind: output, shape index: {1}]  }
   0x1   :  { %v16_v0 = vstv %s8904_s8 }
   0x2   :  { %17 = vst [vmem:[#allocation2] sm:$0x1] %v16_v0 }
   0x3 LB: > { %s5131_s16 = sadd.s32 4294967295, %s5275_s15   ;;  %p5135_p0 = scmp.ge.s32.totalorder %s5275_s15, 1  ;;  %s5275_s15 = sphi %s5350_s15, %s23_s15  }
   0x4   : > { %p317_p1 = scmp.lt.s32.totalorder %s5275_s15, 3 }
   0x6   : > { %p318_p2 = pnand %p5135_p0, %p317_p1 }
   0x8   : > { %321 = sbr.rel (%p318_p2) target bundleno = 5292 (0x14ac), region = 56 }
   0xd   : > { %p359_p3 = scmp.lt.s32.totalorder %s5131_s16, 1  ;;  %v8907_v1 = vlaneseq  ;;  %v5277_v2 = vmov 0.0   ;;  %s5278_s8 = smov 95   ;;  %vm423_vm4 = vcmask 261120   ;;  %v507_v20 = vld [vmem:[%s8897_s1] sm:$0xff]  ;;  %v508_v22 = vld [vmem:[%s8897_s1 + $0x8] sm:$0xff] }
   0xe   : > { %579 = vmatprep.mubr.f32.mxu1 %v5277_v2  ;;  %801 = vrot.lane.b32.xlu1 %v5277_v2, %s5278_s8  ;;  %s5279_s23 = smov 127   ;;  %s5280_s24 = smov 15   ;;  %vm636_vm5 = vcmask 1039360   ;;  %vm622_vm6 = vcmask 924672   ;;  %vm664_vm7 = vcmask 121856   ;;  %vm650_vm8 = vcmask 7168  }
   0xf   : > { %s8935_s16 = smov (!%p359_p3, %s5131_s16), 1  ;;  %v374_v3 = vand.u32 127, %v8907_v1  ;;  %494 = vmatprep.mubr.f32.mxu0 %v5277_v2  ;;  %s5281_s27 = smov 113   ;;  %vm678_vm9 = vcmask 138240   ;;  %vm807_vm10 = vcmask 777216   ;;  %vm606_vm11 = vcmask 908288  }
  0x10   : > { %s5211_s17 = sshll.u32 %s8935_s16, 6  ;;  %s5282_s28 = smov 1   ;;  %vm742_vm12 = vcmask 916480   ;;  %vm722_vm13 = vcmask 1031168   ;;  %vm792_vm14 = vcmask 785408   ;;  %vm772_vm15 = vcmask 900096  }
  0x11   : > { %v375_v4 = vadd.s32 128, %v374_v3  ;;  %v380_v5 = vand.u32 15, %v374_v3  ;;  %s363_s20 = scalar_lea.vmem %s8896_s0, %s5211_s17  ;;  %s5283_s29 = smov 111  }
  0x12   : > { %v419_v6 = vld [vmem:[%s363_s20 + $0x38] sm:$0xff]  ;;  %v418_v7 = vld [vmem:[%s363_s20 + $0x30] sm:$0xff]  ;;  %v417_v8 = vld [vmem:[%s363_s20 + $0x28] sm:$0xff]  ;;  %s5284_s30 = smov 17   ;;  %s5285_s11 = smov 112  }
  0x13   : > { %v387_v9 = vand.u32 15, %v375_v4  ;;  %vm400_vm0 = vcmp.ne.s32.totalorder %v380_v5, 0  ;;  %vm406_vm1 = vcmp.ne.s32.totalorder %v380_v5, 15  ;;  %539 = vmatprep.subr.mxu1 %v419_v6  ;;  %v416_v10 = vld [vmem:[%s363_s20 + $0x20] sm:$0xff]  ;;  %454 = vmatprep.subr.mxu0 %v419_v6  ;;  %v415_v12 = vld [vmem:[%s363_s20 + $0x18] sm:$0xff]  ;;  %v414_v13 = vld [vmem:[%s363_s20 + $0x10] sm:$0xff] }
  0x14   : > { %v5141_v11 = vsel %vm400_vm0, 1.0, %v5277_v2  ;;  %540 = vmatpush1.msra.mxu1 %v418_v7  ;;  %455 = vmatpush1.msra.mxu0 %v418_v7  ;;  %v5143_v15 = vsel %vm406_vm1, 1.0, %v5277_v2  ;;  %v413_v17 = vld [vmem:[%s363_s20 + $0x8] sm:$0xff]  ;;  %v412_v19 = vld [vmem:[%s363_s20] sm:$0xff]  ;;  %s5286_s12 = smov 126   ;;  %s5287_s13 = smov 96  }
  0x15   : > { %vm401_vm2 = vcmp.ne.s32.totalorder %v387_v9, 0  ;;  %vm407_vm3 = vcmp.ne.s32.totalorder %v387_v9, 15  ;;  %541 = vmatprep.subr.mxu1 %v417_v8  ;;  %456 = vmatprep.subr.mxu0 %v417_v8  ;;  %s5288_s14 = smov 110   ;;  %s5289_s17 = smov 94   ;;  %vm827_vm0 = vcmask 769024   ;;  %vm1015_vm1 = vcmask 130048  }
  0x16   : > { %v5142_v14 = vsel %vm401_vm2, 1.0, %v5277_v2  ;;  %v5144_v16 = vsel %vm407_vm3, 1.0, %v5277_v2  ;;  %542 = vmatpush1.msra.mxu1 %v416_v10  ;;  %457 = vmatpush1.msra.mxu0 %v416_v10 }
  0x17   : > { %v5246_v18 = vpack.i.bf16 %v5142_v14, %v5141_v11  ;;  %543 = vmatprep.subr.mxu1 %v415_v12  ;;  %v5251_v21 = vpack.i.bf16 %v5144_v16, %v5143_v15  ;;  %458 = vmatprep.subr.mxu0 %v415_v12 }
  0x18   : > { %544 = vmatpush1.msra.mxu1 %v414_v13  ;;  %459 = vmatpush1.msra.mxu0 %v414_v13 }
  0x19   : > { %5247 = vrot.lane.b32.xlu1 %v5246_v18, %s5279_s23  ;;  %545 = vmatprep.subr.mxu1 %v413_v17 }
  0x1a   : > { %5237 = vrot.lane.b32.xlu0 %v5246_v18, %s5280_s24  ;;  %546 = vmatpush1.msra.mxu1 %v412_v19 }
  0x1b   : > { %5149 = vmatmul.mubr.msk.f32.vlgmr.msra.gmra.mxu1 %vm423_vm4, %v507_v20  ;;  %460 = vmatprep.subr.mxu0 %v413_v17 }
  0x1c   : > { %585 = vmatprep.mubr.f32.mxu1 %v5277_v2  ;;  %461 = vmatpush1.msra.mxu0 %v412_v19 }
  0x1d   : > { %5252 = vrot.lane.b32.xlu1 %v5251_v21, %s5281_s27 }
  0x1e   : > { %5242 = vrot.lane.b32.xlu0 %v5251_v21, %s5282_s28 }
  0x1f   : > { %5150 = vmatmul.mubr.msk.f32.gmra.mxu1 %vm423_vm4, %v508_v22 }
  0x21   : > { %5262 = vrot.lane.b32.xlu1 %v5246_v18, %s5283_s29 }
  0x22   : > { %5257 = vrot.lane.b32.xlu0 %v5251_v21, %s5284_s30 }
  0x26   : > { %693 = vrot.lane.b32.xlu0 %v5277_v2, %s5279_s23 }
  0x80   : > { %v5387_v23 = vpop.permute.xlu1 %801 }
  0x8b   : > { %v5248_v24 = vpop.permute.xlu1 %5247 }
  0x8c   : > { %v5249_v25 = vunpack.i.l.bf16 %v5248_v24  ;;  %v5238_v26 = vpop.permute.xlu0 %5237  ;;  %v5409_v45 = vunpack.i.h.bf16 %v5248_v24 }
  0x8d   : > { %v5240_v27 = vunpack.i.h.bf16 %v5238_v26  ;;  %v5400_v43 = vunpack.i.l.bf16 %v5238_v26 }
  0x8e   : > { %v641_v28 = vmul.f32 0.0, %v5249_v25  ;;  %v5423_v49 = vsel %vm636_vm5, %v5249_v25, %v5409_v45 }
  0x8f   : > { %v5253_v29 = vpop.permute.xlu1 %5252  ;;  %v671_v32 = vmul.f32 0.0, %v5240_v27  ;;  %v5446_v57 = vsel %vm664_vm7, %v5400_v43, %v5240_v27 }
  0x90   : > { %v5254_v30 = vunpack.i.l.bf16 %v5253_v29  ;;  %732 = vrot.lane.b32.xlu0 %v641_v28, %s5285_s11  ;;  %v5243_v31 = vpop.permute.xlu0 %5242  ;;  %v5411_v46 = vunpack.i.h.bf16 %v5253_v29 }
  0x91   : > { %v5245_v33 = vunpack.i.h.bf16 %v5243_v31  ;;  %v5413_v47 = vunpack.i.l.bf16 %v5243_v31 }
  0x92   : > { %v627_v34 = vmul.f32 0.0, %v5254_v30  ;;  %v5426_v50 = vsel %vm622_vm6, %v5254_v30, %v5411_v46 }
  0x93   : > { %v657_v36 = vmul.f32 0.0, %v5245_v33  ;;  %v5452_v59 = vsel %vm650_vm8, %v5413_v47, %v5245_v33  ;;  %v5517_v17 = vpop.permute.xlu1 %5262 }
  0x94   : > { %712 = vrot.lane.b32.xlu1 %v627_v34, %s5286_s12  ;;  %786 = vrot.lane.b32.xlu0 %v671_v32, %s5287_s13  ;;  %v5258_v35 = vpop.permute.xlu0 %5257 }
  0x95   : > { %v5260_v37 = vunpack.i.h.bf16 %v5258_v35  ;;  %v5435_v54 = vunpack.i.l.bf16 %v5258_v35 }
  0x97   : > { %v685_v38 = vmul.f32 0.0, %v5260_v37  ;;  %v5476_v4 = vsel %vm678_vm9, %v5435_v54, %v5260_v37 }
  0x98   : > { %766 = vrot.lane.b32.xlu1 %v657_v36, %s5288_s14  ;;  %v5513_v15 = vpop.permute.xlu0 %693 }
  0x99   : > { %821 = vrot.lane.b32.xlu0 %v685_v38, %s5289_s17 }
  0xdb   : > { %v581_v39 = vpop.f32.mrf.mxu1 }
  0xdc   : > { %v5394_v40 = vmax.f32 %v581_v39, 0.0 }
  0xdd   : > { %v583_v41 = vpop.f32.mrf.mxu1 }
  0xde   : > { %v5396_v42 = vmax.f32 %v583_v41, 0.0  ;;  %797 = vrot.lane.b32.xlu0 %v5394_v40, %s5278_s8  ;;  %v669_v44 = vmul.f32 %v5400_v43, %v5394_v40  ;;  %v655_v48 = vmul.f32 %v5413_v47, %v5394_v40  ;;  %v642_v51 = vmul.f32 %v5423_v49, %v5394_v40 }
  0xdf   : > { %v628_v52 = vmul.f32 %v5426_v50, %v5394_v40  ;;  %v587_v53 = vpop.f32.mrf.mxu1  ;;  %v683_v56 = vmul.f32 %v5435_v54, %v5394_v40 }
  0xe0   : > { %799 = vrot.lane.b32.xlu1 %v5396_v42, %s5278_s8  ;;  %v5437_v55 = vmax.f32 %v587_v53, 0.0  ;;  %v670_v58 = vmul.f32 %v5446_v57, %v5396_v42  ;;  %v656_v60 = vmul.f32 %v5452_v59, %v5396_v42  ;;  %v629_v61 = vmul.f32 %v5411_v46, %v5396_v42 }
  0xe1   : > { %v589_v62 = vpop.f32.mrf.mxu1  ;;  %v643_v63 = vmul.f32 %v5409_v45, %v5396_v42  ;;  %v684_v5 = vmul.f32 %v5476_v4, %v5396_v42 }
  0xe2   : > { %747 = vrot.lane.b32.xlu0 %v5394_v40, %s5283_s29  ;;  %v5465_v0 = vmax.f32 %v589_v62, 0.0  ;;  %v672_v3 = vmul.f32 %v5400_v43, %v5437_v55  ;;  %v658_v6 = vmul.f32 %v5413_v47, %v5437_v55  ;;  %v630_v7 = vmul.f32 %v5426_v50, %v5437_v55 }
  0xe3   : > { %v644_v8 = vmul.f32 %v5423_v49, %v5437_v55  ;;  %v686_v10 = vmul.f32 %v5435_v54, %v5437_v55 }
  0xe4   : > { %782 = vrot.lane.b32.xlu1 %v669_v44, %s5287_s13  ;;  %v673_v9 = vmul.f32 %v5446_v57, %v5465_v0  ;;  %v631_v11 = vmul.f32 %v5411_v46, %v5465_v0  ;;  %v659_v12 = vmul.f32 %v5452_v59, %v5465_v0  ;;  %v687_v13 = vmul.f32 %v5476_v4, %v5465_v0 }
  0xe5   : > { %v645_v14 = vmul.f32 %v5409_v45, %v5465_v0 }
  0xe6   : > { %695 = vrot.lane.b32.xlu0 %v5394_v40, %s5279_s23 }
  0xe8   : > { %749 = vrot.lane.b32.xlu1 %v5396_v42, %s5283_s29 }
  0xea   : > { %762 = vrot.lane.b32.xlu0 %v655_v48, %s5288_s14 }
  0xec   : > { %734 = vrot.lane.b32.xlu1 %v642_v51, %s5285_s11 }
  0xee   : > { %714 = vrot.lane.b32.xlu0 %v628_v52, %s5286_s12 }
  0xf0   : > { %697 = vrot.lane.b32.xlu1 %v5396_v42, %s5279_s23 }
  0xf2   : > { %803 = vrot.lane.b32.xlu0 %v5437_v55, %s5278_s8 }
  0xf4   : > { %817 = vrot.lane.b32.xlu1 %v683_v56, %s5289_s17 }
  0xf6   : > { %784 = vrot.lane.b32.xlu0 %v670_v58, %s5287_s13 }
  0xf8   : > { %764 = vrot.lane.b32.xlu1 %v656_v60, %s5288_s14 }
  0xfa   : > { %751 = vrot.lane.b32.xlu0 %v5437_v55, %s5283_s29 }
  0xfc   : > { %716 = vrot.lane.b32.xlu1 %v629_v61, %s5286_s12 }
  0xfe   : > { %736 = vrot.lane.b32.xlu0 %v643_v63, %s5285_s11 }
 0x100   : > { %805 = vrot.lane.b32.xlu1 %v5465_v0, %s5278_s8 }
 0x102   : > { %699 = vrot.lane.b32.xlu0 %v5437_v55, %s5279_s23  ;;  %v5515_v16 = vpop.permute.xlu0 %732 }
 0x104   : > { %788 = vrot.lane.b32.xlu1 %v672_v3, %s5287_s13 }
 0x106   : > { %819 = vrot.lane.b32.xlu0 %v684_v5, %s5289_s17  ;;  %v5519_v18 = vpop.permute.xlu0 %786  ;;  %v5521_v19 = vpop.permute.xlu1 %712 }
 0x108   : > { %753 = vrot.lane.b32.xlu1 %v5465_v0, %s5283_s29 }
 0x10a   : > { %768 = vrot.lane.b32.xlu0 %v658_v6, %s5288_s14  ;;  %v5525_v21 = vpop.permute.xlu1 %766 }
 0x10b   : > { %v5523_v20 = vpop.permute.xlu0 %821 }
 0x10c   : > { %718 = vrot.lane.b32.xlu1 %v630_v7, %s5286_s12 }
 0x10e   : > { %738 = vrot.lane.b32.xlu0 %v644_v8, %s5285_s11 }
 0x110   : > { %701 = vrot.lane.b32.xlu1 %v5465_v0, %s5279_s23 }
 0x112   : > { %790 = vrot.lane.b32.xlu0 %v673_v9, %s5287_s13 }
 0x114   : > { %823 = vrot.lane.b32.xlu1 %v686_v10, %s5289_s17 }
 0x116   : > { %720 = vrot.lane.b32.xlu0 %v631_v11, %s5286_s12  ;;  %v5145_v11 = vld [vmem:[%s8897_s1 + $0x10] sm:$0xff] }
 0x117   : > { %5147 = vmatmul.mubr.msk.f32.vlgmr.msra.gmra.mxu0 %vm423_vm4, %v5145_v11 }
 0x118   : > { %770 = vrot.lane.b32.xlu1 %v659_v12, %s5288_s14  ;;  %500 = vmatprep.mubr.f32.mxu0 %v5277_v2 }
 0x11a   : > { %825 = vrot.lane.b32.xlu0 %v687_v13, %s5289_s17 }
 0x11c   : > { %740 = vrot.lane.b32.xlu1 %v645_v14, %s5285_s11 }
 0x150   : > { %v798_v22 = vpop.permute.xlu0 %797 }
 0x151   : > { %919 = vrot.lane.b32.xlu0 %v798_v22, %s5284_s30 }
 0x152   : > { %v800_v24 = vpop.permute.xlu1 %799 }
 0x153   : > { %v809_v31 = vsel %vm807_vm10, %v800_v24, %v5387_v23  ;;  %v808_v33 = vsel %vm807_vm10, %v798_v22, %v800_v24 }
 0x154   : > { %v748_v25 = vpop.permute.xlu0 %747 }
 0x155   : > { %883 = vrot.lane.b32.xlu0 %v748_v25, %s5284_s30 }
 0x156   : > { %v783_v26 = vpop.permute.xlu1 %782 }
 0x158   : > { %v5529_v27 = vpop.permute.xlu0 %695 }
 0x159   : > { %907 = vrot.lane.b32.xlu0 %v783_v26, %s5284_s30 }
 0x15a   : > { %v750_v28 = vpop.permute.xlu1 %749 }
 0x15b   : > { %887 = vrot.lane.b32.xlu1 %v750_v28, %s5284_s30  ;;  %v755_v36 = vsel %vm606_vm11, %v748_v25, %v750_v28 }
 0x15c   : > { %v763_v29 = vpop.permute.xlu0 %762 }
 0x15d   : > { %895 = vrot.lane.b32.xlu0 %v763_v29, %s5284_s30 }
 0x15e   : > { %v735_v30 = vpop.permute.xlu1 %734 }
 0x15f   : > { %923 = vrot.lane.b32.xlu1 %v809_v31, %s5284_s30  ;;  %v743_v39 = vsel %vm742_vm12, %v5515_v16, %v735_v30 }
 0x160   : > { %v715_v32 = vpop.permute.xlu0 %714 }
 0x161   : > { %921 = vrot.lane.b32.xlu0 %v808_v33, %s5284_s30  ;;  %v723_v48 = vsel %vm722_vm13, %v5521_v19, %v715_v32 }
 0x162   : > { %v5539_v34 = vpop.permute.xlu1 %697 }
 0x164   : > { %v804_v35 = vpop.permute.xlu0 %803 }
 0x165   : > { %925 = vrot.lane.b32.xlu1 %v804_v35, %s5284_s30  ;;  %885 = vrot.lane.b32.xlu0 %v755_v36, %s5284_s30  ;;  %v704_v36 = vsel %vm636_vm5, %v5529_v27, %v5539_v34 }
 0x166   : > { %v5544_v37 = vpop.permute.xlu1 %817 }
 0x168   : > { %v785_v38 = vpop.permute.xlu0 %784 }
 0x169   : > { %871 = vrot.lane.b32.xlu0 %v743_v39, %s5284_s30  ;;  %v793_v53 = vsel %vm792_vm14, %v783_v26, %v785_v38  ;;  %v794_v62 = vsel %vm792_vm14, %v785_v38, %v5519_v18  ;;  %v5616_v39 = vunpack.i.h.bf16 %v5517_v17 }
 0x16a   : > { %v765_v41 = vpop.permute.xlu1 %764 }
 0x16b   : > { %v773_v60 = vsel %vm772_vm15, %v763_v29, %v765_v41  ;;  %v774_v6 = vsel %vm772_vm15, %v765_v41, %v5525_v21  ;;  %v5264_v41 = vunpack.i.l.bf16 %v5517_v17 }
 0x16c   : > { %v752_v44 = vpop.permute.xlu0 %751 }
 0x16d   : > { %889 = vrot.lane.b32.xlu1 %v752_v44, %s5284_s30  ;;  %859 = vrot.lane.b32.xlu0 %v723_v48, %s5284_s30 }
 0x16e   : > { %v717_v51 = vpop.permute.xlu1 %716 }
 0x16f   : > { %v724_v7 = vsel %vm722_vm13, %v715_v32, %v717_v51 }
 0x170   : > { %v737_v52 = vpop.permute.xlu0 %736 }
 0x171   : > { %875 = vrot.lane.b32.xlu1 %v737_v52, %s5284_s30  ;;  %909 = vrot.lane.b32.xlu0 %v793_v53, %s5284_s30  ;;  %v744_v63 = vsel %vm742_vm12, %v735_v30, %v737_v52  ;;  %v5629_v52 = vsel %vm606_vm11, %v5264_v41, %v5616_v39  ;;  %v611_v53 = vmul.f32 0.0, %v5264_v41 }
 0x172   : > { %v806_v56 = vpop.permute.xlu1 %805  ;;  %v612_v17 = vmul.f32 %v5629_v52, %v5394_v40 }
 0x173   : > { %v811_v22 = vsel %vm807_vm10, %v806_v56, %v5387_v23  ;;  %v810_v26 = vsel %vm807_vm10, %v804_v35, %v806_v56 }
 0x174   : > { %v700_v58 = vpop.permute.xlu0 %699 }
 0x175   : > { %863 = vrot.lane.b32.xlu1 %v717_v51, %s5284_s30  ;;  %897 = vrot.lane.b32.xlu0 %v773_v60, %s5284_s30  ;;  %v705_v10 = vsel %vm636_vm5, %v5513_v15, %v700_v58  ;;  %v615_v51 = vmul.f32 %v5616_v39, %v5465_v0  ;;  %v613_v60 = vmul.f32 %v5616_v39, %v5396_v42 }
 0x176   : > { %v789_v61 = vpop.permute.xlu1 %788 }
 0x178   : > { %v5564_v3 = vpop.permute.xlu0 %819 }
 0x179   : > { %911 = vrot.lane.b32.xlu1 %v794_v62, %s5284_s30  ;;  %873 = vrot.lane.b32.xlu0 %v744_v63, %s5284_s30  ;;  %v828_v62 = vsel %vm827_vm0, %v5544_v37, %v5564_v3 }
 0x17a   : > { %v754_v5 = vpop.permute.xlu1 %753 }
 0x17b   : > { %v756_v28 = vsel %vm606_vm11, %v752_v44, %v754_v5  ;;  %v703_v44 = vsel %vm636_vm5, %v5513_v15, %v5529_v27  ;;  %v614_v27 = vmul.f32 %v5629_v52, %v5437_v55  ;;  %v829_v55 = vsel %vm827_vm0, %v5564_v3, %v5523_v20 }
 0x17c   : > { %v769_v9 = vpop.permute.xlu0 %768 }
 0x17d   : > { %899 = vrot.lane.b32.xlu1 %v774_v6, %s5284_s30  ;;  %861 = vrot.lane.b32.xlu0 %v724_v7, %s5284_s30 }
 0x17e   : > { %v5571_v8 = vpop.permute.xlu1 %718 }
 0x17f   : > { %v725_v32 = vsel %vm722_vm13, %v5521_v19, %v5571_v8 }
 0x180   : > { %v739_v13 = vpop.permute.xlu0 %738 }
 0x181   : > { %853 = vrot.lane.b32.xlu1 %v705_v10, %s5284_s30  ;;  %893 = vrot.lane.b32.xlu0 %v754_v5, %s5284_s30  ;;  %v745_v30 = vsel %vm742_vm12, %v5515_v16, %v739_v13 }
 0x182   : > { %v702_v12 = vpop.permute.xlu1 %701 }
 0x183   : > { %v706_v35 = vsel %vm636_vm5, %v700_v58, %v702_v12 }
 0x184   : > { %v791_v25 = vpop.permute.xlu0 %790 }
 0x185   : > { %913 = vrot.lane.b32.xlu1 %v789_v61, %s5284_s30  ;;  %857 = vrot.lane.b32.xlu0 %v702_v12, %s5284_s30  ;;  %v796_v31 = vsel %vm792_vm14, %v791_v25, %v5519_v18  ;;  %v795_v38 = vsel %vm792_vm14, %v789_v61, %v791_v25  ;;  %v597_v61 = vld [vmem:[%s8898_s2 + $0x8] sm:$0xff] }
 0x186   : > { %v824_v14 = vpop.permute.xlu1 %823 }
 0x188   : > { %v721_v29 = vpop.permute.xlu0 %720 }
 0x189   : > { %901 = vrot.lane.b32.xlu1 %v769_v9, %s5284_s30  ;;  %929 = vrot.lane.b32.xlu0 %v811_v22, %s5284_s30  ;;  %v726_v58 = vsel %vm722_vm13, %v5571_v8, %v721_v29 }
 0x18a   : > { %v771_v24 = vpop.permute.xlu1 %770 }
 0x18b   : > { %v776_v33 = vsel %vm772_vm15, %v771_v24, %v5525_v21  ;;  %v775_v48 = vsel %vm772_vm15, %v769_v9, %v771_v24 }
 0x18c   : > { %v826_v0 = vpop.permute.xlu0 %825 }
 0x18d   : > { %927 = vrot.lane.b32.xlu1 %v810_v26, %s5284_s30  ;;  %v830_v56 = vsel %vm827_vm0, %v824_v14, %v826_v0  ;;  %v831_v5 = vsel %vm827_vm0, %v826_v0, %v5523_v20 }
 0x18e   : > { %v741_v2 = vpop.permute.xlu1 %740 }
 0x18f   : > { %881 = vrot.lane.b32.xlu0 %v741_v2, %s5284_s30  ;;  %v746_v40 = vsel %vm742_vm12, %v739_v13, %v741_v2 }
 0x191   : > { %891 = vrot.lane.b32.xlu1 %v756_v28, %s5284_s30 }
 0x193   : > { %869 = vrot.lane.b32.xlu0 %v721_v29, %s5284_s30 }
 0x195   : > { %877 = vrot.lane.b32.xlu1 %v745_v30, %s5284_s30 }
 0x197   : > { %917 = vrot.lane.b32.xlu0 %v796_v31, %s5284_s30 }
 0x199   : > { %865 = vrot.lane.b32.xlu1 %v725_v32, %s5284_s30 }
 0x19b   : > { %905 = vrot.lane.b32.xlu0 %v776_v33, %s5284_s30 }
 0x19d   : > { %855 = vrot.lane.b32.xlu1 %v706_v35, %s5284_s30 }
 0x19f   : > { %849 = vrot.lane.b32.xlu0 %v704_v36, %s5284_s30 }
 0x1a1   : > { %915 = vrot.lane.b32.xlu1 %v795_v38, %s5284_s30 }
 0x1a3   : > { %847 = vrot.lane.b32.xlu0 %v703_v44, %s5284_s30 }
 0x1a5   : > { %903 = vrot.lane.b32.xlu1 %v775_v48, %s5284_s30 }
 0x1a7   : > { %845 = vrot.lane.b32.xlu0 %v615_v51, %s5284_s30 }
 0x1a9   : > { %851 = vrot.lane.b32.xlu1 %v5539_v34, %s5284_s30  ;;  %v5146_v34 = vld [vmem:[%s8897_s1 + $0x18] sm:$0xff] }
 0x1aa   : > { %5148 = vmatmul.mubr.msk.f32.gmra.mxu0 %vm423_vm4, %v5146_v34 }
 0x1ab   : > { %839 = vrot.lane.b32.xlu0 %v612_v17, %s5284_s30  ;;  %5151 = vmatprep.mubr.msk.f32.mxu0 %vm1015_vm1, %v597_v61 }
 0x1ad   : > { %843 = vrot.lane.b32.xlu1 %v614_v27, %s5284_s30 }
 0x1af   : > { %937 = vrot.lane.b32.xlu0 %v824_v14, %s5284_s30 }
 0x1b1   : > { %837 = vrot.lane.b32.xlu1 %v611_v53, %s5284_s30 }
 0x1b3   : > { %939 = vrot.lane.b32.xlu0 %v830_v56, %s5284_s30 }
 0x1b5   : > { %879 = vrot.lane.b32.xlu1 %v746_v40, %s5284_s30 }
 0x1b7   : > { %935 = vrot.lane.b32.xlu0 %v829_v55, %s5284_s30 }
 0x1b9   : > { %867 = vrot.lane.b32.xlu1 %v726_v58, %s5284_s30 }
 0x1bd   : > { %841 = vrot.lane.b32.xlu1 %v613_v60, %s5284_s30 }
 0x1c1   : > { %933 = vrot.lane.b32.xlu1 %v828_v62, %s5284_s30 }
 0x1c3   : > { %v920_v63 = vpop.permute.xlu0 %919 }
 0x1c5   : > { %941 = vrot.lane.b32.xlu1 %v831_v5, %s5284_s30 }
 0x1c7   : > { %v5671_v42 = vpop.permute.xlu0 %883 }
 0x1c9   : > { %931 = vrot.lane.b32.xlu1 %v5544_v37, %s5284_s30 }
 0x1cb   : > { %v908_v6 = vpop.permute.xlu0 %907 }
 0x1cd   : > { %v5675_v8 = vpop.permute.xlu1 %887 }
 0x1cf   : > { %v896_v7 = vpop.permute.xlu0 %895 }
 0x1d1   : > { %v924_v10 = vpop.permute.xlu1 %923 }
 0x1d3   : > { %v922_v9 = vpop.permute.xlu0 %921 }
 0x1d4   : > { %v972_v51 = vsel %vm678_vm9, %v922_v9, %v924_v10  ;;  %v971_v27 = vsel %vm678_vm9, %v920_v63, %v922_v9 }
 0x1d7   : > { %v5677_v3 = vpop.permute.xlu0 %885  ;;  %v926_v11 = vpop.permute.xlu1 %925 }
 0x1db   : > { %v5679_v12 = vpop.permute.xlu0 %871 }
 0x1df   : > { %v890_v13 = vpop.permute.xlu1 %889  ;;  %v5681_v14 = vpop.permute.xlu0 %859 }
 0x1e3   : > { %v5683_v22 = vpop.permute.xlu1 %875  ;;  %v910_v24 = vpop.permute.xlu0 %909 }
 0x1e4   : > { %v967_v63 = vsel %vm678_vm9, %v908_v6, %v910_v24 }
 0x1e7   : > { %v5685_v25 = vpop.permute.xlu1 %863  ;;  %v898_v37 = vpop.permute.xlu0 %897 }
 0x1eb   : > { %v912_v26 = vpop.permute.xlu1 %911  ;;  %v5687_v2 = vpop.permute.xlu0 %873 }
 0x1ec   : > { %v968_v5 = vsel %vm678_vm9, %v910_v24, %v912_v26  ;;  %v960_v24 = vsel %vm678_vm9, %v5677_v3, %v5675_v8  ;;  %v956_v8 = vsel %vm678_vm9, %v5687_v2, %v5683_v22 }
 0x1ef   : > { %v900_v28 = vpop.permute.xlu1 %899  ;;  %v5689_v29 = vpop.permute.xlu0 %861 }
 0x1f0   : > { %v951_v22 = vsel %vm678_vm9, %v5681_v14, %v5689_v29 }
 0x1f3   : > { %v5691_v30 = vpop.permute.xlu1 %853  ;;  %v894_v31 = vpop.permute.xlu0 %893 }
 0x1f7   : > { %v914_v32 = vpop.permute.xlu1 %913  ;;  %v5693_v33 = vpop.permute.xlu0 %857 }
 0x1fb   : > { %v902_v35 = vpop.permute.xlu1 %901  ;;  %v930_v36 = vpop.permute.xlu0 %929 }
 0x1ff   : > { %v928_v38 = vpop.permute.xlu1 %927 }
 0x200   : > { %v974_v41 = vsel %vm678_vm9, %v928_v38, %v930_v36  ;;  %v973_v44 = vsel %vm678_vm9, %v926_v11, %v928_v38  ;;  %v964_v36 = vsel %vm678_vm9, %v898_v37, %v900_v28  ;;  %v959_v28 = vsel %vm678_vm9, %v5671_v42, %v5677_v3 }
 0x201   : > { %v882_v48 = vpop.permute.xlu0 %881  ;;  %1022 = vmatprep.subr.mxu0 %v974_v41  ;;  %v963_v41 = vsel %vm678_vm9, %v896_v7, %v898_v37  ;;  %v955_v42 = vsel %vm678_vm9, %v5679_v12, %v5687_v2 }
 0x202   : > { %1023 = vmatpush1.msra.mxu0 %v973_v44 }
 0x203   : > { %v892_v17 = vpop.permute.xlu1 %891  ;;  %1024 = vmatprep.subr.mxu0 %v972_v51 }
 0x204   : > { %1025 = vmatpush1.msra.mxu0 %v971_v27  ;;  %v962_v26 = vsel %vm678_vm9, %v892_v17, %v894_v31  ;;  %v961_v6 = vsel %vm678_vm9, %v890_v13, %v892_v17 }
 0x205   : > { %v870_v0 = vpop.permute.xlu0 %869 }
 0x207   : > { %v878_v53 = vpop.permute.xlu1 %877 }
 0x209   : > { %v918_v56 = vpop.permute.xlu0 %917 }
 0x20b   : > { %v866_v40 = vpop.permute.xlu1 %865 }
 0x20d   : > { %v906_v55 = vpop.permute.xlu0 %905 }
 0x20f   : > { %v856_v34 = vpop.permute.xlu1 %855 }
 0x210   : > { %v950_v12 = vsel %vm678_vm9, %v856_v34, %v5693_v33  ;;  %v949_v2 = vsel %vm678_vm9, %v5691_v30, %v856_v34 }
 0x211   : > { %v850_v62 = vpop.permute.xlu0 %849 }
 0x213   : > { %v916_v58 = vpop.permute.xlu1 %915 }
 0x214   : > { %v970_v60 = vsel %vm678_vm9, %v916_v58, %v918_v56  ;;  %v969_v61 = vsel %vm678_vm9, %v914_v32, %v916_v58 }
 0x215   : > { %1026 = vmatprep.subr.mxu0 %v970_v60  ;;  %v848_v38 = vpop.permute.xlu0 %847 }
 0x216   : > { %1027 = vmatpush1.msra.mxu0 %v969_v61 }
 0x217   : > { %v904_v10 = vpop.permute.xlu1 %903  ;;  %1028 = vmatprep.subr.mxu0 %v968_v5 }
 0x218   : > { %1029 = vmatpush1.msra.mxu0 %v967_v63  ;;  %v966_v9 = vsel %vm678_vm9, %v904_v10, %v906_v55  ;;  %v965_v11 = vsel %vm678_vm9, %v902_v35, %v904_v10  ;;  %v596_v10 = vld [vmem:[%s8898_s2] sm:$0xff] }
 0x219   : > { %1030 = vmatprep.subr.mxu0 %v966_v9  ;;  %v846_v44 = vpop.permute.xlu0 %845  ;;  %v599_v9 = vld [vmem:[%s8898_s2 + $0x18] sm:$0xff] }
 0x21a   : > { %1031 = vmatpush1.msra.mxu0 %v965_v11  ;;  %v598_v11 = vld [vmem:[%s8898_s2 + $0x10] sm:$0xff] }
 0x21b   : > { %v852_v32 = vpop.permute.xlu1 %851  ;;  %1032 = vmatprep.subr.mxu0 %v964_v36  ;;  %v496_v36 = vpop.f32.mrf.mxu0 }
 0x21c   : > { %1033 = vmatpush1.msra.mxu0 %v963_v41 }
 0x21d   : > { %1034 = vmatprep.subr.mxu0 %v962_v26  ;;  %v840_v37 = vpop.permute.xlu0 %839 }
 0x21e   : > { %1035 = vmatpush1.msra.mxu0 %v961_v6 }
 0x21f   : > { %v844_v35 = vpop.permute.xlu1 %843  ;;  %1036 = vmatprep.subr.mxu0 %v960_v24 }
 0x220   : > { %1037 = vmatpush1.msra.mxu0 %v959_v28  ;;  %v946_v58 = vsel %vm678_vm9, %v844_v35, %v846_v44 }
 0x223   : > { %v5715_v7 = vpop.permute.xlu1 %837 }
 0x224   : > { %v945_v14 = vsel %vm678_vm9, %v5715_v7, %v844_v35  ;;  %v943_v30 = vsel %vm678_vm9, %v5715_v7, %v840_v37 }
 0x227   : > { %v880_v31 = vpop.permute.xlu1 %879 }
 0x228   : > { %v958_v51 = vsel %vm678_vm9, %v880_v31, %v882_v48  ;;  %v957_v13 = vsel %vm678_vm9, %v878_v53, %v880_v31  ;;  %v938_v48 = vpop.permute.xlu0 %937  ;;  %v952_v53 = vsel %vm678_vm9, %v5689_v29, %v5685_v25 }
 0x229   : > { %1038 = vmatprep.subr.mxu0 %v958_v51 }
 0x22a   : > { %1039 = vmatpush1.msra.mxu0 %v957_v13 }
 0x22b   : > { %v868_v17 = vpop.permute.xlu1 %867  ;;  %1040 = vmatprep.subr.mxu0 %v956_v8 }
 0x22c   : > { %1041 = vmatpush1.msra.mxu0 %v955_v42  ;;  %v954_v3 = vsel %vm678_vm9, %v868_v17, %v870_v0  ;;  %v953_v27 = vsel %vm678_vm9, %v866_v40, %v868_v17  ;;  %v948_v0 = vsel %vm678_vm9, %v850_v62, %v852_v32  ;;  %v947_v40 = vsel %vm678_vm9, %v848_v38, %v850_v62  ;;  %v940_v25 = vpop.permute.xlu0 %939  ;;  %v498_v38 = vpop.f32.mrf.mxu0 }
 0x22d   : > { %1042 = vmatprep.subr.mxu0 %v954_v3  ;;  %v977_v61 = vsel %vm678_vm9, %v938_v48, %v940_v25 }
 0x22e   : > { %1043 = vmatpush1.msra.mxu0 %v953_v27 }
 0x22f   : > { %v842_v56 = vpop.permute.xlu1 %841  ;;  %1044 = vmatprep.subr.mxu0 %v952_v53 }
 0x230   : > { %1045 = vmatpush1.msra.mxu0 %v951_v22  ;;  %v944_v29 = vsel %vm678_vm9, %v840_v37, %v842_v56  ;;  %v936_v60 = vpop.permute.xlu0 %935 }
 0x231   : > { %1046 = vmatprep.subr.mxu0 %v950_v12 }
 0x232   : > { %1047 = vmatpush1.msra.mxu0 %v949_v2 }
 0x233   : > { %v934_v55 = vpop.permute.xlu1 %933  ;;  %1048 = vmatprep.subr.mxu0 %v948_v0 }
 0x234   : > { %1049 = vmatpush1.msra.mxu0 %v947_v40  ;;  %v976_v62 = vsel %vm678_vm9, %v934_v55, %v936_v60 }
 0x235   : > { %1050 = vmatprep.subr.mxu0 %v946_v58 }
 0x236   : > { %1051 = vmatpush1.msra.mxu0 %v945_v14 }
 0x237   : > { %v942_v33 = vpop.permute.xlu1 %941  ;;  %1052 = vmatprep.subr.mxu0 %v944_v29 }
 0x238   : > { %1053 = vmatpush1.msra.mxu0 %v943_v30  ;;  %v978_v34 = vsel %vm678_vm9, %v940_v25, %v942_v33 }
 0x239   : > { %1082 = vmatprep.subr.mxu0 %v978_v34 }
 0x23a   : > { %1083 = vmatpush2.msra.mxu0 %v977_v61 }
 0x23b   : > { %v932_v5 = vpop.permute.xlu1 %931  ;;  %1084 = vmatprep.subr.mxu0 %v976_v62 }
 0x23c   : > { %v975_v63 = vsel %vm678_vm9, %v932_v5, %v934_v55 }
 0x23d   : > { %1085 = vmatpush2.msra.mxu0 %v975_v63 }
 0x23e   : > { %1087 = vmatmul.mubr.f32.vlgmr.msra.gmra.mxu0 %v596_v10 }
 0x23f   : > { %5152 = vmatprep.mubr.msk.f32.mxu0 %vm1015_vm1, %v599_v9 }
 0x242   : > { %1093 = vmatmul.mubr.f32.gmra.mxu0 %v598_v11 }
 0x26a   : > { %v502_v32 = vpop.f32.mrf.mxu0 }
 0x26c   : > { %v504_v41 = vpop.f32.mrf.mxu0 }
 0x2fe   : > { %v1088_v26 = vpop.f32.mrf.mxu0 }
 0x2ff   : > { %v1089_v6 = vadd.f32 %v1088_v26, %v496_v36 }
 0x300   : > { %v1090_v24 = vpop.f32.mrf.mxu0 }
 0x301   : > { %v5759_v35 = vmax.f32 %v1089_v6, 0.0  ;;  %v1091_v28 = vadd.f32 %v1090_v24, %v498_v38 }
 0x302   : > { %v1094_v42 = vpop.f32.mrf.mxu0 }
 0x303   : > { %v5761_v44 = vmax.f32 %v1091_v28, 0.0  ;;  %1222 = vrot.lane.b32.xlu0 %v5759_v35, %s5278_s8  ;;  %v1124_v37 = vmul.f32 %v5400_v43, %v5759_v35  ;;  %v1120_v51 = vmul.f32 %v5413_v47, %v5759_v35  ;;  %v1116_v8 = vmul.f32 %v5759_v35, %v5423_v49 }
 0x304   : > { %v1112_v3 = vmul.f32 %v5759_v35, %v5426_v50  ;;  %v1096_v48 = vpop.f32.mrf.mxu0  ;;  %v1095_v53 = vadd.f32 %v1094_v42, %v502_v32  ;;  %v1128_v56 = vmul.f32 %v5435_v54, %v5759_v35 }
 0x305   : > { %1224 = vrot.lane.b32.xlu1 %v5761_v44, %s5278_s8  ;;  %v1125_v31 = vmul.f32 %v5761_v44, %v5446_v57  ;;  %v1121_v13 = vmul.f32 %v5761_v44, %v5452_v59  ;;  %v1117_v17 = vmul.f32 %v5409_v45, %v5761_v44  ;;  %v1113_v27 = vmul.f32 %v5411_v46, %v5761_v44 }
 0x306   : > { %v1097_v22 = vadd.f32 %v1096_v48, %v504_v41  ;;  %v1129_v12 = vmul.f32 %v5761_v44, %v5476_v4  ;;  %v5804_v2 = vmax.f32 %v1095_v53, 0.0 }
 0x307   : > { %1180 = vrot.lane.b32.xlu0 %v5759_v35, %s5283_s29 }
 0x308   : > { %v5807_v0 = vmax.f32 %v1097_v22, 0.0  ;;  %v1126_v40 = vmul.f32 %v5400_v43, %v5804_v2  ;;  %v1122_v55 = vmul.f32 %v5413_v47, %v5804_v2  ;;  %v1118_v14 = vmul.f32 %v5804_v2, %v5423_v49 }
 0x309   : > { %1182 = vrot.lane.b32.xlu1 %v5761_v44, %s5283_s29  ;;  %v1114_v33 = vmul.f32 %v5804_v2, %v5426_v50  ;;  %v1130_v34 = vmul.f32 %v5435_v54, %v5804_v2 }
 0x30a   : > { %8914 = vst [vmem:[#allocation3_spill] sm:$0xff] %v5807_v0  ;;  %v1127_v25 = vmul.f32 %v5807_v0, %v5446_v57  ;;  %v1123_v58 = vmul.f32 %v5807_v0, %v5452_v59  ;;  %v1119_v29 = vmul.f32 %v5409_v45, %v5807_v0  ;;  %v1115_v30 = vmul.f32 %v5411_v46, %v5807_v0 }
 0x30b   : > { %1136 = vrot.lane.b32.xlu0 %v5759_v35, %s5279_s23  ;;  %v1131_v60 = vmul.f32 %v5807_v0, %v5476_v4 }
 0x30d   : > { %1138 = vrot.lane.b32.xlu1 %v5761_v44, %s5279_s23 }
 0x30f   : > { %1210 = vrot.lane.b32.xlu0 %v1124_v37, %s5287_s13 }
 0x311   : > { %1212 = vrot.lane.b32.xlu1 %v1125_v31, %s5287_s13 }
 0x313   : > { %1194 = vrot.lane.b32.xlu0 %v1120_v51, %s5288_s14 }
 0x315   : > { %1196 = vrot.lane.b32.xlu1 %v1121_v13, %s5288_s14 }
 0x317   : > { %1168 = vrot.lane.b32.xlu0 %v1116_v8, %s5285_s11 }
 0x319   : > { %1170 = vrot.lane.b32.xlu1 %v1117_v17, %s5285_s11 }
 0x31b   : > { %1152 = vrot.lane.b32.xlu0 %v1112_v3, %s5286_s12 }
 0x31d   : > { %1154 = vrot.lane.b32.xlu1 %v1113_v27, %s5286_s12 }
 0x31f   : > { %1238 = vrot.lane.b32.xlu0 %v1128_v56, %s5289_s17 }
 0x321   : > { %1240 = vrot.lane.b32.xlu1 %v1129_v12, %s5289_s17 }
 0x323   : > { %1226 = vrot.lane.b32.xlu0 %v5804_v2, %s5278_s8 }
 0x325   : > { %1228 = vrot.lane.b32.xlu1 %v5807_v0, %s5278_s8 }
 0x327   : > { %1184 = vrot.lane.b32.xlu0 %v5804_v2, %s5283_s29 }
 0x329   : > { %1186 = vrot.lane.b32.xlu1 %v5807_v0, %s5283_s29 }
 0x32b   : > { %1140 = vrot.lane.b32.xlu0 %v5804_v2, %s5279_s23 }
 0x32d   : > { %1142 = vrot.lane.b32.xlu1 %v5807_v0, %s5279_s23 }
 0x32f   : > { %1214 = vrot.lane.b32.xlu0 %v1126_v40, %s5287_s13 }
 0x331   : > { %1216 = vrot.lane.b32.xlu1 %v1127_v25, %s5287_s13 }
 0x333   : > { %1198 = vrot.lane.b32.xlu0 %v1122_v55, %s5288_s14 }
 0x335   : > { %1200 = vrot.lane.b32.xlu1 %v1123_v58, %s5288_s14 }
 0x337   : > { %1172 = vrot.lane.b32.xlu0 %v1118_v14, %s5285_s11 }
 0x339   : > { %1174 = vrot.lane.b32.xlu1 %v1119_v29, %s5285_s11 }
 0x33b   : > { %1156 = vrot.lane.b32.xlu0 %v1114_v33, %s5286_s12 }
 0x33d   : > { %1158 = vrot.lane.b32.xlu1 %v1115_v30, %s5286_s12 }
 0x33f   : > { %1242 = vrot.lane.b32.xlu0 %v1130_v34, %s5289_s17 }
 0x341   : > { %1244 = vrot.lane.b32.xlu1 %v1131_v60, %s5289_s17 }
 0x375   : > { %v1223_v61 = vpop.permute.xlu0 %1222 }
 0x376   : > { %1334 = vrot.lane.b32.xlu1 %v1223_v61, %s5284_s30 }
 0x377   : > { %v1225_v62 = vpop.permute.xlu1 %1224 }
 0x378   : > { %v1231_v11 = vsel %vm807_vm10, %v1225_v62, %v5387_v23  ;;  %v1230_v6 = vsel %vm807_vm10, %v1223_v61, %v1225_v62 }
 0x379   : > { %v1181_v5 = vpop.permute.xlu0 %1180 }
 0x37a   : > { %1298 = vrot.lane.b32.xlu1 %v1181_v5, %s5284_s30 }
 0x37b   : > { %v1183_v10 = vpop.permute.xlu1 %1182 }
 0x37c   : > { %1302 = vrot.lane.b32.xlu0 %v1183_v10, %s5284_s30  ;;  %v1188_v37 = vsel %vm606_vm11, %v1181_v5, %v1183_v10 }
 0x37d   : > { %v5854_v63 = vpop.permute.xlu0 %1136 }
 0x37f   : > { %v5856_v9 = vpop.permute.xlu1 %1138 }
 0x380   : > { %1338 = vrot.lane.b32.xlu0 %v1231_v11, %s5284_s30 }
 0x381   : > { %v1211_v36 = vpop.permute.xlu0 %1210 }
 0x382   : > { %1322 = vrot.lane.b32.xlu1 %v1211_v36, %s5284_s30 }
 0x383   : > { %v1213_v38 = vpop.permute.xlu1 %1212 }
 0x384   : > { %v1218_v48 = vsel %vm792_vm14, %v1211_v36, %v1213_v38  ;;  %v1219_v25 = vsel %vm792_vm14, %v1213_v38, %v5519_v18 }
 0x385   : > { %v1195_v32 = vpop.permute.xlu0 %1194 }
 0x386   : > { %1310 = vrot.lane.b32.xlu1 %v1195_v32, %s5284_s30 }
 0x387   : > { %v1197_v41 = vpop.permute.xlu1 %1196 }
 0x388   : > { %v1202_v56 = vsel %vm772_vm15, %v1195_v32, %v1197_v41  ;;  %v1203_v14 = vsel %vm772_vm15, %v1197_v41, %v5525_v21 }
 0x389   : > { %v1169_v26 = vpop.permute.xlu0 %1168 }
 0x38a   : > { %1336 = vrot.lane.b32.xlu1 %v1230_v6, %s5284_s30  ;;  %v1176_v13 = vsel %vm742_vm12, %v5515_v16, %v1169_v26 }
 0x38b   : > { %v1171_v24 = vpop.permute.xlu1 %1170 }
 0x38c   : > { %v1177_v12 = vsel %vm742_vm12, %v1169_v26, %v1171_v24  ;;  %v1145_v26 = vsel %vm636_vm5, %v5854_v63, %v5856_v9 }
 0x38d   : > { %v1153_v28 = vpop.permute.xlu0 %1152 }
 0x38e   : > { %1300 = vrot.lane.b32.xlu1 %v1188_v37, %s5284_s30  ;;  %v1160_v42 = vsel %vm722_vm13, %v5521_v19, %v1153_v28  ;;  %v1111_v37 = vmul.f32 %v5616_v39, %v5807_v0 }
 0x38f   : > { %v1155_v31 = vpop.permute.xlu1 %1154 }
 0x390   : > { %v1161_v40 = vsel %vm722_vm13, %v1153_v28, %v1155_v31 }
 0x391   : > { %v5867_v51 = vpop.permute.xlu0 %1238 }
 0x392   : > { %1286 = vrot.lane.b32.xlu1 %v1176_v13, %s5284_s30  ;;  %v1109_v13 = vmul.f32 %v5616_v39, %v5761_v44 }
 0x393   : > { %v5872_v8 = vpop.permute.xlu1 %1240 }
 0x395   : > { %v1227_v17 = vpop.permute.xlu0 %1226 }
 0x396   : > { %1274 = vrot.lane.b32.xlu1 %v1160_v42, %s5284_s30  ;;  %1340 = vrot.lane.b32.xlu0 %v1227_v17, %s5284_s30 }
 0x397   : > { %v1229_v3 = vpop.permute.xlu1 %1228 }
 0x398   : > { %v1233_v34 = vsel %vm807_vm10, %v1229_v3, %v5387_v23  ;;  %v1232_v5 = vsel %vm807_vm10, %v1227_v17, %v1229_v3  ;;  %v1246_v17 = vsel %vm827_vm0, %v5867_v51, %v5872_v8  ;;  %v1110_v3 = vmul.f32 %v5804_v2, %v5629_v52 }
 0x399   : > { %v1185_v27 = vpop.permute.xlu0 %1184 }
 0x39a   : > { %1324 = vrot.lane.b32.xlu1 %v1218_v48, %s5284_s30  ;;  %1304 = vrot.lane.b32.xlu0 %v1185_v27, %s5284_s30 }
 0x39b   : > { %v1187_v53 = vpop.permute.xlu1 %1186 }
 0x39c   : > { %v1189_v36 = vsel %vm606_vm11, %v1185_v27, %v1187_v53 }
 0x39d   : > { %v1141_v58 = vpop.permute.xlu0 %1140 }
 0x39e   : > { %1312 = vrot.lane.b32.xlu1 %v1202_v56, %s5284_s30  ;;  %1290 = vrot.lane.b32.xlu0 %v1171_v24, %s5284_s30  ;;  %v1146_v33 = vsel %vm636_vm5, %v5513_v15, %v1141_v58  ;;  %v1144_v24 = vsel %vm636_vm5, %v5513_v15, %v5854_v63  ;;  %v5154_v56 = vld [vmem:[%s8898_s2 + $0x28] sm:$0xff] }
 0x39f   : > { %v1143_v22 = vpop.permute.xlu1 %1142  ;;  %5157 = vmatprep.mubr.msk.f32.mxu1 %vm1015_vm1, %v5154_v56 }
 0x3a0   : > { %v1147_v28 = vsel %vm636_vm5, %v1141_v58, %v1143_v22 }
 0x3a1   : > { %v1215_v30 = vpop.permute.xlu0 %1214 }
 0x3a2   : > { %1288 = vrot.lane.b32.xlu1 %v1177_v12, %s5284_s30  ;;  %1278 = vrot.lane.b32.xlu0 %v1155_v31, %s5284_s30 }
 0x3a3   : > { %v1217_v55 = vpop.permute.xlu1 %1216 }
 0x3a4   : > { %v1221_v11 = vsel %vm792_vm14, %v1217_v55, %v5519_v18  ;;  %v1220_v31 = vsel %vm792_vm14, %v1215_v30, %v1217_v55 }
 0x3a5   : > { %v1199_v61 = vpop.permute.xlu0 %1198 }
 0x3a6   : > { %1276 = vrot.lane.b32.xlu1 %v1161_v40, %s5284_s30  ;;  %1326 = vrot.lane.b32.xlu0 %v1219_v25, %s5284_s30  ;;  %v1247_v25 = vsel %vm827_vm0, %v5872_v8, %v5523_v20 }
 0x3a7   : > { %v1201_v29 = vpop.permute.xlu1 %1200 }
 0x3a8   : > { %v1205_v38 = vsel %vm772_vm15, %v1201_v29, %v5525_v21  ;;  %v1204_v63 = vsel %vm772_vm15, %v1199_v61, %v1201_v29 }
 0x3a9   : > { %v1173_v10 = vpop.permute.xlu0 %1172 }
 0x3aa   : > { %1308 = vrot.lane.b32.xlu1 %v1187_v53, %s5284_s30  ;;  %1314 = vrot.lane.b32.xlu0 %v1203_v14, %s5284_s30  ;;  %v1178_v32 = vsel %vm742_vm12, %v5515_v16, %v1173_v10 }
 0x3ab   : > { %v1175_v60 = vpop.permute.xlu1 %1174 }
 0x3ac   : > { %v1179_v48 = vsel %vm742_vm12, %v1173_v10, %v1175_v60 }
 0x3ad   : > { %v1157_v41 = vpop.permute.xlu0 %1156 }
 0x3ae   : > { %1272 = vrot.lane.b32.xlu1 %v1143_v22, %s5284_s30  ;;  %1268 = vrot.lane.b32.xlu0 %v1146_v33, %s5284_s30  ;;  %v1162_v6 = vsel %vm722_vm13, %v5521_v19, %v1157_v41 }
 0x3af   : > { %v1159_v62 = vpop.permute.xlu1 %1158 }
 0x3b0   : > { %v1163_v53 = vsel %vm722_vm13, %v1157_v41, %v1159_v62 }
 0x3b1   : > { %v1243_v22 = vpop.permute.xlu0 %1242 }
 0x3b2   : > { %1344 = vrot.lane.b32.xlu1 %v1233_v34, %s5284_s30  ;;  %1328 = vrot.lane.b32.xlu0 %v1215_v30, %s5284_s30 }
 0x3b3   : > { %v1245_v42 = vpop.permute.xlu1 %1244 }
 0x3b4   : > { %v1249_v27 = vsel %vm827_vm0, %v1245_v42, %v5523_v20 }
 0x3b6   : > { %1296 = vrot.lane.b32.xlu1 %v1175_v60, %s5284_s30  ;;  %1316 = vrot.lane.b32.xlu0 %v1199_v61, %s5284_s30 }
 0x3ba   : > { %1284 = vrot.lane.b32.xlu1 %v1159_v62, %s5284_s30  ;;  %1342 = vrot.lane.b32.xlu0 %v1232_v5, %s5284_s30 }
 0x3be   : > { %1332 = vrot.lane.b32.xlu1 %v1221_v11, %s5284_s30  ;;  %1306 = vrot.lane.b32.xlu0 %v1189_v36, %s5284_s30 }
 0x3c2   : > { %1320 = vrot.lane.b32.xlu1 %v1205_v38, %s5284_s30  ;;  %1292 = vrot.lane.b32.xlu0 %v1178_v32, %s5284_s30 }
 0x3c6   : > { %1264 = vrot.lane.b32.xlu1 %v1145_v26, %s5284_s30  ;;  %1280 = vrot.lane.b32.xlu0 %v1162_v6, %s5284_s30 }
 0x3ca   : > { %1262 = vrot.lane.b32.xlu1 %v1144_v24, %s5284_s30  ;;  %1270 = vrot.lane.b32.xlu0 %v1147_v28, %s5284_s30 }
 0x3ce   : > { %1260 = vrot.lane.b32.xlu1 %v1111_v37, %s5284_s30  ;;  %1330 = vrot.lane.b32.xlu0 %v1220_v31, %s5284_s30 }
 0x3d2   : > { %1256 = vrot.lane.b32.xlu1 %v1109_v13, %s5284_s30  ;;  %1318 = vrot.lane.b32.xlu0 %v1204_v63, %s5284_s30 }
 0x3d6   : > { %1348 = vrot.lane.b32.xlu1 %v1246_v17, %s5284_s30  ;;  %1266 = vrot.lane.b32.xlu0 %v5856_v9, %s5284_s30  ;;  %v1108_v9 = vmul.f32 %v5759_v35, %v5629_v52 }
 0x3da   : > { %1356 = vrot.lane.b32.xlu1 %v1249_v27, %s5284_s30  ;;  %1258 = vrot.lane.b32.xlu0 %v1110_v3, %s5284_s30 }
 0x3de   : > { %1346 = vrot.lane.b32.xlu1 %v5867_v51, %s5284_s30  ;;  %1294 = vrot.lane.b32.xlu0 %v1179_v48, %s5284_s30  ;;  %v1248_v51 = vsel %vm827_vm0, %v1243_v22, %v1245_v42 }
 0x3e2   : > { %1282 = vrot.lane.b32.xlu0 %v1163_v53, %s5284_s30 }
 0x3e6   : > { %1254 = vrot.lane.b32.xlu0 %v1108_v9, %s5284_s30 }
 0x3e8   : > { %v1335_v12 = vpop.permute.xlu1 %1334 }
 0x3ea   : > { %1352 = vrot.lane.b32.xlu0 %v1243_v22, %s5284_s30 }
 0x3ec   : > { %v5971_v40 = vpop.permute.xlu1 %1298 }
 0x3ee   : > { %1354 = vrot.lane.b32.xlu0 %v1248_v51, %s5284_s30  ;;  %v5977_v29 = vpop.permute.xlu0 %1302 }
 0x3f2   : > { %1350 = vrot.lane.b32.xlu0 %v1247_v25, %s5284_s30  ;;  %v1339_v30 = vpop.permute.xlu0 %1338 }
 0x3f4   : > { %v1323_v55 = vpop.permute.xlu1 %1322 }
 0x3f8   : > { %v1311_v58 = vpop.permute.xlu1 %1310 }
 0x3fc   : > { %v1337_v14 = vpop.permute.xlu1 %1336 }
 0x3fd   : > { %v1387_v27 = vsel %vm678_vm9, %v1337_v14, %v1339_v30  ;;  %v1386_v53 = vsel %vm678_vm9, %v1335_v12, %v1337_v14 }
 0x400   : > { %v5979_v33 = vpop.permute.xlu1 %1300 }
 0x404   : > { %v5981_v34 = vpop.permute.xlu1 %1286 }
 0x408   : > { %v5983_v60 = vpop.permute.xlu1 %1274  ;;  %v1341_v61 = vpop.permute.xlu0 %1340 }
 0x40c   : > { %v1325_v62 = vpop.permute.xlu1 %1324  ;;  %v1305_v5 = vpop.permute.xlu0 %1304 }
 0x40d   : > { %v1382_v12 = vsel %vm678_vm9, %v1323_v55, %v1325_v62 }
 0x410   : > { %v1313_v10 = vpop.permute.xlu1 %1312  ;;  %v5985_v11 = vpop.permute.xlu0 %1290 }
 0x414   : > { %v5987_v8 = vpop.permute.xlu1 %1288  ;;  %v5989_v36 = vpop.permute.xlu0 %1278 }
 0x418   : > { %v5991_v38 = vpop.permute.xlu1 %1276  ;;  %v1327_v32 = vpop.permute.xlu0 %1326 }
 0x419   : > { %v1383_v30 = vsel %vm678_vm9, %v1325_v62, %v1327_v32 }
 0x41c   : > { %v1309_v41 = vpop.permute.xlu1 %1308  ;;  %v1315_v26 = vpop.permute.xlu0 %1314 }
 0x420   : > { %v5993_v6 = vpop.permute.xlu1 %1272  ;;  %v5995_v24 = vpop.permute.xlu0 %1268 }
 0x424   : > { %v1345_v28 = vpop.permute.xlu1 %1344  ;;  %v1329_v37 = vpop.permute.xlu0 %1328 }
 0x428   : > { %v1297_v31 = vpop.permute.xlu1 %1296  ;;  %v1317_v13 = vpop.permute.xlu0 %1316 }
 0x42c   : > { %v1343_v63 = vpop.permute.xlu0 %1342  ;;  %v1285_v17 = vpop.permute.xlu1 %1284 }
 0x42d   : > { %v1389_v42 = vsel %vm678_vm9, %v1343_v63, %v1345_v28  ;;  %v1388_v3 = vsel %vm678_vm9, %v1341_v61, %v1343_v63 }
 0x42e   : > { %1436 = vmatprep.subr.mxu1 %v1389_v42 }
 0x42f   : > { %1437 = vmatpush1.msra.mxu1 %v1388_v3 }
 0x430   : > { %1438 = vmatprep.subr.mxu1 %v1387_v27  ;;  %v1307_v48 = vpop.permute.xlu0 %1306  ;;  %v1333_v9 = vpop.permute.xlu1 %1332  ;;  %v1379_v27 = vsel %vm678_vm9, %v1313_v10, %v1315_v26  ;;  %v1374_v26 = vsel %vm678_vm9, %v5971_v40, %v5979_v33 }
 0x431   : > { %1439 = vmatpush1.msra.mxu1 %v1386_v53  ;;  %v1377_v32 = vsel %vm678_vm9, %v1307_v48, %v1309_v41  ;;  %v1376_v55 = vsel %vm678_vm9, %v1305_v5, %v1307_v48  ;;  %v1371_v5 = vsel %vm678_vm9, %v5987_v8, %v5985_v11  ;;  %v1370_v48 = vsel %vm678_vm9, %v5981_v34, %v5987_v8 }
 0x434   : > { %v1293_v56 = vpop.permute.xlu0 %1292  ;;  %v1321_v51 = vpop.permute.xlu1 %1320 }
 0x438   : > { %v1281_v22 = vpop.permute.xlu0 %1280  ;;  %v1265_v1 = vpop.permute.xlu1 %1264 }
 0x43c   : > { %v1271_v25 = vpop.permute.xlu0 %1270  ;;  %v1263_v14 = vpop.permute.xlu1 %1262 }
 0x43d   : > { %v1365_v34 = vsel %vm678_vm9, %v1271_v25, %v5993_v6  ;;  %v1364_v8 = vsel %vm678_vm9, %v5995_v24, %v1271_v25 }
 0x440   : > { %v1331_v0 = vpop.permute.xlu0 %1330  ;;  %v1261_v62 = vpop.permute.xlu1 %1260 }
 0x441   : > { %v1385_v28 = vsel %vm678_vm9, %v1331_v0, %v1333_v9  ;;  %v1384_v61 = vsel %vm678_vm9, %v1329_v37, %v1331_v0  ;;  %v1378_v37 = vsel %vm678_vm9, %v1311_v58, %v1313_v10 }
 0x442   : > { %1440 = vmatprep.subr.mxu1 %v1385_v28 }
 0x443   : > { %1441 = vmatpush1.msra.mxu1 %v1384_v61 }
 0x444   : > { %1442 = vmatprep.subr.mxu1 %v1383_v30  ;;  %v1319_v63 = vpop.permute.xlu0 %1318  ;;  %v1257_v10 = vpop.permute.xlu1 %1256 }
 0x445   : > { %1443 = vmatpush1.msra.mxu1 %v1382_v12  ;;  %v1381_v42 = vsel %vm678_vm9, %v1319_v63, %v1321_v51  ;;  %v1380_v3 = vsel %vm678_vm9, %v1317_v13, %v1319_v63  ;;  %v1375_v13 = vsel %vm678_vm9, %v5979_v33, %v5977_v29  ;;  %v1366_v51 = vsel %vm678_vm9, %v5983_v60, %v5991_v38 }
 0x446   : > { %1444 = vmatprep.subr.mxu1 %v1381_v42 }
 0x447   : > { %1445 = vmatpush1.msra.mxu1 %v1380_v3  ;;  %v5156_v3 = vld [vmem:[%s8898_s2 + $0x38] sm:$0xff] }
 0x448   : > { %1446 = vmatprep.subr.mxu1 %v1379_v27  ;;  %v1267_v0 = vpop.permute.xlu0 %1266  ;;  %v5155_v27 = vld [vmem:[%s8898_s2 + $0x30] sm:$0xff] }
 0x449   : > { %1447 = vmatpush1.msra.mxu1 %v1378_v37 }
 0x44a   : > { %1448 = vmatprep.subr.mxu1 %v1377_v32 }
 0x44b   : > { %1449 = vmatpush1.msra.mxu1 %v1376_v55 }
 0x44c   : > { %1450 = vmatprep.subr.mxu1 %v1375_v13  ;;  %v1259_v53 = vpop.permute.xlu0 %1258 }
 0x44d   : > { %1451 = vmatpush1.msra.mxu1 %v1374_v26  ;;  %v1361_v61 = vsel %vm678_vm9, %v1259_v53, %v1261_v62  ;;  %v1360_v60 = vsel %vm678_vm9, %v5715_v7, %v1259_v53 }
 0x450   : > { %v1295_v58 = vpop.permute.xlu0 %1294 }
 0x451   : > { %v1373_v41 = vsel %vm678_vm9, %v1295_v58, %v1297_v31  ;;  %v1372_v9 = vsel %vm678_vm9, %v1293_v56, %v1295_v58  ;;  %v1349_v31 = vpop.permute.xlu1 %1348  ;;  %v1367_v56 = vsel %vm678_vm9, %v5991_v38, %v5989_v36 }
 0x452   : > { %1452 = vmatprep.subr.mxu1 %v1373_v41 }
 0x453   : > { %1453 = vmatpush1.msra.mxu1 %v1372_v9 }
 0x454   : > { %1454 = vmatprep.subr.mxu1 %v1371_v5  ;;  %v1283_v29 = vpop.permute.xlu0 %1282 }
 0x455   : > { %1455 = vmatpush1.msra.mxu1 %v1370_v48  ;;  %v1369_v40 = vsel %vm678_vm9, %v1283_v29, %v1285_v17  ;;  %v1368_v33 = vsel %vm678_vm9, %v1281_v22, %v1283_v29  ;;  %v1363_v17 = vsel %vm678_vm9, %v1265_v1, %v1267_v0  ;;  %v1362_v22 = vsel %vm678_vm9, %v1263_v14, %v1265_v1  ;;  %v1357_v28 = vpop.permute.xlu1 %1356  ;;  %v5153_v14 = vld [vmem:[%s8898_s2 + $0x20] sm:$0xff] }
 0x456   : > { %1456 = vmatprep.subr.mxu1 %v1369_v40 }
 0x457   : > { %1457 = vmatpush1.msra.mxu1 %v1368_v33 }
 0x458   : > { %1458 = vmatprep.subr.mxu1 %v1367_v56  ;;  %v1255_v11 = vpop.permute.xlu0 %1254 }
 0x459   : > { %1459 = vmatpush1.msra.mxu1 %v1366_v51  ;;  %v1359_v38 = vsel %vm678_vm9, %v1255_v11, %v1257_v10  ;;  %v1358_v24 = vsel %vm678_vm9, %v5715_v7, %v1255_v11  ;;  %v1347_v30 = vpop.permute.xlu1 %1346 }
 0x45a   : > { %1460 = vmatprep.subr.mxu1 %v1365_v34  ;;  %v1390_v42 = vsel %vm678_vm9, %v1347_v30, %v1349_v31 }
 0x45b   : > { %1461 = vmatpush1.msra.mxu1 %v1364_v8 }
 0x45c   : > { %1462 = vmatprep.subr.mxu1 %v1363_v17  ;;  %v1353_v36 = vpop.permute.xlu0 %1352 }
 0x45d   : > { %1463 = vmatpush1.msra.mxu1 %v1362_v22 }
 0x45e   : > { %1464 = vmatprep.subr.mxu1 %v1361_v61 }
 0x45f   : > { %1465 = vmatpush1.msra.mxu1 %v1360_v60 }
 0x460   : > { %1466 = vmatprep.subr.mxu1 %v1359_v38  ;;  %v1355_v6 = vpop.permute.xlu0 %1354 }
 0x461   : > { %1467 = vmatpush1.msra.mxu1 %v1358_v24  ;;  %v1393_v1 = vsel %vm678_vm9, %v1355_v6, %v1357_v28  ;;  %v1392_v25 = vsel %vm678_vm9, %v1353_v36, %v1355_v6 }
 0x462   : > { %1496 = vmatprep.subr.mxu1 %v1393_v1 }
 0x463   : > { %1497 = vmatpush2.msra.mxu1 %v1392_v25 }
 0x464   : > { %v1351_v63 = vpop.permute.xlu0 %1350 }
 0x465   : > { %v1391_v12 = vsel %vm678_vm9, %v1349_v31, %v1351_v63 }
 0x466   : > { %1498 = vmatprep.subr.mxu1 %v1391_v12 }
 0x467   : > { %1499 = vmatpush2.msra.mxu1 %v1390_v42 }
 0x468   : > { %1501 = vmatmul.mubr.f32.vlgmr.msra.gmra.mxu1 %v5153_v14 }
 0x469   : > { %5158 = vmatprep.mubr.msk.f32.mxu1 %vm1015_vm1, %v5156_v3 }
 0x46c   : > { %1507 = vmatmul.mubr.f32.gmra.mxu1 %v5155_v27 }
 0x528   : > { %v1502_v0 = vpop.f32.mrf.mxu1 }
 0x529   : > { %v6059_v37 = vmax.f32 %v1502_v0, 0.0 }
 0x52a   : > { %v1504_v32 = vpop.f32.mrf.mxu1 }
 0x52b   : > { %v6061_v55 = vmax.f32 %v1504_v32, 0.0  ;;  %1636 = vrot.lane.b32.xlu0 %v6059_v37, %s5278_s8  ;;  %v1538_v62 = vmul.f32 %v5400_v43, %v6059_v37  ;;  %v1534_v53 = vmul.f32 %v5413_v47, %v6059_v37  ;;  %v1530_v58 = vmul.f32 %v6059_v37, %v5423_v49 }
 0x52c   : > { %v1526_v41 = vmul.f32 %v6059_v37, %v5426_v50  ;;  %v1508_v5 = vpop.f32.mrf.mxu1  ;;  %v1542_v29 = vmul.f32 %v5435_v54, %v6059_v37 }
 0x52d   : > { %1638 = vrot.lane.b32.xlu1 %v6061_v55, %s5278_s8  ;;  %v1539_v13 = vmul.f32 %v6061_v55, %v5446_v57  ;;  %v1535_v26 = vmul.f32 %v6061_v55, %v5452_v59  ;;  %v1531_v10 = vmul.f32 %v5409_v45, %v6061_v55  ;;  %v1527_v9 = vmul.f32 %v5411_v46, %v6061_v55 }
 0x52e   : > { %v1543_v48 = vmul.f32 %v6061_v55, %v5476_v4  ;;  %v1510_v40 = vpop.f32.mrf.mxu1  ;;  %v6104_v33 = vmax.f32 %v1508_v5, 0.0 }
 0x52f   : > { %1594 = vrot.lane.b32.xlu0 %v6059_v37, %s5283_s29  ;;  %v6107_v31 = vmax.f32 %v1510_v40, 0.0 }
 0x530   : > { %v1540_v56 = vmul.f32 %v5400_v43, %v6104_v33  ;;  %v1536_v51 = vmul.f32 %v5413_v47, %v6104_v33  ;;  %v1532_v8 = vmul.f32 %v6104_v33, %v5423_v49  ;;  %v1528_v22 = vmul.f32 %v6104_v33, %v5426_v50 }
 0x531   : > { %1596 = vrot.lane.b32.xlu1 %v6061_v55, %s5283_s29  ;;  %v1541_v11 = vmul.f32 %v6107_v31, %v5446_v57  ;;  %v1537_v34 = vmul.f32 %v6107_v31, %v5452_v59  ;;  %v1533_v17 = vmul.f32 %v5409_v45, %v6107_v31  ;;  %v1529_v36 = vmul.f32 %v5411_v46, %v6107_v31 }
 0x532   : > { %v1544_v28 = vmul.f32 %v5435_v54, %v6104_v33  ;;  %v1545_v61 = vmul.f32 %v6107_v31, %v5476_v4 }
 0x533   : > { %1550 = vrot.lane.b32.xlu0 %v6059_v37, %s5279_s23 }
 0x535   : > { %1552 = vrot.lane.b32.xlu1 %v6061_v55, %s5279_s23 }
 0x537   : > { %1624 = vrot.lane.b32.xlu0 %v1538_v62, %s5287_s13 }
 0x539   : > { %1626 = vrot.lane.b32.xlu1 %v1539_v13, %s5287_s13 }
 0x53b   : > { %1608 = vrot.lane.b32.xlu0 %v1534_v53, %s5288_s14 }
 0x53d   : > { %1610 = vrot.lane.b32.xlu1 %v1535_v26, %s5288_s14 }
 0x53f   : > { %1582 = vrot.lane.b32.xlu0 %v1530_v58, %s5285_s11 }
 0x541   : > { %1584 = vrot.lane.b32.xlu1 %v1531_v10, %s5285_s11 }
 0x543   : > { %1566 = vrot.lane.b32.xlu0 %v1526_v41, %s5286_s12 }
 0x545   : > { %1568 = vrot.lane.b32.xlu1 %v1527_v9, %s5286_s12 }
 0x547   : > { %1652 = vrot.lane.b32.xlu0 %v1542_v29, %s5289_s17 }
 0x549   : > { %1654 = vrot.lane.b32.xlu1 %v1543_v48, %s5289_s17 }
 0x54b   : > { %1640 = vrot.lane.b32.xlu0 %v6104_v33, %s5278_s8 }
 0x54d   : > { %1642 = vrot.lane.b32.xlu1 %v6107_v31, %s5278_s8 }
 0x54f   : > { %1598 = vrot.lane.b32.xlu0 %v6104_v33, %s5283_s29 }
 0x551   : > { %1600 = vrot.lane.b32.xlu1 %v6107_v31, %s5283_s29 }
 0x553   : > { %1554 = vrot.lane.b32.xlu0 %v6104_v33, %s5279_s23 }
 0x555   : > { %1556 = vrot.lane.b32.xlu1 %v6107_v31, %s5279_s23 }
 0x557   : > { %1628 = vrot.lane.b32.xlu0 %v1540_v56, %s5287_s13 }
 0x559   : > { %1630 = vrot.lane.b32.xlu1 %v1541_v11, %s5287_s13 }
 0x55b   : > { %1612 = vrot.lane.b32.xlu0 %v1536_v51, %s5288_s14 }
 0x55d   : > { %1614 = vrot.lane.b32.xlu1 %v1537_v34, %s5288_s14 }
 0x55f   : > { %1586 = vrot.lane.b32.xlu0 %v1532_v8, %s5285_s11 }
 0x561   : > { %1588 = vrot.lane.b32.xlu1 %v1533_v17, %s5285_s11 }
 0x563   : > { %1570 = vrot.lane.b32.xlu0 %v1528_v22, %s5286_s12 }
 0x565   : > { %1572 = vrot.lane.b32.xlu1 %v1529_v36, %s5286_s12 }
 0x567   : > { %1656 = vrot.lane.b32.xlu0 %v1544_v28, %s5289_s17 }
 0x569   : > { %1658 = vrot.lane.b32.xlu1 %v1545_v61, %s5289_s17 }
 0x59d   : > { %v1637_v60 = vpop.permute.xlu0 %1636 }
 0x59e   : > { %1748 = vrot.lane.b32.xlu1 %v1637_v60, %s5284_s30 }
 0x59f   : > { %v1639_v38 = vpop.permute.xlu1 %1638 }
 0x5a0   : > { %v1645_v30 = vsel %vm807_vm10, %v1639_v38, %v5387_v23  ;;  %v1644_v27 = vsel %vm807_vm10, %v1637_v60, %v1639_v38 }
 0x5a1   : > { %v1595_v6 = vpop.permute.xlu0 %1594 }
 0x5a2   : > { %1712 = vrot.lane.b32.xlu1 %v1595_v6, %s5284_s30 }
 0x5a3   : > { %v1597_v24 = vpop.permute.xlu1 %1596 }
 0x5a4   : > { %1716 = vrot.lane.b32.xlu0 %v1597_v24, %s5284_s30  ;;  %v1602_v62 = vsel %vm606_vm11, %v1595_v6, %v1597_v24 }
 0x5a5   : > { %v6154_v1 = vpop.permute.xlu0 %1550 }
 0x5a7   : > { %v6156_v25 = vpop.permute.xlu1 %1552 }
 0x5a8   : > { %1752 = vrot.lane.b32.xlu0 %v1645_v30, %s5284_s30 }
 0x5a9   : > { %v1625_v63 = vpop.permute.xlu0 %1624 }
 0x5aa   : > { %1736 = vrot.lane.b32.xlu1 %v1625_v63, %s5284_s30 }
 0x5ab   : > { %v1627_v12 = vpop.permute.xlu1 %1626 }
 0x5ac   : > { %v1632_v29 = vsel %vm792_vm14, %v1625_v63, %v1627_v12  ;;  %v1633_v51 = vsel %vm792_vm14, %v1627_v12, %v5519_v18 }
 0x5ad   : > { %v1609_v14 = vpop.permute.xlu0 %1608 }
 0x5ae   : > { %1724 = vrot.lane.b32.xlu1 %v1609_v14, %s5284_s30 }
 0x5af   : > { %v1611_v42 = vpop.permute.xlu1 %1610 }
 0x5b0   : > { %v1616_v40 = vsel %vm772_vm15, %v1609_v14, %v1611_v42  ;;  %v1617_v22 = vsel %vm772_vm15, %v1611_v42, %v5525_v21 }
 0x5b1   : > { %v1583_v3 = vpop.permute.xlu0 %1582 }
 0x5b2   : > { %1750 = vrot.lane.b32.xlu1 %v1644_v27, %s5284_s30  ;;  %v1590_v26 = vsel %vm742_vm12, %v5515_v16, %v1583_v3 }
 0x5b3   : > { %v1585_v0 = vpop.permute.xlu1 %1584 }
 0x5b4   : > { %v1591_v11 = vsel %vm742_vm12, %v1583_v3, %v1585_v0 }
 0x5b5   : > { %v1567_v32 = vpop.permute.xlu0 %1566 }
 0x5b6   : > { %1714 = vrot.lane.b32.xlu1 %v1602_v62, %s5284_s30  ;;  %v1574_v41 = vsel %vm722_vm13, %v5521_v19, %v1567_v32 }
 0x5b7   : > { %v1569_v13 = vpop.permute.xlu1 %1568 }
 0x5b8   : > { %v1575_v34 = vsel %vm722_vm13, %v1567_v32, %v1569_v13  ;;  %v1559_v32 = vsel %vm636_vm5, %v6154_v1, %v6156_v25 }
 0x5b9   : > { %v6167_v53 = vpop.permute.xlu0 %1652 }
 0x5ba   : > { %1700 = vrot.lane.b32.xlu1 %v1590_v26, %s5284_s30  ;;  %v1525_v26 = vmul.f32 %v5616_v39, %v6107_v31 }
 0x5bb   : > { %v6172_v58 = vpop.permute.xlu1 %1654 }
 0x5bd   : > { %v1641_v10 = vpop.permute.xlu0 %1640 }
 0x5be   : > { %1754 = vrot.lane.b32.xlu0 %v1641_v10, %s5284_s30  ;;  %1688 = vrot.lane.b32.xlu1 %v1574_v41, %s5284_s30  ;;  %v1523_v41 = vmul.f32 %v5616_v39, %v6061_v55 }
 0x5bf   : > { %v1643_v9 = vpop.permute.xlu1 %1642 }
 0x5c0   : > { %v1647_v60 = vsel %vm807_vm10, %v1643_v9, %v5387_v23  ;;  %v1646_v30 = vsel %vm807_vm10, %v1641_v10, %v1643_v9 }
 0x5c1   : > { %v1599_v5 = vpop.permute.xlu0 %1598 }
 0x5c2   : > { %1718 = vrot.lane.b32.xlu0 %v1599_v5, %s5284_s30  ;;  %1738 = vrot.lane.b32.xlu1 %v1632_v29, %s5284_s30 }
 0x5c3   : > { %v1601_v48 = vpop.permute.xlu1 %1600 }
 0x5c4   : > { %v1603_v12 = vsel %vm606_vm11, %v1599_v5, %v1601_v48  ;;  %v1524_v5 = vmul.f32 %v6104_v33, %v5629_v52  ;;  %v1522_v33 = vmul.f32 %v6059_v37, %v5629_v52  ;;  %v1661_v37 = vsel %vm827_vm0, %v6172_v58, %v5523_v20 }
 0x5c5   : > { %v1555_v17 = vpop.permute.xlu0 %1554 }
 0x5c6   : > { %1704 = vrot.lane.b32.xlu0 %v1585_v0, %s5284_s30  ;;  %1726 = vrot.lane.b32.xlu1 %v1616_v40, %s5284_s30  ;;  %v1560_v28 = vsel %vm636_vm5, %v5513_v15, %v1555_v17 }
 0x5c7   : > { %v1557_v56 = vpop.permute.xlu1 %1556 }
 0x5c8   : > { %v1561_v62 = vsel %vm636_vm5, %v1555_v17, %v1557_v56 }
 0x5c9   : > { %v1629_v61 = vpop.permute.xlu0 %1628 }
 0x5ca   : > { %1692 = vrot.lane.b32.xlu0 %v1569_v13, %s5284_s30  ;;  %1702 = vrot.lane.b32.xlu1 %v1591_v11, %s5284_s30  ;;  %v1558_v13 = vsel %vm636_vm5, %v5513_v15, %v6154_v1  ;;  %v1660_v1 = vsel %vm827_vm0, %v6167_v53, %v6172_v58 }
 0x5cb   : > { %v1631_v8 = vpop.permute.xlu1 %1630 }
 0x5cc   : > { %v1635_v14 = vsel %vm792_vm14, %v1631_v8, %v5519_v18  ;;  %v1634_v10 = vsel %vm792_vm14, %v1629_v61, %v1631_v8 }
 0x5cd   : > { %v1613_v6 = vpop.permute.xlu0 %1612 }
 0x5ce   : > { %1740 = vrot.lane.b32.xlu0 %v1633_v51, %s5284_s30  ;;  %1690 = vrot.lane.b32.xlu1 %v1575_v34, %s5284_s30 }
 0x5cf   : > { %v1615_v36 = vpop.permute.xlu1 %1614 }
 0x5d0   : > { %v1619_v3 = vsel %vm772_vm15, %v1615_v36, %v5525_v21  ;;  %v1618_v9 = vsel %vm772_vm15, %v1613_v6, %v1615_v36 }
 0x5d1   : > { %v1587_v63 = vpop.permute.xlu0 %1586 }
 0x5d2   : > { %1728 = vrot.lane.b32.xlu0 %v1617_v22, %s5284_s30  ;;  %1722 = vrot.lane.b32.xlu1 %v1601_v48, %s5284_s30  ;;  %v1592_v42 = vsel %vm742_vm12, %v5515_v16, %v1587_v63  ;;  %v5160_v48 = vld [vmem:[%s8898_s2 + $0x48] sm:$0xff] }
 0x5d3   : > { %v1589_v38 = vpop.permute.xlu1 %1588  ;;  %5163 = vmatprep.mubr.msk.f32.mxu0 %vm1015_vm1, %v5160_v48 }
 0x5d4   : > { %v1593_v29 = vsel %vm742_vm12, %v1587_v63, %v1589_v38 }
 0x5d5   : > { %v1571_v27 = vpop.permute.xlu0 %1570 }
 0x5d6   : > { %1682 = vrot.lane.b32.xlu0 %v1560_v28, %s5284_s30  ;;  %1686 = vrot.lane.b32.xlu1 %v1557_v56, %s5284_s30  ;;  %v1576_v0 = vsel %vm722_vm13, %v5521_v19, %v1571_v27 }
 0x5d7   : > { %v1573_v24 = vpop.permute.xlu1 %1572 }
 0x5d9   : > { %v1657_v40 = vpop.permute.xlu0 %1656 }
 0x5da   : > { %1742 = vrot.lane.b32.xlu0 %v1629_v61, %s5284_s30  ;;  %1758 = vrot.lane.b32.xlu1 %v1647_v60, %s5284_s30 }
 0x5db   : > { %v1659_v31 = vpop.permute.xlu1 %1658 }
 0x5dc   : > { %v1663_v55 = vsel %vm827_vm0, %v1659_v31, %v5523_v20 }
 0x5de   : > { %1730 = vrot.lane.b32.xlu0 %v1613_v6, %s5284_s30  ;;  %1710 = vrot.lane.b32.xlu1 %v1589_v38, %s5284_s30 }
 0x5e2   : > { %1756 = vrot.lane.b32.xlu0 %v1646_v30, %s5284_s30  ;;  %1698 = vrot.lane.b32.xlu1 %v1573_v24, %s5284_s30 }
 0x5e6   : > { %1720 = vrot.lane.b32.xlu0 %v1603_v12, %s5284_s30  ;;  %1746 = vrot.lane.b32.xlu1 %v1635_v14, %s5284_s30 }
 0x5ea   : > { %1706 = vrot.lane.b32.xlu0 %v1592_v42, %s5284_s30  ;;  %1734 = vrot.lane.b32.xlu1 %v1619_v3, %s5284_s30 }
 0x5ee   : > { %1694 = vrot.lane.b32.xlu0 %v1576_v0, %s5284_s30  ;;  %1678 = vrot.lane.b32.xlu1 %v1559_v32, %s5284_s30 }
 0x5f2   : > { %1684 = vrot.lane.b32.xlu0 %v1561_v62, %s5284_s30  ;;  %1676 = vrot.lane.b32.xlu1 %v1558_v13, %s5284_s30 }
 0x5f6   : > { %1744 = vrot.lane.b32.xlu0 %v1634_v10, %s5284_s30  ;;  %1674 = vrot.lane.b32.xlu1 %v1525_v26, %s5284_s30 }
 0x5fa   : > { %1732 = vrot.lane.b32.xlu0 %v1618_v9, %s5284_s30  ;;  %1670 = vrot.lane.b32.xlu1 %v1523_v41, %s5284_s30 }
 0x5fe   : > { %1680 = vrot.lane.b32.xlu0 %v6156_v25, %s5284_s30  ;;  %1762 = vrot.lane.b32.xlu1 %v1660_v1, %s5284_s30  ;;  %v1577_v25 = vsel %vm722_vm13, %v1571_v27, %v1573_v24 }
 0x602   : > { %1672 = vrot.lane.b32.xlu0 %v1524_v5, %s5284_s30  ;;  %1770 = vrot.lane.b32.xlu1 %v1663_v55, %s5284_s30 }
 0x606   : > { %1708 = vrot.lane.b32.xlu0 %v1593_v29, %s5284_s30  ;;  %1760 = vrot.lane.b32.xlu1 %v6167_v53, %s5284_s30  ;;  %v1662_v53 = vsel %vm827_vm0, %v1657_v40, %v1659_v31 }
 0x60a   : > { %1696 = vrot.lane.b32.xlu0 %v1577_v25, %s5284_s30 }
 0x60e   : > { %1668 = vrot.lane.b32.xlu0 %v1522_v33, %s5284_s30 }
 0x610   : > { %v1749_v56 = vpop.permute.xlu1 %1748 }
 0x612   : > { %1766 = vrot.lane.b32.xlu0 %v1657_v40, %s5284_s30 }
 0x614   : > { %v6271_v11 = vpop.permute.xlu1 %1712 }
 0x616   : > { %1768 = vrot.lane.b32.xlu0 %v1662_v53, %s5284_s30  ;;  %v6277_v17 = vpop.permute.xlu0 %1716 }
 0x61a   : > { %1764 = vrot.lane.b32.xlu0 %v1661_v37, %s5284_s30  ;;  %v1753_v36 = vpop.permute.xlu0 %1752 }
 0x61c   : > { %v1737_v51 = vpop.permute.xlu1 %1736 }
 0x620   : > { %v1725_v34 = vpop.permute.xlu1 %1724 }
 0x624   : > { %v1751_v8 = vpop.permute.xlu1 %1750 }
 0x625   : > { %v1801_v31 = vsel %vm678_vm9, %v1751_v8, %v1753_v36  ;;  %v1800_v55 = vsel %vm678_vm9, %v1749_v56, %v1751_v8 }
 0x628   : > { %v6279_v22 = vpop.permute.xlu1 %1714 }
 0x62c   : > { %v6281_v28 = vpop.permute.xlu1 %1700 }
 0x630   : > { %v1755_v61 = vpop.permute.xlu0 %1754  ;;  %v6283_v60 = vpop.permute.xlu1 %1688 }
 0x634   : > { %v1719_v38 = vpop.permute.xlu0 %1718  ;;  %v1739_v6 = vpop.permute.xlu1 %1738 }
 0x635   : > { %v1796_v56 = vsel %vm678_vm9, %v1737_v51, %v1739_v6 }
 0x638   : > { %v6285_v24 = vpop.permute.xlu0 %1704  ;;  %v1727_v58 = vpop.permute.xlu1 %1726 }
 0x63c   : > { %v6287_v30 = vpop.permute.xlu0 %1692  ;;  %v6289_v63 = vpop.permute.xlu1 %1702 }
 0x640   : > { %v1741_v12 = vpop.permute.xlu0 %1740  ;;  %v6291_v14 = vpop.permute.xlu1 %1690 }
 0x641   : > { %v1797_v36 = vsel %vm678_vm9, %v1739_v6, %v1741_v12 }
 0x644   : > { %v1729_v42 = vpop.permute.xlu0 %1728  ;;  %v1723_v3 = vpop.permute.xlu1 %1722 }
 0x648   : > { %v6293_v27 = vpop.permute.xlu0 %1682  ;;  %v6295_v0 = vpop.permute.xlu1 %1686 }
 0x64c   : > { %v1743_v32 = vpop.permute.xlu0 %1742  ;;  %v1759_v62 = vpop.permute.xlu1 %1758 }
 0x650   : > { %v1731_v13 = vpop.permute.xlu0 %1730  ;;  %v1711_v26 = vpop.permute.xlu1 %1710 }
 0x654   : > { %v1757_v10 = vpop.permute.xlu0 %1756  ;;  %v1699_v41 = vpop.permute.xlu1 %1698 }
 0x655   : > { %v1803_v9 = vsel %vm678_vm9, %v1757_v10, %v1759_v62  ;;  %v1802_v1 = vsel %vm678_vm9, %v1755_v61, %v1757_v10 }
 0x656   : > { %1850 = vmatprep.subr.mxu0 %v1803_v9 }
 0x657   : > { %1851 = vmatpush1.msra.mxu0 %v1802_v1 }
 0x658   : > { %v1721_v5 = vpop.permute.xlu0 %1720  ;;  %1852 = vmatprep.subr.mxu0 %v1801_v31  ;;  %v1747_v29 = vpop.permute.xlu1 %1746  ;;  %v1793_v31 = vsel %vm678_vm9, %v1727_v58, %v1729_v42  ;;  %v1788_v42 = vsel %vm678_vm9, %v6271_v11, %v6279_v22 }
 0x659   : > { %1853 = vmatpush1.msra.mxu0 %v1800_v55  ;;  %v1791_v12 = vsel %vm678_vm9, %v1721_v5, %v1723_v3  ;;  %v1790_v51 = vsel %vm678_vm9, %v1719_v38, %v1721_v5  ;;  %v1785_v38 = vsel %vm678_vm9, %v6289_v63, %v6285_v24  ;;  %v1784_v5 = vsel %vm678_vm9, %v6281_v28, %v6289_v63 }
 0x65a   : > { %v1780_v24 = vsel %vm678_vm9, %v6283_v60, %v6291_v14 }
 0x65c   : > { %v1707_v25 = vpop.permute.xlu0 %1706  ;;  %v1735_v48 = vpop.permute.xlu1 %1734 }
 0x660   : > { %v1695_v33 = vpop.permute.xlu0 %1694  ;;  %v1679_v53 = vpop.permute.xlu1 %1678 }
 0x664   : > { %v1685_v40 = vpop.permute.xlu0 %1684  ;;  %v1677_v8 = vpop.permute.xlu1 %1676 }
 0x665   : > { %v1779_v28 = vsel %vm678_vm9, %v1685_v40, %v6295_v0  ;;  %v1778_v63 = vsel %vm678_vm9, %v6293_v27, %v1685_v40 }
 0x668   : > { %v1745_v37 = vpop.permute.xlu0 %1744  ;;  %v1675_v6 = vpop.permute.xlu1 %1674 }
 0x669   : > { %v1799_v62 = vsel %vm678_vm9, %v1745_v37, %v1747_v29  ;;  %v1798_v61 = vsel %vm678_vm9, %v1743_v32, %v1745_v37  ;;  %v1792_v32 = vsel %vm678_vm9, %v1725_v34, %v1727_v58 }
 0x66a   : > { %1854 = vmatprep.subr.mxu0 %v1799_v62 }
 0x66b   : > { %1855 = vmatpush1.msra.mxu0 %v1798_v61 }
 0x66c   : > { %v1733_v10 = vpop.permute.xlu0 %1732  ;;  %1856 = vmatprep.subr.mxu0 %v1797_v36  ;;  %v1671_v58 = vpop.permute.xlu1 %1670 }
 0x66d   : > { %1857 = vmatpush1.msra.mxu0 %v1796_v56  ;;  %v1795_v9 = vsel %vm678_vm9, %v1733_v10, %v1735_v48  ;;  %v1794_v1 = vsel %vm678_vm9, %v1731_v13, %v1733_v10  ;;  %v1789_v13 = vsel %vm678_vm9, %v6279_v22, %v6277_v17 }
 0x66e   : > { %1858 = vmatprep.subr.mxu0 %v1795_v9 }
 0x66f   : > { %1859 = vmatpush1.msra.mxu0 %v1794_v1  ;;  %v5162_v1 = vld [vmem:[%s8898_s2 + $0x58] sm:$0xff] }
 0x670   : > { %v1681_v55 = vpop.permute.xlu0 %1680  ;;  %1860 = vmatprep.subr.mxu0 %v1793_v31  ;;  %v5161_v31 = vld [vmem:[%s8898_s2 + $0x50] sm:$0xff] }
 0x671   : > { %1861 = vmatpush1.msra.mxu0 %v1792_v32 }
 0x672   : > { %1862 = vmatprep.subr.mxu0 %v1791_v12 }
 0x673   : > { %1863 = vmatpush1.msra.mxu0 %v1790_v51 }
 0x674   : > { %v1673_v29 = vpop.permute.xlu0 %1672  ;;  %1864 = vmatprep.subr.mxu0 %v1789_v13 }
 0x675   : > { %1865 = vmatpush1.msra.mxu0 %v1788_v42  ;;  %v1775_v61 = vsel %vm678_vm9, %v1673_v29, %v1675_v6  ;;  %v1774_v60 = vsel %vm678_vm9, %v5715_v7, %v1673_v29 }
 0x678   : > { %v1709_v34 = vpop.permute.xlu0 %1708 }
 0x679   : > { %v1787_v3 = vsel %vm678_vm9, %v1709_v34, %v1711_v26  ;;  %v1786_v48 = vsel %vm678_vm9, %v1707_v25, %v1709_v34  ;;  %v1763_v26 = vpop.permute.xlu1 %1762  ;;  %v1781_v25 = vsel %vm678_vm9, %v6291_v14, %v6287_v30 }
 0x67a   : > { %1866 = vmatprep.subr.mxu0 %v1787_v3 }
 0x67b   : > { %1867 = vmatpush1.msra.mxu0 %v1786_v48 }
 0x67c   : > { %v1697_v17 = vpop.permute.xlu0 %1696  ;;  %1868 = vmatprep.subr.mxu0 %v1785_v38 }
 0x67d   : > { %1869 = vmatpush1.msra.mxu0 %v1784_v5  ;;  %v1783_v11 = vsel %vm678_vm9, %v1697_v17, %v1699_v41  ;;  %v1782_v22 = vsel %vm678_vm9, %v1695_v33, %v1697_v17  ;;  %v1777_v41 = vsel %vm678_vm9, %v1679_v53, %v1681_v55  ;;  %v1776_v33 = vsel %vm678_vm9, %v1677_v8, %v1679_v53  ;;  %v1771_v62 = vpop.permute.xlu1 %1770  ;;  %v5159_v8 = vld [vmem:[%s8898_s2 + $0x40] sm:$0xff] }
 0x67e   : > { %1870 = vmatprep.subr.mxu0 %v1783_v11 }
 0x67f   : > { %1871 = vmatpush1.msra.mxu0 %v1782_v22  ;;  %v8915_v22 = vld [vmem:[#allocation3_spill] sm:$0xff] }
 0x680   : > { %v1669_v37 = vpop.permute.xlu0 %1668  ;;  %1872 = vmatprep.subr.mxu0 %v1781_v25 }
 0x681   : > { %1873 = vmatpush1.msra.mxu0 %v1780_v24  ;;  %v1773_v14 = vsel %vm678_vm9, %v1669_v37, %v1671_v58  ;;  %v1772_v27 = vsel %vm678_vm9, %v5715_v7, %v1669_v37  ;;  %v1761_v36 = vpop.permute.xlu1 %1760 }
 0x682   : > { %1874 = vmatprep.subr.mxu0 %v1779_v28  ;;  %v1804_v9 = vsel %vm678_vm9, %v1761_v36, %v1763_v26 }
 0x683   : > { %1875 = vmatpush1.msra.mxu0 %v1778_v63 }
 0x684   : > { %v1767_v30 = vpop.permute.xlu0 %1766  ;;  %1876 = vmatprep.subr.mxu0 %v1777_v41 }
 0x685   : > { %1877 = vmatpush1.msra.mxu0 %v1776_v33 }
 0x686   : > { %1878 = vmatprep.subr.mxu0 %v1775_v61 }
 0x687   : > { %1879 = vmatpush1.msra.mxu0 %v1774_v60 }
 0x688   : > { %v1769_v0 = vpop.permute.xlu0 %1768  ;;  %1880 = vmatprep.subr.mxu0 %v1773_v14 }
 0x689   : > { %1881 = vmatpush1.msra.mxu0 %v1772_v27  ;;  %v1807_v40 = vsel %vm678_vm9, %v1769_v0, %v1771_v62  ;;  %v1806_v53 = vsel %vm678_vm9, %v1767_v30, %v1769_v0 }
 0x68a   : > { %1910 = vmatprep.subr.mxu0 %v1807_v40 }
 0x68b   : > { %1911 = vmatpush2.msra.mxu0 %v1806_v53 }
 0x68c   : > { %v1765_v10 = vpop.permute.xlu0 %1764 }
 0x68d   : > { %v1805_v56 = vsel %vm678_vm9, %v1763_v26, %v1765_v10 }
 0x68e   : > { %1912 = vmatprep.subr.mxu0 %v1805_v56 }
 0x68f   : > { %1913 = vmatpush2.msra.mxu0 %v1804_v9 }
 0x690   : > { %1915 = vmatmul.mubr.f32.vlgmr.msra.gmra.mxu0 %v5159_v8 }
 0x691   : > { %5164 = vmatprep.mubr.msk.f32.mxu0 %vm1015_vm1, %v5162_v1 }
 0x694   : > { %1921 = vmatmul.mubr.f32.gmra.mxu0 %v5161_v31 }
 0x750   : > { %v1916_v55 = vpop.f32.mrf.mxu0 }
 0x751   : > { %v1917_v32 = vadd.f32 %v1916_v55, %v5759_v35 }
 0x752   : > { %v1918_v12 = vpop.f32.mrf.mxu0 }
 0x753   : > { %v6360_v51 = vmax.f32 %v1917_v32, 0.0  ;;  %v1919_v6 = vadd.f32 %v1918_v12, %v5761_v44 }
 0x754   : > { %v1922_v3 = vpop.f32.mrf.mxu0 }
 0x755   : > { %v6363_v13 = vmax.f32 %v1919_v6, 0.0  ;;  %2045 = vrot.lane.b32.xlu0 %v6360_v51, %s5278_s8  ;;  %v1947_v35 = vmul.f32 %v5400_v43, %v6360_v51  ;;  %v1943_v29 = vmul.f32 %v5413_v47, %v6360_v51  ;;  %v1939_v34 = vmul.f32 %v6360_v51, %v5423_v49 }
 0x756   : > { %v1935_v48 = vmul.f32 %v6360_v51, %v5426_v50  ;;  %v1924_v17 = vpop.f32.mrf.mxu0  ;;  %v1923_v5 = vadd.f32 %v1922_v3, %v5804_v2  ;;  %v1951_v11 = vmul.f32 %v5435_v54, %v6360_v51 }
 0x757   : > { %2047 = vrot.lane.b32.xlu1 %v6363_v13, %s5278_s8  ;;  %v1948_v44 = vmul.f32 %v6363_v13, %v5446_v57  ;;  %v1944_v42 = vmul.f32 %v6363_v13, %v5452_v59  ;;  %v1940_v58 = vmul.f32 %v5409_v45, %v6363_v13  ;;  %v1936_v38 = vmul.f32 %v5411_v46, %v6363_v13 }
 0x758   : > { %v1925_v26 = vadd.f32 %v1924_v17, %v8915_v22  ;;  %v1952_v25 = vmul.f32 %v6363_v13, %v5476_v4  ;;  %v6408_v37 = vmax.f32 %v1923_v5, 0.0 }
 0x759   : > { %2003 = vrot.lane.b32.xlu0 %v6360_v51, %s5283_s29 }
 0x75a   : > { %v6411_v24 = vmax.f32 %v1925_v26, 0.0  ;;  %v1949_v2 = vmul.f32 %v5400_v43, %v6408_v37  ;;  %v1945_v63 = vmul.f32 %v5413_v47, %v6408_v37  ;;  %v1941_v33 = vmul.f32 %v6408_v37, %v5423_v49 }
 0x75b   : > { %2005 = vrot.lane.b32.xlu1 %v6363_v13, %s5283_s29  ;;  %v1937_v62 = vmul.f32 %v6408_v37, %v5426_v50  ;;  %v1953_v60 = vmul.f32 %v5435_v54, %v6408_v37 }
 0x75c   : > { %v1950_v28 = vmul.f32 %v6411_v24, %v5446_v57  ;;  %v1946_v41 = vmul.f32 %v6411_v24, %v5452_v59  ;;  %v1942_v30 = vmul.f32 %v5409_v45, %v6411_v24  ;;  %v1938_v61 = vmul.f32 %v5411_v46, %v6411_v24 }
 0x75d   : > { %1959 = vrot.lane.b32.xlu0 %v6360_v51, %s5279_s23  ;;  %v1954_v14 = vmul.f32 %v6411_v24, %v5476_v4 }
 0x75f   : > { %1961 = vrot.lane.b32.xlu1 %v6363_v13, %s5279_s23 }
 0x761   : > { %2033 = vrot.lane.b32.xlu0 %v1947_v35, %s5287_s13 }
 0x763   : > { %2035 = vrot.lane.b32.xlu1 %v1948_v44, %s5287_s13 }
 0x765   : > { %2017 = vrot.lane.b32.xlu0 %v1943_v29, %s5288_s14 }
 0x767   : > { %2019 = vrot.lane.b32.xlu1 %v1944_v42, %s5288_s14 }
 0x769   : > { %1991 = vrot.lane.b32.xlu0 %v1939_v34, %s5285_s11 }
 0x76b   : > { %1993 = vrot.lane.b32.xlu1 %v1940_v58, %s5285_s11 }
 0x76d   : > { %1975 = vrot.lane.b32.xlu0 %v1935_v48, %s5286_s12 }
 0x76f   : > { %1977 = vrot.lane.b32.xlu1 %v1936_v38, %s5286_s12 }
 0x771   : > { %2061 = vrot.lane.b32.xlu0 %v1951_v11, %s5289_s17 }
 0x773   : > { %2063 = vrot.lane.b32.xlu1 %v1952_v25, %s5289_s17 }
 0x775   : > { %2049 = vrot.lane.b32.xlu0 %v6408_v37, %s5278_s8 }
 0x777   : > { %2051 = vrot.lane.b32.xlu1 %v6411_v24, %s5278_s8 }
 0x779   : > { %2007 = vrot.lane.b32.xlu0 %v6408_v37, %s5283_s29 }
 0x77b   : > { %2009 = vrot.lane.b32.xlu1 %v6411_v24, %s5283_s29 }
 0x77d   : > { %1963 = vrot.lane.b32.xlu0 %v6408_v37, %s5279_s23 }
 0x77f   : > { %1965 = vrot.lane.b32.xlu1 %v6411_v24, %s5279_s23 }
 0x781   : > { %2037 = vrot.lane.b32.xlu0 %v1949_v2, %s5287_s13 }
 0x783   : > { %2039 = vrot.lane.b32.xlu1 %v1950_v28, %s5287_s13 }
 0x785   : > { %2021 = vrot.lane.b32.xlu0 %v1945_v63, %s5288_s14 }
 0x787   : > { %2023 = vrot.lane.b32.xlu1 %v1946_v41, %s5288_s14 }
 0x789   : > { %1995 = vrot.lane.b32.xlu0 %v1941_v33, %s5285_s11 }
 0x78b   : > { %1997 = vrot.lane.b32.xlu1 %v1942_v30, %s5285_s11 }
 0x78d   : > { %1979 = vrot.lane.b32.xlu0 %v1937_v62, %s5286_s12 }
 0x78f   : > { %1981 = vrot.lane.b32.xlu1 %v1938_v61, %s5286_s12 }
 0x791   : > { %2065 = vrot.lane.b32.xlu0 %v1953_v60, %s5289_s17 }
 0x793   : > { %2067 = vrot.lane.b32.xlu1 %v1954_v14, %s5289_s17 }
 0x7c7   : > { %v2046_v0 = vpop.permute.xlu0 %2045 }
 0x7c8   : > { %2162 = vrot.lane.b32.xlu1 %v2046_v0, %s5284_s30 }
 0x7c9   : > { %v2048_v27 = vpop.permute.xlu1 %2047 }
 0x7ca   : > { %v2054_v56 = vsel %vm807_vm10, %v2048_v27, %v5387_v23  ;;  %v2053_v32 = vsel %vm807_vm10, %v2046_v0, %v2048_v27 }
 0x7cb   : > { %v2004_v40 = vpop.permute.xlu0 %2003 }
 0x7cc   : > { %2126 = vrot.lane.b32.xlu1 %v2004_v40, %s5284_s30 }
 0x7cd   : > { %v2006_v53 = vpop.permute.xlu1 %2005 }
 0x7ce   : > { %2130 = vrot.lane.b32.xlu0 %v2006_v53, %s5284_s30  ;;  %v2011_v35 = vsel %vm606_vm11, %v2004_v40, %v2006_v53 }
 0x7cf   : > { %v6458_v36 = vpop.permute.xlu0 %1959 }
 0x7d1   : > { %v6460_v10 = vpop.permute.xlu1 %1961 }
 0x7d2   : > { %2166 = vrot.lane.b32.xlu0 %v2054_v56, %s5284_s30 }
 0x7d3   : > { %v2034_v8 = vpop.permute.xlu0 %2033 }
 0x7d4   : > { %2150 = vrot.lane.b32.xlu1 %v2034_v8, %s5284_s30 }
 0x7d5   : > { %v2036_v9 = vpop.permute.xlu1 %2035 }
 0x7d6   : > { %v2041_v17 = vsel %vm792_vm14, %v2034_v8, %v2036_v9  ;;  %v2042_v2 = vsel %vm792_vm14, %v2036_v9, %v5519_v18 }
 0x7d7   : > { %v2018_v1 = vpop.permute.xlu0 %2017 }
 0x7d8   : > { %2138 = vrot.lane.b32.xlu1 %v2018_v1, %s5284_s30 }
 0x7d9   : > { %v2020_v31 = vpop.permute.xlu1 %2019 }
 0x7da   : > { %v2025_v11 = vsel %vm772_vm15, %v2018_v1, %v2020_v31  ;;  %v2026_v41 = vsel %vm772_vm15, %v2020_v31, %v5525_v21  ;;  %v1968_v31 = vsel %vm636_vm5, %v6458_v36, %v6460_v10 }
 0x7db   : > { %v1992_v55 = vpop.permute.xlu0 %1991 }
 0x7dc   : > { %2164 = vrot.lane.b32.xlu1 %v2053_v32, %s5284_s30  ;;  %v1999_v42 = vsel %vm742_vm12, %v5515_v16, %v1992_v55  ;;  %v1967_v32 = vsel %vm636_vm5, %v5513_v15, %v6458_v36 }
 0x7dd   : > { %v1994_v12 = vpop.permute.xlu1 %1993 }
 0x7de   : > { %v2000_v26 = vsel %vm742_vm12, %v1992_v55, %v1994_v12 }
 0x7df   : > { %v1976_v6 = vpop.permute.xlu0 %1975 }
 0x7e0   : > { %2128 = vrot.lane.b32.xlu1 %v2011_v35, %s5284_s30  ;;  %v1983_v3 = vsel %vm722_vm13, %v5521_v19, %v1976_v6 }
 0x7e1   : > { %v1978_v44 = vpop.permute.xlu1 %1977 }
 0x7e2   : > { %v1984_v25 = vsel %vm722_vm13, %v1976_v6, %v1978_v44  ;;  %v1934_v6 = vmul.f32 %v5616_v39, %v6411_v24 }
 0x7e3   : > { %v6471_v29 = vpop.permute.xlu0 %2061 }
 0x7e4   : > { %2114 = vrot.lane.b32.xlu1 %v1999_v42, %s5284_s30 }
 0x7e5   : > { %v6476_v34 = vpop.permute.xlu1 %2063 }
 0x7e6   : > { %v2069_v42 = vsel %vm827_vm0, %v6471_v29, %v6476_v34 }
 0x7e7   : > { %v2050_v58 = vpop.permute.xlu0 %2049 }
 0x7e8   : > { %2102 = vrot.lane.b32.xlu1 %v1983_v3, %s5284_s30  ;;  %2168 = vrot.lane.b32.xlu0 %v2050_v58, %s5284_s30 }
 0x7e9   : > { %v2052_v48 = vpop.permute.xlu1 %2051 }
 0x7ea   : > { %v2056_v61 = vsel %vm807_vm10, %v2052_v48, %v5387_v23  ;;  %v2055_v27 = vsel %vm807_vm10, %v2050_v58, %v2052_v48  ;;  %v1933_v58 = vmul.f32 %v6408_v37, %v5629_v52  ;;  %v1931_v37 = vmul.f32 %v6360_v51, %v5629_v52 }
 0x7eb   : > { %v2008_v38 = vpop.permute.xlu0 %2007  ;;  %v2070_v51 = vsel %vm827_vm0, %v6476_v34, %v5523_v20 }
 0x7ec   : > { %2152 = vrot.lane.b32.xlu1 %v2041_v17, %s5284_s30  ;;  %2132 = vrot.lane.b32.xlu0 %v2008_v38, %s5284_s30 }
 0x7ed   : > { %v2010_v5 = vpop.permute.xlu1 %2009 }
 0x7ee   : > { %v2012_v56 = vsel %vm606_vm11, %v2008_v38, %v2010_v5 }
 0x7ef   : > { %v1964_v63 = vpop.permute.xlu0 %1963 }
 0x7f0   : > { %2140 = vrot.lane.b32.xlu1 %v2025_v11, %s5284_s30  ;;  %2118 = vrot.lane.b32.xlu0 %v1994_v12, %s5284_s30  ;;  %v1969_v30 = vsel %vm636_vm5, %v5513_v15, %v1964_v63 }
 0x7f1   : > { %v1966_v22 = vpop.permute.xlu1 %1965 }
 0x7f2   : > { %v1970_v12 = vsel %vm636_vm5, %v1964_v63, %v1966_v22 }
 0x7f3   : > { %v2038_v62 = vpop.permute.xlu0 %2037 }
 0x7f4   : > { %2116 = vrot.lane.b32.xlu1 %v2000_v26, %s5284_s30  ;;  %2106 = vrot.lane.b32.xlu0 %v1978_v44, %s5284_s30  ;;  %v1932_v44 = vmul.f32 %v5616_v39, %v6363_v13 }
 0x7f5   : > { %v2040_v28 = vpop.permute.xlu1 %2039 }
 0x7f6   : > { %v2044_v53 = vsel %vm792_vm14, %v2040_v28, %v5519_v18  ;;  %v2043_v35 = vsel %vm792_vm14, %v2038_v62, %v2040_v28 }
 0x7f7   : > { %v2022_v14 = vpop.permute.xlu0 %2021 }
 0x7f8   : > { %2104 = vrot.lane.b32.xlu1 %v1984_v25, %s5284_s30  ;;  %2154 = vrot.lane.b32.xlu0 %v2042_v2, %s5284_s30 }
 0x7f9   : > { %v2024_v33 = vpop.permute.xlu1 %2023 }
 0x7fa   : > { %v2028_v8 = vsel %vm772_vm15, %v2024_v33, %v5525_v21  ;;  %v2027_v36 = vsel %vm772_vm15, %v2022_v14, %v2024_v33 }
 0x7fb   : > { %v1996_v40 = vpop.permute.xlu0 %1995 }
 0x7fc   : > { %2136 = vrot.lane.b32.xlu1 %v2010_v5, %s5284_s30  ;;  %2142 = vrot.lane.b32.xlu0 %v2026_v41, %s5284_s30  ;;  %v2001_v9 = vsel %vm742_vm12, %v5515_v16, %v1996_v40 }
 0x7fd   : > { %v1998_v60 = vpop.permute.xlu1 %1997 }
 0x7fe   : > { %v2002_v3 = vsel %vm742_vm12, %v1996_v40, %v1998_v60 }
 0x7ff   : > { %v1980_v1 = vpop.permute.xlu0 %1979 }
 0x800   : > { %2100 = vrot.lane.b32.xlu1 %v1966_v22, %s5284_s30  ;;  %2096 = vrot.lane.b32.xlu0 %v1969_v30, %s5284_s30  ;;  %v1985_v55 = vsel %vm722_vm13, %v5521_v19, %v1980_v1 }
 0x801   : > { %v1982_v0 = vpop.permute.xlu1 %1981 }
 0x802   : > { %v1986_v48 = vsel %vm722_vm13, %v1980_v1, %v1982_v0 }
 0x803   : > { %v2066_v38 = vpop.permute.xlu0 %2065 }
 0x804   : > { %2172 = vrot.lane.b32.xlu1 %v2056_v61, %s5284_s30  ;;  %2156 = vrot.lane.b32.xlu0 %v2038_v62, %s5284_s30 }
 0x805   : > { %v2068_v24 = vpop.permute.xlu1 %2067 }
 0x806   : > { %v2072_v13 = vsel %vm827_vm0, %v2068_v24, %v5523_v20 }
 0x808   : > { %2124 = vrot.lane.b32.xlu1 %v1998_v60, %s5284_s30  ;;  %2144 = vrot.lane.b32.xlu0 %v2022_v14, %s5284_s30 }
 0x80c   : > { %2112 = vrot.lane.b32.xlu1 %v1982_v0, %s5284_s30  ;;  %2170 = vrot.lane.b32.xlu0 %v2055_v27, %s5284_s30 }
 0x810   : > { %2160 = vrot.lane.b32.xlu1 %v2044_v53, %s5284_s30  ;;  %2134 = vrot.lane.b32.xlu0 %v2012_v56, %s5284_s30 }
 0x814   : > { %2148 = vrot.lane.b32.xlu1 %v2028_v8, %s5284_s30  ;;  %2120 = vrot.lane.b32.xlu0 %v2001_v9, %s5284_s30 }
 0x818   : > { %2092 = vrot.lane.b32.xlu1 %v1968_v31, %s5284_s30  ;;  %2108 = vrot.lane.b32.xlu0 %v1985_v55, %s5284_s30 }
 0x81c   : > { %2090 = vrot.lane.b32.xlu1 %v1967_v32, %s5284_s30  ;;  %2098 = vrot.lane.b32.xlu0 %v1970_v12, %s5284_s30 }
 0x820   : > { %2088 = vrot.lane.b32.xlu1 %v1934_v6, %s5284_s30  ;;  %2158 = vrot.lane.b32.xlu0 %v2043_v35, %s5284_s30 }
 0x824   : > { %2084 = vrot.lane.b32.xlu1 %v1932_v44, %s5284_s30  ;;  %2146 = vrot.lane.b32.xlu0 %v2027_v36, %s5284_s30 }
 0x828   : > { %2176 = vrot.lane.b32.xlu1 %v2069_v42, %s5284_s30  ;;  %2094 = vrot.lane.b32.xlu0 %v6460_v10, %s5284_s30  ;;  %v5172_v10 = vld [vmem:[%s8898_s2 + $0x68] sm:$0xff] }
 0x829   : > { %5175 = vmatprep.mubr.msk.f32.mxu0 %vm1015_vm1, %v5172_v10 }
 0x82c   : > { %2184 = vrot.lane.b32.xlu1 %v2072_v13, %s5284_s30  ;;  %2086 = vrot.lane.b32.xlu0 %v1933_v58, %s5284_s30 }
 0x830   : > { %2174 = vrot.lane.b32.xlu1 %v6471_v29, %s5284_s30  ;;  %2122 = vrot.lane.b32.xlu0 %v2002_v3, %s5284_s30  ;;  %v2071_v29 = vsel %vm827_vm0, %v2066_v38, %v2068_v24 }
 0x834   : > { %2110 = vrot.lane.b32.xlu0 %v1986_v48, %s5284_s30 }
 0x838   : > { %2082 = vrot.lane.b32.xlu0 %v1931_v37, %s5284_s30 }
 0x83a   : > { %v2163_v17 = vpop.permute.xlu1 %2162 }
 0x83c   : > { %2180 = vrot.lane.b32.xlu0 %v2066_v38, %s5284_s30 }
 0x83e   : > { %v6575_v5 = vpop.permute.xlu1 %2126 }
 0x840   : > { %2182 = vrot.lane.b32.xlu0 %v2071_v29, %s5284_s30  ;;  %v6583_v25 = vpop.permute.xlu0 %2130 }
 0x844   : > { %2178 = vrot.lane.b32.xlu0 %v2070_v51, %s5284_s30  ;;  %v2167_v28 = vpop.permute.xlu0 %2166 }
 0x846   : > { %v2151_v11 = vpop.permute.xlu1 %2150 }
 0x84a   : > { %v6581_v22 = vpop.permute.xlu1 %2138 }
 0x84e   : > { %v2165_v26 = vpop.permute.xlu1 %2164 }
 0x84f   : > { %v2215_v44 = vsel %vm678_vm9, %v2165_v26, %v2167_v28  ;;  %v2214_v42 = vsel %vm678_vm9, %v2163_v17, %v2165_v26 }
 0x852   : > { %v6585_v2 = vpop.permute.xlu1 %2128 }
 0x856   : > { %v6587_v63 = vpop.permute.xlu1 %2114 }
 0x85a   : > { %v6589_v41 = vpop.permute.xlu1 %2102  ;;  %v2169_v33 = vpop.permute.xlu0 %2168 }
 0x85e   : > { %v2153_v30 = vpop.permute.xlu1 %2152  ;;  %v6591_v62 = vpop.permute.xlu0 %2132 }
 0x85f   : > { %v2210_v26 = vsel %vm678_vm9, %v2151_v11, %v2153_v30 }
 0x862   : > { %v2141_v34 = vpop.permute.xlu1 %2140  ;;  %v6593_v61 = vpop.permute.xlu0 %2118 }
 0x863   : > { %v2206_v11 = vsel %vm678_vm9, %v6581_v22, %v2141_v34  ;;  %v2202_v22 = vsel %vm678_vm9, %v6575_v5, %v6585_v2 }
 0x866   : > { %v6595_v60 = vpop.permute.xlu1 %2116  ;;  %v6597_v14 = vpop.permute.xlu0 %2106 }
 0x86a   : > { %v6599_v0 = vpop.permute.xlu1 %2104  ;;  %v2155_v27 = vpop.permute.xlu0 %2154 }
 0x86b   : > { %v2211_v17 = vsel %vm678_vm9, %v2153_v30, %v2155_v27 }
 0x86e   : > { %v2137_v40 = vpop.permute.xlu1 %2136  ;;  %v2143_v53 = vpop.permute.xlu0 %2142 }
 0x872   : > { %v6601_v56 = vpop.permute.xlu1 %2100  ;;  %v6603_v8 = vpop.permute.xlu0 %2096 }
 0x876   : > { %v2173_v9 = vpop.permute.xlu1 %2172  ;;  %v2157_v1 = vpop.permute.xlu0 %2156 }
 0x87a   : > { %v6605_v31 = vpop.permute.xlu1 %2124  ;;  %v2145_v55 = vpop.permute.xlu0 %2144 }
 0x87e   : > { %v2171_v32 = vpop.permute.xlu0 %2170  ;;  %v6607_v12 = vpop.permute.xlu1 %2112 }
 0x87f   : > { %v2217_v6 = vsel %vm678_vm9, %v2171_v32, %v2173_v9  ;;  %v2216_v35 = vsel %vm678_vm9, %v2169_v33, %v2171_v32 }
 0x880   : > { %2264 = vmatprep.subr.mxu1 %v2217_v6  ;;  %2352 = vmatprep.subr.mxu0 %v2217_v6 }
 0x881   : > { %2265 = vmatpush1.msra.mxu1 %v2216_v35  ;;  %2353 = vmatpush1.msra.mxu0 %v2216_v35 }
 0x882   : > { %2266 = vmatprep.subr.mxu1 %v2215_v44  ;;  %2354 = vmatprep.subr.mxu0 %v2215_v44  ;;  %v2135_v36 = vpop.permute.xlu0 %2134  ;;  %v2161_v24 = vpop.permute.xlu1 %2160 }
 0x883   : > { %2267 = vmatpush1.msra.mxu1 %v2214_v42  ;;  %2355 = vmatpush1.msra.mxu0 %v2214_v42  ;;  %v2205_v30 = vsel %vm678_vm9, %v2135_v36, %v2137_v40 }
 0x886   : > { %v2121_v58 = vpop.permute.xlu0 %2120  ;;  %v2149_v3 = vpop.permute.xlu1 %2148 }
 0x88a   : > { %v6613_v13 = vpop.permute.xlu0 %2108  ;;  %v6617_v37 = vpop.permute.xlu1 %2092 }
 0x88e   : > { %v6615_v48 = vpop.permute.xlu0 %2098  ;;  %v6623_v28 = vpop.permute.xlu1 %2090 }
 0x88f   : > { %v2192_v42 = vsel %vm678_vm9, %v6603_v8, %v6615_v48 }
 0x892   : > { %v2159_v10 = vpop.permute.xlu0 %2158  ;;  %v2089_v32 = vpop.permute.xlu1 %2088 }
 0x893   : > { %v2213_v38 = vsel %vm678_vm9, %v2159_v10, %v2161_v24  ;;  %v2212_v29 = vsel %vm678_vm9, %v2157_v1, %v2159_v10  ;;  %v2207_v1 = vsel %vm678_vm9, %v2141_v34, %v2143_v53  ;;  %v2203_v53 = vsel %vm678_vm9, %v6585_v2, %v6583_v25 }
 0x894   : > { %2268 = vmatprep.subr.mxu1 %v2213_v38  ;;  %2356 = vmatprep.subr.mxu0 %v2213_v38  ;;  %v2199_v25 = vsel %vm678_vm9, %v6595_v60, %v6593_v61  ;;  %v2198_v2 = vsel %vm678_vm9, %v6587_v63, %v6595_v60  ;;  %v2195_v61 = vsel %vm678_vm9, %v6599_v0, %v6597_v14 }
 0x895   : > { %2269 = vmatpush1.msra.mxu1 %v2212_v29  ;;  %2357 = vmatpush1.msra.mxu0 %v2212_v29  ;;  %v2194_v60 = vsel %vm678_vm9, %v6589_v41, %v6599_v0  ;;  %v2190_v41 = vsel %vm678_vm9, %v6623_v28, %v6617_v37  ;;  %v5173_v28 = vld [vmem:[%s8898_s2 + $0x70] sm:$0xff] }
 0x896   : > { %2270 = vmatprep.subr.mxu1 %v2211_v17  ;;  %2358 = vmatprep.subr.mxu0 %v2211_v17  ;;  %v2147_v51 = vpop.permute.xlu0 %2146  ;;  %v2085_v40 = vpop.permute.xlu1 %2084  ;;  %v5171_v17 = vld [vmem:[%s8898_s2 + $0x60] sm:$0xff] }
 0x897   : > { %2271 = vmatpush1.msra.mxu1 %v2210_v26  ;;  %2359 = vmatpush1.msra.mxu0 %v2210_v26  ;;  %v2209_v33 = vsel %vm678_vm9, %v2147_v51, %v2149_v3  ;;  %v2208_v9 = vsel %vm678_vm9, %v2145_v55, %v2147_v51  ;;  %v2204_v55 = vsel %vm678_vm9, %v6591_v62, %v2135_v36  ;;  %v5174_v26 = vld [vmem:[%s8898_s2 + $0x78] sm:$0xff] }
 0x898   : > { %2272 = vmatprep.subr.mxu1 %v2209_v33  ;;  %2360 = vmatprep.subr.mxu0 %v2209_v33 }
 0x899   : > { %2273 = vmatpush1.msra.mxu1 %v2208_v9  ;;  %2361 = vmatpush1.msra.mxu0 %v2208_v9 }
 0x89a   : > { %2274 = vmatprep.subr.mxu1 %v2207_v1  ;;  %2362 = vmatprep.subr.mxu0 %v2207_v1  ;;  %v2095_v27 = vpop.permute.xlu0 %2094  ;;  %v2177_v36 = vpop.permute.xlu1 %2176 }
 0x89b   : > { %2275 = vmatpush1.msra.mxu1 %v2206_v11  ;;  %2363 = vmatpush1.msra.mxu0 %v2206_v11  ;;  %v2191_v14 = vsel %vm678_vm9, %v6617_v37, %v2095_v27 }
 0x89c   : > { %2276 = vmatprep.subr.mxu1 %v2205_v30  ;;  %2364 = vmatprep.subr.mxu0 %v2205_v30 }
 0x89d   : > { %2277 = vmatpush1.msra.mxu1 %v2204_v55  ;;  %2365 = vmatpush1.msra.mxu0 %v2204_v55 }
 0x89e   : > { %2278 = vmatprep.subr.mxu1 %v2203_v53  ;;  %2366 = vmatprep.subr.mxu0 %v2203_v53  ;;  %v2087_v6 = vpop.permute.xlu0 %2086  ;;  %v2185_v24 = vpop.permute.xlu1 %2184 }
 0x89f   : > { %2279 = vmatpush1.msra.mxu1 %v2202_v22  ;;  %2367 = vmatpush1.msra.mxu0 %v2202_v22  ;;  %v2188_v8 = vsel %vm678_vm9, %v5715_v7, %v2087_v6 }
 0x8a2   : > { %v2123_v34 = vpop.permute.xlu0 %2122  ;;  %v2175_v10 = vpop.permute.xlu1 %2174 }
 0x8a3   : > { %v2201_v62 = vsel %vm678_vm9, %v2123_v34, %v6605_v31  ;;  %v2200_v35 = vsel %vm678_vm9, %v2121_v58, %v2123_v34  ;;  %v2218_v51 = vsel %vm678_vm9, %v2175_v10, %v2177_v36 }
 0x8a4   : > { %2280 = vmatprep.subr.mxu1 %v2201_v62  ;;  %2368 = vmatprep.subr.mxu0 %v2201_v62 }
 0x8a5   : > { %2281 = vmatpush1.msra.mxu1 %v2200_v35  ;;  %2369 = vmatpush1.msra.mxu0 %v2200_v35 }
 0x8a6   : > { %2282 = vmatprep.subr.mxu1 %v2199_v25  ;;  %2370 = vmatprep.subr.mxu0 %v2199_v25  ;;  %v2111_v5 = vpop.permute.xlu0 %2110 }
 0x8a7   : > { %2283 = vmatpush1.msra.mxu1 %v2198_v2  ;;  %2371 = vmatpush1.msra.mxu0 %v2198_v2  ;;  %v2197_v31 = vsel %vm678_vm9, %v2111_v5, %v6607_v12  ;;  %v2196_v44 = vsel %vm678_vm9, %v6613_v13, %v2111_v5  ;;  %v2193_v12 = vsel %vm678_vm9, %v6615_v48, %v6601_v56 }
 0x8a8   : > { %2284 = vmatprep.subr.mxu1 %v2197_v31  ;;  %2372 = vmatprep.subr.mxu0 %v2197_v31  ;;  %v2189_v56 = vsel %vm678_vm9, %v2087_v6, %v2089_v32 }
 0x8a9   : > { %2285 = vmatpush1.msra.mxu1 %v2196_v44  ;;  %2373 = vmatpush1.msra.mxu0 %v2196_v44 }
 0x8aa   : > { %2286 = vmatprep.subr.mxu1 %v2195_v61  ;;  %2374 = vmatprep.subr.mxu0 %v2195_v61  ;;  %v2083_v63 = vpop.permute.xlu0 %2082 }
 0x8ab   : > { %2287 = vmatpush1.msra.mxu1 %v2194_v60  ;;  %2375 = vmatpush1.msra.mxu0 %v2194_v60  ;;  %v2187_v58 = vsel %vm678_vm9, %v2083_v63, %v2085_v40  ;;  %v2186_v3 = vsel %vm678_vm9, %v5715_v7, %v2083_v63 }
 0x8ac   : > { %2288 = vmatprep.subr.mxu1 %v2193_v12  ;;  %2376 = vmatprep.subr.mxu0 %v2193_v12 }
 0x8ad   : > { %2289 = vmatpush1.msra.mxu1 %v2192_v42  ;;  %2377 = vmatpush1.msra.mxu0 %v2192_v42 }
 0x8ae   : > { %2290 = vmatprep.subr.mxu1 %v2191_v14  ;;  %2378 = vmatprep.subr.mxu0 %v2191_v14  ;;  %v2181_v0 = vpop.permute.xlu0 %2180 }
 0x8af   : > { %2291 = vmatpush1.msra.mxu1 %v2190_v41  ;;  %2379 = vmatpush1.msra.mxu0 %v2190_v41 }
 0x8b0   : > { %2292 = vmatprep.subr.mxu1 %v2189_v56  ;;  %2380 = vmatprep.subr.mxu0 %v2189_v56 }
 0x8b1   : > { %2293 = vmatpush1.msra.mxu1 %v2188_v8  ;;  %2381 = vmatpush1.msra.mxu0 %v2188_v8 }
 0x8b2   : > { %2294 = vmatprep.subr.mxu1 %v2187_v58  ;;  %2382 = vmatprep.subr.mxu0 %v2187_v58  ;;  %v2183_v13 = vpop.permute.xlu0 %2182 }
 0x8b3   : > { %2295 = vmatpush1.msra.mxu1 %v2186_v3  ;;  %2383 = vmatpush1.msra.mxu0 %v2186_v3  ;;  %v2221_v48 = vsel %vm678_vm9, %v2183_v13, %v2185_v24  ;;  %v2220_v37 = vsel %vm678_vm9, %v2181_v0, %v2183_v13 }
 0x8b4   : > { %2324 = vmatprep.subr.mxu1 %v2221_v48  ;;  %2412 = vmatprep.subr.mxu0 %v2221_v48 }
 0x8b5   : > { %2325 = vmatpush2.msra.mxu1 %v2220_v37  ;;  %2413 = vmatpush2.msra.mxu0 %v2220_v37 }
 0x8b6   : > { %v2179_v38 = vpop.permute.xlu0 %2178 }
 0x8b7   : > { %v2219_v29 = vsel %vm678_vm9, %v2177_v36, %v2179_v38 }
 0x8b8   : > { %2326 = vmatprep.subr.mxu1 %v2219_v29  ;;  %2414 = vmatprep.subr.mxu0 %v2219_v29 }
 0x8b9   : > { %2327 = vmatpush2.msra.mxu1 %v2218_v51  ;;  %2415 = vmatpush2.msra.mxu0 %v2218_v51 }
 0x8ba   : > { %2417 = vmatmul.mubr.f32.vlgmr.msra.gmra.mxu0 %v5171_v17 }
 0x8bb   : > { %5176 = vmatprep.mubr.msk.f32.mxu0 %vm1015_vm1, %v5174_v26 }
 0x8be   : > { %2423 = vmatmul.mubr.f32.gmra.mxu0 %v5173_v28 }
 0x97a   : > { %v2418_v33 = vpop.f32.mrf.mxu0 }
 0x97b   : > { %v6689_v9 = vmax.f32 %v2418_v33, 0.0 }
 0x97c   : > { %v2420_v1 = vpop.f32.mrf.mxu0 }
 0x97d   : > { %v6691_v27 = vmax.f32 %v2420_v1, 0.0  ;;  %2552 = vrot.lane.b32.xlu0 %v6689_v9, %s5278_s8  ;;  %v2454_v11 = vmul.f32 %v5400_v43, %v6689_v9  ;;  %v2450_v55 = vmul.f32 %v5413_v47, %v6689_v9  ;;  %v2446_v53 = vmul.f32 %v6689_v9, %v5423_v49 }
 0x97e   : > { %v2442_v22 = vmul.f32 %v6689_v9, %v5426_v50  ;;  %v2424_v40 = vpop.f32.mrf.mxu0  ;;  %v2458_v62 = vmul.f32 %v5435_v54, %v6689_v9 }
 0x97f   : > { %2554 = vrot.lane.b32.xlu1 %v6691_v27, %s5278_s8  ;;  %v2455_v30 = vmul.f32 %v6691_v27, %v5446_v57  ;;  %v2451_v32 = vmul.f32 %v6691_v27, %v5452_v59  ;;  %v2447_v6 = vmul.f32 %v5409_v45, %v6691_v27  ;;  %v2443_v34 = vmul.f32 %v5411_v46, %v6691_v27 }
 0x980   : > { %v2459_v35 = vmul.f32 %v6691_v27, %v5476_v4  ;;  %v2426_v25 = vpop.f32.mrf.mxu0  ;;  %v6734_v5 = vmax.f32 %v2424_v40, 0.0 }
 0x981   : > { %2510 = vrot.lane.b32.xlu0 %v6689_v9, %s5283_s29  ;;  %v6737_v2 = vmax.f32 %v2426_v25, 0.0 }
 0x982   : > { %v2456_v31 = vmul.f32 %v5400_v43, %v6734_v5  ;;  %v2452_v36 = vmul.f32 %v5413_v47, %v6734_v5  ;;  %v2448_v63 = vmul.f32 %v6734_v5, %v5423_v49  ;;  %v2444_v12 = vmul.f32 %v6734_v5, %v5426_v50 }
 0x983   : > { %2512 = vrot.lane.b32.xlu1 %v6691_v27, %s5283_s29  ;;  %v2457_v44 = vmul.f32 %v6737_v2, %v5446_v57  ;;  %v2453_v61 = vmul.f32 %v6737_v2, %v5452_v59  ;;  %v2449_v60 = vmul.f32 %v5409_v45, %v6737_v2  ;;  %v2445_v42 = vmul.f32 %v5411_v46, %v6737_v2 }
 0x984   : > { %v2460_v14 = vmul.f32 %v5435_v54, %v6734_v5  ;;  %v2461_v41 = vmul.f32 %v6737_v2, %v5476_v4 }
 0x985   : > { %2466 = vrot.lane.b32.xlu0 %v6689_v9, %s5279_s23 }
 0x987   : > { %2468 = vrot.lane.b32.xlu1 %v6691_v27, %s5279_s23 }
 0x989   : > { %2540 = vrot.lane.b32.xlu0 %v2454_v11, %s5287_s13 }
 0x98b   : > { %2542 = vrot.lane.b32.xlu1 %v2455_v30, %s5287_s13 }
 0x98d   : > { %2524 = vrot.lane.b32.xlu0 %v2450_v55, %s5288_s14 }
 0x98f   : > { %2526 = vrot.lane.b32.xlu1 %v2451_v32, %s5288_s14 }
 0x991   : > { %2498 = vrot.lane.b32.xlu0 %v2446_v53, %s5285_s11 }
 0x993   : > { %2500 = vrot.lane.b32.xlu1 %v2447_v6, %s5285_s11 }
 0x995   : > { %2482 = vrot.lane.b32.xlu0 %v2442_v22, %s5286_s12 }
 0x997   : > { %2484 = vrot.lane.b32.xlu1 %v2443_v34, %s5286_s12 }
 0x999   : > { %2568 = vrot.lane.b32.xlu0 %v2458_v62, %s5289_s17 }
 0x99b   : > { %2570 = vrot.lane.b32.xlu1 %v2459_v35, %s5289_s17 }
 0x99d   : > { %2556 = vrot.lane.b32.xlu0 %v6734_v5, %s5278_s8 }
 0x99f   : > { %2558 = vrot.lane.b32.xlu1 %v6737_v2, %s5278_s8 }
 0x9a1   : > { %2514 = vrot.lane.b32.xlu0 %v6734_v5, %s5283_s29 }
 0x9a3   : > { %2516 = vrot.lane.b32.xlu1 %v6737_v2, %s5283_s29 }
 0x9a5   : > { %2470 = vrot.lane.b32.xlu0 %v6734_v5, %s5279_s23 }
 0x9a7   : > { %2472 = vrot.lane.b32.xlu1 %v6737_v2, %s5279_s23 }
 0x9a9   : > { %2544 = vrot.lane.b32.xlu0 %v2456_v31, %s5287_s13 }
 0x9ab   : > { %2546 = vrot.lane.b32.xlu1 %v2457_v44, %s5287_s13 }
 0x9ad   : > { %2528 = vrot.lane.b32.xlu0 %v2452_v36, %s5288_s14 }
 0x9af   : > { %2530 = vrot.lane.b32.xlu1 %v2453_v61, %s5288_s14 }
 0x9b1   : > { %2502 = vrot.lane.b32.xlu0 %v2448_v63, %s5285_s11  ;;  %v5166_v63 = vld [vmem:[%s8898_s2 + $0xa8] sm:$0xff] }
 0x9b2   : > { %5169 = vmatprep.mubr.msk.f32.mxu1 %vm1015_vm1, %v5166_v63 }
 0x9b3   : > { %2504 = vrot.lane.b32.xlu1 %v2449_v60, %s5285_s11 }
 0x9b5   : > { %2486 = vrot.lane.b32.xlu0 %v2444_v12, %s5286_s12 }
 0x9b7   : > { %2488 = vrot.lane.b32.xlu1 %v2445_v42, %s5286_s12  ;;  %v5165_v42 = vld [vmem:[%s8898_s2 + $0xa0] sm:$0xff] }
 0x9b8   : > { %2329 = vmatmul.mubr.f32.vlgmr.msra.gmra.mxu1 %v5165_v42 }
 0x9b9   : > { %2572 = vrot.lane.b32.xlu0 %v2460_v14, %s5289_s17 }
 0x9bb   : > { %2574 = vrot.lane.b32.xlu1 %v2461_v41, %s5289_s17 }
 0x9ef   : > { %v2553_v0 = vpop.permute.xlu0 %2552 }
 0x9f0   : > { %2664 = vrot.lane.b32.xlu1 %v2553_v0, %s5284_s30 }
 0x9f1   : > { %v2555_v24 = vpop.permute.xlu1 %2554 }
 0x9f2   : > { %v2561_v3 = vsel %vm807_vm10, %v2555_v24, %v5387_v23  ;;  %v2560_v17 = vsel %vm807_vm10, %v2553_v0, %v2555_v24 }
 0x9f3   : > { %v2511_v56 = vpop.permute.xlu0 %2510 }
 0x9f4   : > { %2628 = vrot.lane.b32.xlu1 %v2511_v56, %s5284_s30 }
 0x9f5   : > { %v2513_v8 = vpop.permute.xlu1 %2512 }
 0x9f6   : > { %2632 = vrot.lane.b32.xlu0 %v2513_v8, %s5284_s30  ;;  %v2518_v28 = vsel %vm606_vm11, %v2511_v56, %v2513_v8 }
 0x9f7   : > { %v6784_v58 = vpop.permute.xlu0 %2466 }
 0x9f9   : > { %v6786_v13 = vpop.permute.xlu1 %2468 }
 0x9fa   : > { %2668 = vrot.lane.b32.xlu0 %v2561_v3, %s5284_s30 }
 0x9fb   : > { %v2541_v48 = vpop.permute.xlu0 %2540 }
 0x9fc   : > { %2652 = vrot.lane.b32.xlu1 %v2541_v48, %s5284_s30 }
 0x9fd   : > { %v2543_v37 = vpop.permute.xlu1 %2542 }
 0x9fe   : > { %v2548_v22 = vsel %vm792_vm14, %v2541_v48, %v2543_v37  ;;  %v2549_v25 = vsel %vm792_vm14, %v2543_v37, %v5519_v18 }
 0x9ff   : > { %v2525_v10 = vpop.permute.xlu0 %2524 }
 0xa00   : > { %2640 = vrot.lane.b32.xlu1 %v2525_v10, %s5284_s30 }
 0xa01   : > { %v2527_v38 = vpop.permute.xlu1 %2526 }
 0xa02   : > { %v2532_v40 = vsel %vm772_vm15, %v2525_v10, %v2527_v38  ;;  %v2533_v61 = vsel %vm772_vm15, %v2527_v38, %v5525_v21 }
 0xa03   : > { %v2499_v29 = vpop.permute.xlu0 %2498 }
 0xa04   : > { %2666 = vrot.lane.b32.xlu1 %v2560_v17, %s5284_s30  ;;  %v2506_v11 = vsel %vm742_vm12, %v5515_v16, %v2499_v29 }
 0xa05   : > { %v2501_v51 = vpop.permute.xlu1 %2500 }
 0xa06   : > { %v2507_v35 = vsel %vm742_vm12, %v2499_v29, %v2501_v51 }
 0xa07   : > { %v2483_v26 = vpop.permute.xlu0 %2482 }
 0xa08   : > { %2630 = vrot.lane.b32.xlu1 %v2518_v28, %s5284_s30  ;;  %v2490_v32 = vsel %vm722_vm13, %v5521_v19, %v2483_v26  ;;  %v2474_v28 = vsel %vm636_vm5, %v5513_v15, %v6784_v58 }
 0xa09   : > { %v2485_v33 = vpop.permute.xlu1 %2484 }
 0xa0a   : > { %v2491_v31 = vsel %vm722_vm13, %v2483_v26, %v2485_v33 }
 0xa0b   : > { %v6797_v1 = vpop.permute.xlu0 %2568 }
 0xa0c   : > { %2616 = vrot.lane.b32.xlu1 %v2506_v11, %s5284_s30 }
 0xa0d   : > { %v6802_v30 = vpop.permute.xlu1 %2570 }
 0xa0f   : > { %v2557_v55 = vpop.permute.xlu0 %2556 }
 0xa10   : > { %2670 = vrot.lane.b32.xlu0 %v2557_v55, %s5284_s30  ;;  %2604 = vrot.lane.b32.xlu1 %v2490_v32, %s5284_s30 }
 0xa11   : > { %v2559_v53 = vpop.permute.xlu1 %2558 }
 0xa12   : > { %v2563_v41 = vsel %vm807_vm10, %v2559_v53, %v5387_v23  ;;  %v2562_v8 = vsel %vm807_vm10, %v2557_v55, %v2559_v53  ;;  %v2439_v55 = vmul.f32 %v5616_v39, %v6691_v27  ;;  %v2440_v53 = vmul.f32 %v6734_v5, %v5629_v52 }
 0xa13   : > { %v2515_v6 = vpop.permute.xlu0 %2514 }
 0xa14   : > { %2634 = vrot.lane.b32.xlu0 %v2515_v6, %s5284_s30  ;;  %2654 = vrot.lane.b32.xlu1 %v2548_v22, %s5284_s30  ;;  %v5167_v22 = vld [vmem:[%s8898_s2 + $0xb0] sm:$0xff] }
 0xa15   : > { %v2517_v34 = vpop.permute.xlu1 %2516 }
 0xa16   : > { %v2519_v48 = vsel %vm606_vm11, %v2515_v6, %v2517_v34 }
 0xa17   : > { %v2471_v36 = vpop.permute.xlu0 %2470 }
 0xa18   : > { %2620 = vrot.lane.b32.xlu0 %v2501_v51, %s5284_s30  ;;  %2642 = vrot.lane.b32.xlu1 %v2532_v40, %s5284_s30  ;;  %v2476_v12 = vsel %vm636_vm5, %v5513_v15, %v2471_v36  ;;  %v2475_v51 = vsel %vm636_vm5, %v6784_v58, %v6786_v13  ;;  %v2576_v58 = vsel %vm827_vm0, %v6797_v1, %v6802_v30 }
 0xa19   : > { %v2473_v62 = vpop.permute.xlu1 %2472 }
 0xa1a   : > { %v2477_v26 = vsel %vm636_vm5, %v2471_v36, %v2473_v62 }
 0xa1b   : > { %v2545_v14 = vpop.permute.xlu0 %2544 }
 0xa1c   : > { %2608 = vrot.lane.b32.xlu0 %v2485_v33, %s5284_s30  ;;  %2618 = vrot.lane.b32.xlu1 %v2507_v35, %s5284_s30  ;;  %v2441_v33 = vmul.f32 %v5616_v39, %v6737_v2 }
 0xa1d   : > { %v2547_v44 = vpop.permute.xlu1 %2546 }
 0xa1e   : > { %v2551_v37 = vsel %vm792_vm14, %v2547_v44, %v5519_v18  ;;  %v2550_v11 = vsel %vm792_vm14, %v2545_v14, %v2547_v44 }
 0xa1f   : > { %v2529_v24 = vpop.permute.xlu0 %2528 }
 0xa20   : > { %2656 = vrot.lane.b32.xlu0 %v2549_v25, %s5284_s30  ;;  %2606 = vrot.lane.b32.xlu1 %v2491_v31, %s5284_s30 }
 0xa21   : > { %v2531_v60 = vpop.permute.xlu1 %2530 }
 0xa22   : > { %v2535_v38 = vsel %vm772_vm15, %v2531_v60, %v5525_v21  ;;  %v2534_v32 = vsel %vm772_vm15, %v2529_v24, %v2531_v60 }
 0xa23   : > { %v2503_v3 = vpop.permute.xlu0 %2502 }
 0xa24   : > { %2644 = vrot.lane.b32.xlu0 %v2533_v61, %s5284_s30  ;;  %2638 = vrot.lane.b32.xlu1 %v2517_v34, %s5284_s30  ;;  %v2508_v10 = vsel %vm742_vm12, %v5515_v16, %v2503_v3  ;;  %v2438_v34 = vmul.f32 %v6689_v9, %v5629_v52  ;;  %v2577_v9 = vsel %vm827_vm0, %v6802_v30, %v5523_v20 }
 0xa25   : > { %v2505_v0 = vpop.permute.xlu1 %2504 }
 0xa26   : > { %v2509_v6 = vsel %vm742_vm12, %v2503_v3, %v2505_v0 }
 0xa27   : > { %v2487_v29 = vpop.permute.xlu0 %2486 }
 0xa28   : > { %2598 = vrot.lane.b32.xlu0 %v2476_v12, %s5284_s30  ;;  %2602 = vrot.lane.b32.xlu1 %v2473_v62, %s5284_s30  ;;  %v2492_v17 = vsel %vm722_vm13, %v5521_v19, %v2487_v29 }
 0xa29   : > { %v2489_v56 = vpop.permute.xlu1 %2488 }
 0xa2a   : > { %v2493_v5 = vsel %vm722_vm13, %v2487_v29, %v2489_v56 }
 0xa2b   : > { %v2573_v40 = vpop.permute.xlu0 %2572 }
 0xa2c   : > { %2658 = vrot.lane.b32.xlu0 %v2545_v14, %s5284_s30  ;;  %2674 = vrot.lane.b32.xlu1 %v2563_v41, %s5284_s30 }
 0xa2d   : > { %v2575_v2 = vpop.permute.xlu1 %2574 }
 0xa2e   : > { %v2579_v27 = vsel %vm827_vm0, %v2575_v2, %v5523_v20  ;;  %v2578_v35 = vsel %vm827_vm0, %v2573_v40, %v2575_v2 }
 0xa30   : > { %2646 = vrot.lane.b32.xlu0 %v2529_v24, %s5284_s30  ;;  %2626 = vrot.lane.b32.xlu1 %v2505_v0, %s5284_s30 }
 0xa34   : > { %2672 = vrot.lane.b32.xlu0 %v2562_v8, %s5284_s30  ;;  %2614 = vrot.lane.b32.xlu1 %v2489_v56, %s5284_s30 }
 0xa38   : > { %2636 = vrot.lane.b32.xlu0 %v2519_v48, %s5284_s30  ;;  %2662 = vrot.lane.b32.xlu1 %v2551_v37, %s5284_s30 }
 0xa3c   : > { %2622 = vrot.lane.b32.xlu0 %v2508_v10, %s5284_s30  ;;  %2650 = vrot.lane.b32.xlu1 %v2535_v38, %s5284_s30 }
 0xa40   : > { %2610 = vrot.lane.b32.xlu0 %v2492_v17, %s5284_s30  ;;  %2594 = vrot.lane.b32.xlu1 %v2475_v51, %s5284_s30 }
 0xa44   : > { %2600 = vrot.lane.b32.xlu0 %v2477_v26, %s5284_s30  ;;  %2592 = vrot.lane.b32.xlu1 %v2474_v28, %s5284_s30 }
 0xa48   : > { %2660 = vrot.lane.b32.xlu0 %v2550_v11, %s5284_s30  ;;  %2590 = vrot.lane.b32.xlu1 %v2441_v33, %s5284_s30 }
 0xa4c   : > { %2648 = vrot.lane.b32.xlu0 %v2534_v32, %s5284_s30  ;;  %2586 = vrot.lane.b32.xlu1 %v2439_v55, %s5284_s30 }
 0xa50   : > { %2596 = vrot.lane.b32.xlu0 %v6786_v13, %s5284_s30  ;;  %2678 = vrot.lane.b32.xlu1 %v2576_v58, %s5284_s30  ;;  %v5168_v13 = vld [vmem:[%s8898_s2 + $0xb8] sm:$0xff] }
 0xa51   : > { %5170 = vmatprep.mubr.msk.f32.mxu1 %vm1015_vm1, %v5168_v13 }
 0xa52   : > { %2335 = vmatmul.mubr.f32.gmra.mxu1 %v5167_v22 }
 0xa54   : > { %2588 = vrot.lane.b32.xlu0 %v2440_v53, %s5284_s30  ;;  %2686 = vrot.lane.b32.xlu1 %v2579_v27, %s5284_s30 }
 0xa58   : > { %2624 = vrot.lane.b32.xlu0 %v2509_v6, %s5284_s30  ;;  %2676 = vrot.lane.b32.xlu1 %v6797_v1, %s5284_s30  ;;  %v5178_v1 = vld [vmem:[%s8898_s2 + $0x88] sm:$0xff] }
 0xa59   : > { %5181 = vmatprep.mubr.msk.f32.mxu1 %vm1015_vm1, %v5178_v1 }
 0xa5c   : > { %2612 = vrot.lane.b32.xlu0 %v2493_v5, %s5284_s30 }
 0xa60   : > { %2584 = vrot.lane.b32.xlu0 %v2438_v34, %s5284_s30 }
 0xa62   : > { %v2665_v62 = vpop.permute.xlu1 %2664 }
 0xa64   : > { %2682 = vrot.lane.b32.xlu0 %v2573_v40, %s5284_s30 }
 0xa66   : > { %v6915_v25 = vpop.permute.xlu1 %2628 }
 0xa68   : > { %2684 = vrot.lane.b32.xlu0 %v2578_v35, %s5284_s30  ;;  %v6921_v61 = vpop.permute.xlu0 %2632 }
 0xa6c   : > { %2680 = vrot.lane.b32.xlu0 %v2577_v9, %s5284_s30  ;;  %v2669_v60 = vpop.permute.xlu0 %2668 }
 0xa6e   : > { %v2653_v31 = vpop.permute.xlu1 %2652 }
 0xa72   : > { %v2641_v44 = vpop.permute.xlu1 %2640 }
 0xa76   : > { %v2667_v36 = vpop.permute.xlu1 %2666 }
 0xa77   : > { %v2717_v58 = vsel %vm678_vm9, %v2667_v36, %v2669_v60  ;;  %v2716_v53 = vsel %vm678_vm9, %v2665_v62, %v2667_v36 }
 0xa7a   : > { %v6923_v63 = vpop.permute.xlu1 %2630 }
 0xa7e   : > { %v6925_v12 = vpop.permute.xlu1 %2616 }
 0xa82   : > { %v2671_v42 = vpop.permute.xlu0 %2670  ;;  %v6927_v14 = vpop.permute.xlu1 %2604 }
 0xa86   : > { %v2635_v41 = vpop.permute.xlu0 %2634  ;;  %v2655_v0 = vpop.permute.xlu1 %2654 }
 0xa87   : > { %v2712_v62 = vsel %vm678_vm9, %v2653_v31, %v2655_v0 }
 0xa8a   : > { %v6929_v24 = vpop.permute.xlu0 %2620  ;;  %v2643_v30 = vpop.permute.xlu1 %2642 }
 0xa8e   : > { %v6931_v56 = vpop.permute.xlu0 %2608  ;;  %v6933_v8 = vpop.permute.xlu1 %2618 }
 0xa92   : > { %v2657_v3 = vpop.permute.xlu0 %2656  ;;  %v6935_v48 = vpop.permute.xlu1 %2606 }
 0xa93   : > { %v2713_v9 = vsel %vm678_vm9, %v2655_v0, %v2657_v3 }
 0xa96   : > { %v2645_v37 = vpop.permute.xlu0 %2644  ;;  %v2639_v10 = vpop.permute.xlu1 %2638 }
 0xa9a   : > { %v6937_v38 = vpop.permute.xlu0 %2598  ;;  %v6939_v29 = vpop.permute.xlu1 %2602 }
 0xa9e   : > { %v2659_v17 = vpop.permute.xlu0 %2658  ;;  %v2675_v51 = vpop.permute.xlu1 %2674 }
 0xaa2   : > { %v2647_v26 = vpop.permute.xlu0 %2646  ;;  %v2627_v28 = vpop.permute.xlu1 %2626 }
 0xaa6   : > { %v2673_v33 = vpop.permute.xlu0 %2672  ;;  %v2615_v11 = vpop.permute.xlu1 %2614 }
 0xaa7   : > { %v2719_v55 = vsel %vm678_vm9, %v2673_v33, %v2675_v51  ;;  %v2718_v32 = vsel %vm678_vm9, %v2671_v42, %v2673_v33  ;;  %v2709_v33 = vsel %vm678_vm9, %v2643_v30, %v2645_v37  ;;  %v2704_v37 = vsel %vm678_vm9, %v6915_v25, %v6923_v63 }
 0xaa8   : > { %2766 = vmatprep.subr.mxu1 %v2719_v55 }
 0xaa9   : > { %2767 = vmatpush1.msra.mxu1 %v2718_v32 }
 0xaaa   : > { %v2637_v2 = vpop.permute.xlu0 %2636  ;;  %2768 = vmatprep.subr.mxu1 %v2717_v58  ;;  %v2663_v27 = vpop.permute.xlu1 %2662 }
 0xaab   : > { %2769 = vmatpush1.msra.mxu1 %v2716_v53  ;;  %v2707_v3 = vsel %vm678_vm9, %v2637_v2, %v2639_v10  ;;  %v2706_v31 = vsel %vm678_vm9, %v2635_v41, %v2637_v2  ;;  %v2701_v41 = vsel %vm678_vm9, %v6933_v8, %v6929_v24  ;;  %v2700_v2 = vsel %vm678_vm9, %v6925_v12, %v6933_v8 }
 0xaac   : > { %v2697_v53 = vsel %vm678_vm9, %v6935_v48, %v6931_v56  ;;  %v2696_v24 = vsel %vm678_vm9, %v6927_v14, %v6935_v48 }
 0xaae   : > { %v2623_v6 = vpop.permute.xlu0 %2622  ;;  %v2651_v5 = vpop.permute.xlu1 %2650 }
 0xab2   : > { %v2611_v13 = vpop.permute.xlu0 %2610  ;;  %v2595_v34 = vpop.permute.xlu1 %2594 }
 0xab6   : > { %v2601_v22 = vpop.permute.xlu0 %2600  ;;  %v2593_v36 = vpop.permute.xlu1 %2592 }
 0xab7   : > { %v2695_v12 = vsel %vm678_vm9, %v2601_v22, %v6939_v29  ;;  %v2694_v8 = vsel %vm678_vm9, %v6937_v38, %v2601_v22 }
 0xaba   : > { %v2661_v1 = vpop.permute.xlu0 %2660  ;;  %v2591_v0 = vpop.permute.xlu1 %2590 }
 0xabb   : > { %v2715_v40 = vsel %vm678_vm9, %v2661_v1, %v2663_v27  ;;  %v2714_v35 = vsel %vm678_vm9, %v2659_v17, %v2661_v1  ;;  %v2708_v17 = vsel %vm678_vm9, %v2641_v44, %v2643_v30 }
 0xabc   : > { %2770 = vmatprep.subr.mxu1 %v2715_v40 }
 0xabd   : > { %2771 = vmatpush1.msra.mxu1 %v2714_v35 }
 0xabe   : > { %v2649_v60 = vpop.permute.xlu0 %2648  ;;  %2772 = vmatprep.subr.mxu1 %v2713_v9  ;;  %v2587_v30 = vpop.permute.xlu1 %2586  ;;  %v5177_v9 = vld [vmem:[%s8898_s2 + $0x80] sm:$0xff] }
 0xabf   : > { %2773 = vmatpush1.msra.mxu1 %v2712_v62  ;;  %v2711_v42 = vsel %vm678_vm9, %v2649_v60, %v2651_v5  ;;  %v2710_v51 = vsel %vm678_vm9, %v2647_v26, %v2649_v60  ;;  %v2705_v26 = vsel %vm678_vm9, %v6923_v63, %v6921_v61  ;;  %v5180_v62 = vld [vmem:[%s8898_s2 + $0x98] sm:$0xff] }
 0xac0   : > { %2774 = vmatprep.subr.mxu1 %v2711_v42  ;;  %v2330_v42 = vpop.f32.mrf.mxu1 }
 0xac1   : > { %2775 = vmatpush1.msra.mxu1 %v2710_v51 }
 0xac2   : > { %v2597_v55 = vpop.permute.xlu0 %2596  ;;  %2776 = vmatprep.subr.mxu1 %v2709_v33  ;;  %v2332_v51 = vpop.f32.mrf.mxu1 }
 0xac3   : > { %2777 = vmatpush1.msra.mxu1 %v2708_v17 }
 0xac4   : > { %2778 = vmatprep.subr.mxu1 %v2707_v3 }
 0xac5   : > { %2779 = vmatpush1.msra.mxu1 %v2706_v31 }
 0xac6   : > { %v2589_v32 = vpop.permute.xlu0 %2588  ;;  %2780 = vmatprep.subr.mxu1 %v2705_v26 }
 0xac7   : > { %2781 = vmatpush1.msra.mxu1 %v2704_v37  ;;  %v2691_v5 = vsel %vm678_vm9, %v2589_v32, %v2591_v0  ;;  %v2690_v14 = vsel %vm678_vm9, %v5715_v7, %v2589_v32 }
 0xaca   : > { %v2625_v44 = vpop.permute.xlu0 %2624 }
 0xacb   : > { %v2703_v10 = vsel %vm678_vm9, %v2625_v44, %v2627_v28  ;;  %v2702_v58 = vsel %vm678_vm9, %v2623_v6, %v2625_v44  ;;  %v2679_v28 = vpop.permute.xlu1 %2678  ;;  %v2692_v6 = vsel %vm678_vm9, %v2593_v36, %v2595_v34  ;;  %v5179_v36 = vld [vmem:[%s8898_s2 + $0x90] sm:$0xff] }
 0xacc   : > { %2782 = vmatprep.subr.mxu1 %v2703_v10 }
 0xacd   : > { %2783 = vmatpush1.msra.mxu1 %v2702_v58 }
 0xace   : > { %v2613_v61 = vpop.permute.xlu0 %2612  ;;  %2784 = vmatprep.subr.mxu1 %v2701_v41 }
 0xacf   : > { %2785 = vmatpush1.msra.mxu1 %v2700_v2  ;;  %v2699_v25 = vsel %vm678_vm9, %v2613_v61, %v2615_v11  ;;  %v2698_v63 = vsel %vm678_vm9, %v2611_v13, %v2613_v61  ;;  %v2693_v11 = vsel %vm678_vm9, %v2595_v34, %v2597_v55  ;;  %v2687_v13 = vpop.permute.xlu1 %2686 }
 0xad0   : > { %2786 = vmatprep.subr.mxu1 %v2699_v25 }
 0xad1   : > { %2787 = vmatpush1.msra.mxu1 %v2698_v63 }
 0xad2   : > { %v2585_v27 = vpop.permute.xlu0 %2584  ;;  %2788 = vmatprep.subr.mxu1 %v2697_v53 }
 0xad3   : > { %2789 = vmatpush1.msra.mxu1 %v2696_v24  ;;  %v2689_v48 = vsel %vm678_vm9, %v2585_v27, %v2587_v30  ;;  %v2688_v38 = vsel %vm678_vm9, %v5715_v7, %v2585_v27  ;;  %v2677_v1 = vpop.permute.xlu1 %2676 }
 0xad4   : > { %2790 = vmatprep.subr.mxu1 %v2695_v12  ;;  %v2720_v60 = vsel %vm678_vm9, %v2677_v1, %v2679_v28 }
 0xad5   : > { %2791 = vmatpush1.msra.mxu1 %v2694_v8 }
 0xad6   : > { %v2683_v56 = vpop.permute.xlu0 %2682  ;;  %2792 = vmatprep.subr.mxu1 %v2693_v11 }
 0xad7   : > { %2793 = vmatpush1.msra.mxu1 %v2692_v6 }
 0xad8   : > { %2794 = vmatprep.subr.mxu1 %v2691_v5 }
 0xad9   : > { %2795 = vmatpush1.msra.mxu1 %v2690_v14 }
 0xada   : > { %v2685_v29 = vpop.permute.xlu0 %2684  ;;  %2796 = vmatprep.subr.mxu1 %v2689_v48 }
 0xadb   : > { %2797 = vmatpush1.msra.mxu1 %v2688_v38  ;;  %v2723_v22 = vsel %vm678_vm9, %v2685_v29, %v2687_v13  ;;  %v2722_v34 = vsel %vm678_vm9, %v2683_v56, %v2685_v29 }
 0xadc   : > { %2826 = vmatprep.subr.mxu1 %v2723_v22 }
 0xadd   : > { %2827 = vmatpush2.msra.mxu1 %v2722_v34 }
 0xade   : > { %v2681_v40 = vpop.permute.xlu0 %2680 }
 0xadf   : > { %v2721_v35 = vsel %vm678_vm9, %v2679_v28, %v2681_v40 }
 0xae0   : > { %2828 = vmatprep.subr.mxu1 %v2721_v35 }
 0xae1   : > { %2829 = vmatpush2.msra.mxu1 %v2720_v60 }
 0xae2   : > { %2831 = vmatmul.mubr.f32.vlgmr.msra.gmra.mxu1 %v5177_v9 }
 0xae3   : > { %5182 = vmatprep.mubr.msk.f32.mxu1 %vm1015_vm1, %v5180_v62 }
 0xae6   : > { %2837 = vmatmul.mubr.f32.gmra.mxu1 %v5179_v36 }
 0xb12   : > { %v2336_v33 = vpop.f32.mrf.mxu1 }
 0xb14   : > { %v2338_v55 = vpop.f32.mrf.mxu1 }
 0xba2   : > { %v2832_v17 = vpop.f32.mrf.mxu1 }
 0xba3   : > { %v2833_v3 = vadd.f32 %v2832_v17, %v2330_v42 }
 0xba4   : > { %v2834_v31 = vpop.f32.mrf.mxu1 }
 0xba5   : > { %v7003_v0 = vmax.f32 %v2833_v3, 0.0  ;;  %v2835_v26 = vadd.f32 %v2834_v31, %v2332_v51 }
 0xba6   : > { %v2838_v61 = vpop.f32.mrf.mxu1 }
 0xba7   : > { %v7005_v32 = vmax.f32 %v2835_v26, 0.0  ;;  %2966 = vrot.lane.b32.xlu0 %v7003_v0, %s5278_s8  ;;  %v2868_v37 = vmul.f32 %v5400_v43, %v7003_v0  ;;  %v2864_v30 = vmul.f32 %v5413_v47, %v7003_v0  ;;  %v2860_v58 = vmul.f32 %v7003_v0, %v5423_v49 }
 0xba8   : > { %v2856_v2 = vmul.f32 %v7003_v0, %v5426_v50  ;;  %v2840_v63 = vpop.f32.mrf.mxu1  ;;  %v2839_v28 = vadd.f32 %v2838_v61, %v2336_v33  ;;  %v2872_v53 = vmul.f32 %v5435_v54, %v7003_v0 }
 0xba9   : > { %2968 = vrot.lane.b32.xlu1 %v7005_v32, %s5278_s8  ;;  %v2869_v44 = vmul.f32 %v7005_v32, %v5446_v57  ;;  %v2865_v10 = vmul.f32 %v7005_v32, %v5452_v59  ;;  %v2861_v41 = vmul.f32 %v5409_v45, %v7005_v32  ;;  %v2857_v25 = vmul.f32 %v5411_v46, %v7005_v32 }
 0xbaa   : > { %v2841_v27 = vadd.f32 %v2840_v63, %v2338_v55  ;;  %v2873_v24 = vmul.f32 %v7005_v32, %v5476_v4  ;;  %v7048_v12 = vmax.f32 %v2839_v28, 0.0 }
 0xbab   : > { %2924 = vrot.lane.b32.xlu0 %v7003_v0, %s5283_s29 }
 0xbac   : > { %v7051_v8 = vmax.f32 %v2841_v27, 0.0  ;;  %v2870_v11 = vmul.f32 %v5400_v43, %v7048_v12  ;;  %v2866_v56 = vmul.f32 %v5413_v47, %v7048_v12  ;;  %v2862_v5 = vmul.f32 %v7048_v12, %v5423_v49 }
 0xbad   : > { %2926 = vrot.lane.b32.xlu1 %v7005_v32, %s5283_s29  ;;  %v2858_v48 = vmul.f32 %v7048_v12, %v5426_v50  ;;  %v2874_v38 = vmul.f32 %v5435_v54, %v7048_v12 }
 0xbae   : > { %8916 = vst [vmem:[#allocation3_spill] sm:$0xff] %v7051_v8  ;;  %v2871_v6 = vmul.f32 %v7051_v8, %v5446_v57  ;;  %v2867_v13 = vmul.f32 %v7051_v8, %v5452_v59  ;;  %v2863_v14 = vmul.f32 %v5409_v45, %v7051_v8  ;;  %v2859_v29 = vmul.f32 %v5411_v46, %v7051_v8 }
 0xbaf   : > { %2880 = vrot.lane.b32.xlu0 %v7003_v0, %s5279_s23  ;;  %v2875_v22 = vmul.f32 %v7051_v8, %v5476_v4 }
 0xbb1   : > { %2882 = vrot.lane.b32.xlu1 %v7005_v32, %s5279_s23 }
 0xbb3   : > { %2954 = vrot.lane.b32.xlu0 %v2868_v37, %s5287_s13 }
 0xbb5   : > { %2956 = vrot.lane.b32.xlu1 %v2869_v44, %s5287_s13 }
 0xbb7   : > { %2938 = vrot.lane.b32.xlu0 %v2864_v30, %s5288_s14 }
 0xbb9   : > { %2940 = vrot.lane.b32.xlu1 %v2865_v10, %s5288_s14 }
 0xbbb   : > { %2912 = vrot.lane.b32.xlu0 %v2860_v58, %s5285_s11 }
 0xbbd   : > { %2914 = vrot.lane.b32.xlu1 %v2861_v41, %s5285_s11 }
 0xbbf   : > { %2896 = vrot.lane.b32.xlu0 %v2856_v2, %s5286_s12 }
 0xbc1   : > { %2898 = vrot.lane.b32.xlu1 %v2857_v25, %s5286_s12 }
 0xbc3   : > { %2982 = vrot.lane.b32.xlu0 %v2872_v53, %s5289_s17 }
 0xbc5   : > { %2984 = vrot.lane.b32.xlu1 %v2873_v24, %s5289_s17 }
 0xbc7   : > { %2970 = vrot.lane.b32.xlu0 %v7048_v12, %s5278_s8 }
 0xbc9   : > { %2972 = vrot.lane.b32.xlu1 %v7051_v8, %s5278_s8 }
 0xbcb   : > { %2928 = vrot.lane.b32.xlu0 %v7048_v12, %s5283_s29 }
 0xbcd   : > { %2930 = vrot.lane.b32.xlu1 %v7051_v8, %s5283_s29 }
 0xbcf   : > { %2884 = vrot.lane.b32.xlu0 %v7048_v12, %s5279_s23 }
 0xbd1   : > { %2886 = vrot.lane.b32.xlu1 %v7051_v8, %s5279_s23 }
 0xbd3   : > { %2958 = vrot.lane.b32.xlu0 %v2870_v11, %s5287_s13 }
 0xbd5   : > { %2960 = vrot.lane.b32.xlu1 %v2871_v6, %s5287_s13 }
 0xbd7   : > { %2942 = vrot.lane.b32.xlu0 %v2866_v56, %s5288_s14 }
 0xbd9   : > { %2944 = vrot.lane.b32.xlu1 %v2867_v13, %s5288_s14 }
 0xbdb   : > { %2916 = vrot.lane.b32.xlu0 %v2862_v5, %s5285_s11 }
 0xbdd   : > { %2918 = vrot.lane.b32.xlu1 %v2863_v14, %s5285_s11 }
 0xbdf   : > { %2900 = vrot.lane.b32.xlu0 %v2858_v48, %s5286_s12 }
 0xbe1   : > { %2902 = vrot.lane.b32.xlu1 %v2859_v29, %s5286_s12 }
 0xbe3   : > { %2986 = vrot.lane.b32.xlu0 %v2874_v38, %s5289_s17 }
 0xbe5   : > { %2988 = vrot.lane.b32.xlu1 %v2875_v22, %s5289_s17 }
 0xc19   : > { %v2967_v34 = vpop.permute.xlu0 %2966 }
 0xc1a   : > { %3078 = vrot.lane.b32.xlu1 %v2967_v34, %s5284_s30 }
 0xc1b   : > { %v2969_v1 = vpop.permute.xlu1 %2968 }
 0xc1c   : > { %v2975_v62 = vsel %vm807_vm10, %v2969_v1, %v5387_v23  ;;  %v2974_v17 = vsel %vm807_vm10, %v2967_v34, %v2969_v1 }
 0xc1d   : > { %v2925_v40 = vpop.permute.xlu0 %2924 }
 0xc1e   : > { %3042 = vrot.lane.b32.xlu1 %v2925_v40, %s5284_s30 }
 0xc1f   : > { %v2927_v35 = vpop.permute.xlu1 %2926 }
 0xc20   : > { %3046 = vrot.lane.b32.xlu0 %v2927_v35, %s5284_s30  ;;  %v2932_v26 = vsel %vm606_vm11, %v2925_v40, %v2927_v35 }
 0xc21   : > { %v7098_v9 = vpop.permute.xlu0 %2880 }
 0xc23   : > { %v7100_v60 = vpop.permute.xlu1 %2882 }
 0xc24   : > { %3082 = vrot.lane.b32.xlu0 %v2975_v62, %s5284_s30 }
 0xc25   : > { %v2955_v36 = vpop.permute.xlu0 %2954 }
 0xc26   : > { %3066 = vrot.lane.b32.xlu1 %v2955_v36, %s5284_s30 }
 0xc27   : > { %v2957_v42 = vpop.permute.xlu1 %2956 }
 0xc28   : > { %v2962_v25 = vsel %vm792_vm14, %v2955_v36, %v2957_v42  ;;  %v2963_v11 = vsel %vm792_vm14, %v2957_v42, %v5519_v18 }
 0xc29   : > { %v2939_v51 = vpop.permute.xlu0 %2938 }
 0xc2a   : > { %3054 = vrot.lane.b32.xlu1 %v2939_v51, %s5284_s30 }
 0xc2b   : > { %v2941_v33 = vpop.permute.xlu1 %2940 }
 0xc2c   : > { %v2946_v28 = vsel %vm772_vm15, %v2939_v51, %v2941_v33  ;;  %v2947_v13 = vsel %vm772_vm15, %v2941_v33, %v5525_v21  ;;  %v2889_v33 = vsel %vm636_vm5, %v7098_v9, %v7100_v60 }
 0xc2d   : > { %v2913_v55 = vpop.permute.xlu0 %2912 }
 0xc2e   : > { %3080 = vrot.lane.b32.xlu1 %v2974_v17, %s5284_s30  ;;  %v2920_v30 = vsel %vm742_vm12, %v5515_v16, %v2913_v55  ;;  %v2888_v17 = vsel %vm636_vm5, %v5513_v15, %v7098_v9 }
 0xc2f   : > { %v2915_v3 = vpop.permute.xlu1 %2914 }
 0xc30   : > { %v2921_v27 = vsel %vm742_vm12, %v2913_v55, %v2915_v3 }
 0xc31   : > { %v2897_v31 = vpop.permute.xlu0 %2896 }
 0xc32   : > { %3044 = vrot.lane.b32.xlu1 %v2932_v26, %s5284_s30  ;;  %v2904_v41 = vsel %vm722_vm13, %v5521_v19, %v2897_v31 }
 0xc33   : > { %v2899_v37 = vpop.permute.xlu1 %2898 }
 0xc34   : > { %v2905_v24 = vsel %vm722_vm13, %v2897_v31, %v2899_v37  ;;  %v2855_v31 = vmul.f32 %v5616_v39, %v7051_v8 }
 0xc35   : > { %v7111_v44 = vpop.permute.xlu0 %2982 }
 0xc36   : > { %3030 = vrot.lane.b32.xlu1 %v2920_v30, %s5284_s30 }
 0xc37   : > { %v7116_v10 = vpop.permute.xlu1 %2984 }
 0xc38   : > { %v2990_v30 = vsel %vm827_vm0, %v7111_v44, %v7116_v10 }
 0xc39   : > { %v2971_v58 = vpop.permute.xlu0 %2970 }
 0xc3a   : > { %3018 = vrot.lane.b32.xlu1 %v2904_v41, %s5284_s30  ;;  %3084 = vrot.lane.b32.xlu0 %v2971_v58, %s5284_s30  ;;  %v2854_v41 = vmul.f32 %v7048_v12, %v5629_v52 }
 0xc3b   : > { %v2973_v61 = vpop.permute.xlu1 %2972 }
 0xc3c   : > { %v2977_v29 = vsel %vm807_vm10, %v2973_v61, %v5387_v23  ;;  %v2976_v1 = vsel %vm807_vm10, %v2971_v58, %v2973_v61 }
 0xc3d   : > { %v2929_v2 = vpop.permute.xlu0 %2928 }
 0xc3e   : > { %3068 = vrot.lane.b32.xlu1 %v2962_v25, %s5284_s30  ;;  %3048 = vrot.lane.b32.xlu0 %v2929_v2, %s5284_s30 }
 0xc3f   : > { %v2931_v63 = vpop.permute.xlu1 %2930 }
 0xc40   : > { %v2933_v62 = vsel %vm606_vm11, %v2929_v2, %v2931_v63 }
 0xc41   : > { %v2885_v56 = vpop.permute.xlu0 %2884 }
 0xc42   : > { %3056 = vrot.lane.b32.xlu1 %v2946_v28, %s5284_s30  ;;  %3034 = vrot.lane.b32.xlu0 %v2915_v3, %s5284_s30  ;;  %v2890_v14 = vsel %vm636_vm5, %v5513_v15, %v2885_v56 }
 0xc43   : > { %v2887_v53 = vpop.permute.xlu1 %2886 }
 0xc44   : > { %v2891_v3 = vsel %vm636_vm5, %v2885_v56, %v2887_v53 }
 0xc45   : > { %v2959_v48 = vpop.permute.xlu0 %2958 }
 0xc46   : > { %3032 = vrot.lane.b32.xlu1 %v2921_v27, %s5284_s30  ;;  %3022 = vrot.lane.b32.xlu0 %v2899_v37, %s5284_s30  ;;  %v2853_v37 = vmul.f32 %v5616_v39, %v7005_v32 }
 0xc47   : > { %v2961_v6 = vpop.permute.xlu1 %2960 }
 0xc48   : > { %v2965_v35 = vsel %vm792_vm14, %v2961_v6, %v5519_v18  ;;  %v2964_v26 = vsel %vm792_vm14, %v2959_v48, %v2961_v6 }
 0xc49   : > { %v2943_v22 = vpop.permute.xlu0 %2942 }
 0xc4a   : > { %3020 = vrot.lane.b32.xlu1 %v2905_v24, %s5284_s30  ;;  %3070 = vrot.lane.b32.xlu0 %v2963_v11, %s5284_s30  ;;  %v2991_v24 = vsel %vm827_vm0, %v7116_v10, %v5523_v20 }
 0xc4b   : > { %v2945_v5 = vpop.permute.xlu1 %2944 }
 0xc4c   : > { %v2949_v36 = vsel %vm772_vm15, %v2945_v5, %v5525_v21  ;;  %v2948_v9 = vsel %vm772_vm15, %v2943_v22, %v2945_v5 }
 0xc4d   : > { %v2917_v40 = vpop.permute.xlu0 %2916 }
 0xc4e   : > { %3052 = vrot.lane.b32.xlu1 %v2931_v63, %s5284_s30  ;;  %3058 = vrot.lane.b32.xlu0 %v2947_v13, %s5284_s30  ;;  %v2922_v42 = vsel %vm742_vm12, %v5515_v16, %v2917_v40  ;;  %v5184_v63 = vld [vmem:[%s8898_s2 + $0xc8] sm:$0xff] }
 0xc4f   : > { %v2919_v38 = vpop.permute.xlu1 %2918  ;;  %5187 = vmatprep.mubr.msk.f32.mxu0 %vm1015_vm1, %v5184_v63 }
 0xc50   : > { %v2923_v2 = vsel %vm742_vm12, %v2917_v40, %v2919_v38 }
 0xc51   : > { %v2901_v51 = vpop.permute.xlu0 %2900 }
 0xc52   : > { %3016 = vrot.lane.b32.xlu1 %v2887_v53, %s5284_s30  ;;  %3012 = vrot.lane.b32.xlu0 %v2890_v14, %s5284_s30  ;;  %v2906_v55 = vsel %vm722_vm13, %v5521_v19, %v2901_v51 }
 0xc53   : > { %v2903_v34 = vpop.permute.xlu1 %2902 }
 0xc54   : > { %v2907_v25 = vsel %vm722_vm13, %v2901_v51, %v2903_v34 }
 0xc55   : > { %v2987_v28 = vpop.permute.xlu0 %2986 }
 0xc56   : > { %3088 = vrot.lane.b32.xlu1 %v2977_v29, %s5284_s30  ;;  %3072 = vrot.lane.b32.xlu0 %v2959_v48, %s5284_s30 }
 0xc57   : > { %v2989_v58 = vpop.permute.xlu1 %2988 }
 0xc58   : > { %v2993_v61 = vsel %vm827_vm0, %v2989_v58, %v5523_v20 }
 0xc5a   : > { %3040 = vrot.lane.b32.xlu1 %v2919_v38, %s5284_s30  ;;  %3060 = vrot.lane.b32.xlu0 %v2943_v22, %s5284_s30 }
 0xc5e   : > { %3028 = vrot.lane.b32.xlu1 %v2903_v34, %s5284_s30  ;;  %3086 = vrot.lane.b32.xlu0 %v2976_v1, %s5284_s30 }
 0xc62   : > { %3076 = vrot.lane.b32.xlu1 %v2965_v35, %s5284_s30  ;;  %3050 = vrot.lane.b32.xlu0 %v2933_v62, %s5284_s30 }
 0xc66   : > { %3064 = vrot.lane.b32.xlu1 %v2949_v36, %s5284_s30  ;;  %3036 = vrot.lane.b32.xlu0 %v2922_v42, %s5284_s30 }
 0xc6a   : > { %3008 = vrot.lane.b32.xlu1 %v2889_v33, %s5284_s30  ;;  %3024 = vrot.lane.b32.xlu0 %v2906_v55, %s5284_s30 }
 0xc6e   : > { %3006 = vrot.lane.b32.xlu1 %v2888_v17, %s5284_s30  ;;  %3014 = vrot.lane.b32.xlu0 %v2891_v3, %s5284_s30 }
 0xc72   : > { %3004 = vrot.lane.b32.xlu1 %v2855_v31, %s5284_s30  ;;  %3074 = vrot.lane.b32.xlu0 %v2964_v26, %s5284_s30 }
 0xc76   : > { %3000 = vrot.lane.b32.xlu1 %v2853_v37, %s5284_s30  ;;  %3062 = vrot.lane.b32.xlu0 %v2948_v9, %s5284_s30 }
 0xc7a   : > { %3092 = vrot.lane.b32.xlu1 %v2990_v30, %s5284_s30  ;;  %3010 = vrot.lane.b32.xlu0 %v7100_v60, %s5284_s30  ;;  %v2852_v60 = vmul.f32 %v7003_v0, %v5629_v52 }
 0xc7e   : > { %3100 = vrot.lane.b32.xlu1 %v2993_v61, %s5284_s30  ;;  %3002 = vrot.lane.b32.xlu0 %v2854_v41, %s5284_s30 }
 0xc82   : > { %3090 = vrot.lane.b32.xlu1 %v7111_v44, %s5284_s30  ;;  %3038 = vrot.lane.b32.xlu0 %v2923_v2, %s5284_s30  ;;  %v2992_v44 = vsel %vm827_vm0, %v2987_v28, %v2989_v58 }
 0xc86   : > { %3026 = vrot.lane.b32.xlu0 %v2907_v25, %s5284_s30 }
 0xc8a   : > { %2998 = vrot.lane.b32.xlu0 %v2852_v60, %s5284_s30 }
 0xc8c   : > { %v3079_v53 = vpop.permute.xlu1 %3078 }
 0xc8e   : > { %3096 = vrot.lane.b32.xlu0 %v2987_v28, %s5284_s30 }
 0xc90   : > { %v7215_v27 = vpop.permute.xlu1 %3042 }
 0xc92   : > { %3098 = vrot.lane.b32.xlu0 %v2992_v44, %s5284_s30  ;;  %v7221_v13 = vpop.permute.xlu0 %3046 }
 0xc96   : > { %3094 = vrot.lane.b32.xlu0 %v2991_v24, %s5284_s30  ;;  %v3083_v14 = vpop.permute.xlu0 %3082 }
 0xc98   : > { %v3067_v11 = vpop.permute.xlu1 %3066 }
 0xc9c   : > { %v3055_v6 = vpop.permute.xlu1 %3054 }
 0xca0   : > { %v3081_v56 = vpop.permute.xlu1 %3080 }
 0xca1   : > { %v3131_v41 = vsel %vm678_vm9, %v3081_v56, %v3083_v14  ;;  %v3130_v2 = vsel %vm678_vm9, %v3079_v53, %v3081_v56 }
 0xca4   : > { %v7223_v5 = vpop.permute.xlu1 %3044 }
 0xca8   : > { %v7225_v48 = vpop.permute.xlu1 %3030 }
 0xcac   : > { %v7227_v29 = vpop.permute.xlu1 %3018  ;;  %v3085_v38 = vpop.permute.xlu0 %3084 }
 0xcb0   : > { %v3069_v22 = vpop.permute.xlu1 %3068  ;;  %v3049_v34 = vpop.permute.xlu0 %3048 }
 0xcb1   : > { %v3126_v53 = vsel %vm678_vm9, %v3067_v11, %v3069_v22 }
 0xcb4   : > { %v3057_v1 = vpop.permute.xlu1 %3056  ;;  %v7229_v40 = vpop.permute.xlu0 %3034 }
 0xcb8   : > { %v7231_v10 = vpop.permute.xlu1 %3032  ;;  %v7233_v35 = vpop.permute.xlu0 %3022 }
 0xcbc   : > { %v7235_v62 = vpop.permute.xlu1 %3020  ;;  %v3071_v36 = vpop.permute.xlu0 %3070 }
 0xcbd   : > { %v3127_v14 = vsel %vm678_vm9, %v3069_v22, %v3071_v36 }
 0xcc0   : > { %v3053_v42 = vpop.permute.xlu1 %3052  ;;  %v3059_v51 = vpop.permute.xlu0 %3058 }
 0xcc4   : > { %v7237_v33 = vpop.permute.xlu1 %3016  ;;  %v7239_v55 = vpop.permute.xlu0 %3012 }
 0xcc8   : > { %v3089_v17 = vpop.permute.xlu1 %3088  ;;  %v3073_v3 = vpop.permute.xlu0 %3072 }
 0xccc   : > { %v3041_v31 = vpop.permute.xlu1 %3040  ;;  %v3061_v26 = vpop.permute.xlu0 %3060 }
 0xcd0   : > { %v3087_v37 = vpop.permute.xlu0 %3086  ;;  %v3029_v9 = vpop.permute.xlu1 %3028 }
 0xcd1   : > { %v3133_v30 = vsel %vm678_vm9, %v3087_v37, %v3089_v17  ;;  %v3132_v58 = vsel %vm678_vm9, %v3085_v38, %v3087_v37 }
 0xcd2   : > { %3180 = vmatprep.subr.mxu0 %v3133_v30 }
 0xcd3   : > { %3181 = vmatpush1.msra.mxu0 %v3132_v58 }
 0xcd4   : > { %3182 = vmatprep.subr.mxu0 %v3131_v41  ;;  %v3051_v61 = vpop.permute.xlu0 %3050  ;;  %v3077_v25 = vpop.permute.xlu1 %3076  ;;  %v3123_v41 = vsel %vm678_vm9, %v3057_v1, %v3059_v51  ;;  %v3118_v51 = vsel %vm678_vm9, %v7215_v27, %v7223_v5 }
 0xcd5   : > { %3183 = vmatpush1.msra.mxu0 %v3130_v2  ;;  %v3121_v36 = vsel %vm678_vm9, %v3051_v61, %v3053_v42  ;;  %v3120_v11 = vsel %vm678_vm9, %v3049_v34, %v3051_v61  ;;  %v3115_v34 = vsel %vm678_vm9, %v7231_v10, %v7229_v40  ;;  %v3114_v61 = vsel %vm678_vm9, %v7225_v48, %v7231_v10 }
 0xcd8   : > { %v3037_v60 = vpop.permute.xlu0 %3036  ;;  %v3065_v28 = vpop.permute.xlu1 %3064 }
 0xcdc   : > { %v3025_v63 = vpop.permute.xlu0 %3024  ;;  %v3009_v24 = vpop.permute.xlu1 %3008 }
 0xce0   : > { %v3015_v44 = vpop.permute.xlu0 %3014  ;;  %v3007_v56 = vpop.permute.xlu1 %3006 }
 0xce1   : > { %v3109_v48 = vsel %vm678_vm9, %v3015_v44, %v7237_v33  ;;  %v3108_v10 = vsel %vm678_vm9, %v7239_v55, %v3015_v44 }
 0xce4   : > { %v3075_v8 = vpop.permute.xlu0 %3074  ;;  %v3005_v22 = vpop.permute.xlu1 %3004 }
 0xce5   : > { %v3129_v17 = vsel %vm678_vm9, %v3075_v8, %v3077_v25  ;;  %v3128_v38 = vsel %vm678_vm9, %v3073_v3, %v3075_v8  ;;  %v3122_v3 = vsel %vm678_vm9, %v3055_v6, %v3057_v1 }
 0xce6   : > { %3184 = vmatprep.subr.mxu0 %v3129_v17 }
 0xce7   : > { %3185 = vmatpush1.msra.mxu0 %v3128_v38 }
 0xce8   : > { %3186 = vmatprep.subr.mxu0 %v3127_v14  ;;  %v3063_v37 = vpop.permute.xlu0 %3062  ;;  %v3001_v1 = vpop.permute.xlu1 %3000 }
 0xce9   : > { %3187 = vmatpush1.msra.mxu0 %v3126_v53  ;;  %v3125_v30 = vsel %vm678_vm9, %v3063_v37, %v3065_v28  ;;  %v3124_v58 = vsel %vm678_vm9, %v3061_v26, %v3063_v37  ;;  %v3119_v26 = vsel %vm678_vm9, %v7223_v5, %v7221_v13  ;;  %v3110_v28 = vsel %vm678_vm9, %v7227_v29, %v7235_v62 }
 0xcea   : > { %3188 = vmatprep.subr.mxu0 %v3125_v30 }
 0xceb   : > { %3189 = vmatpush1.msra.mxu0 %v3124_v58  ;;  %v5186_v58 = vld [vmem:[%s8898_s2 + $0xd8] sm:$0xff] }
 0xcec   : > { %3190 = vmatprep.subr.mxu0 %v3123_v41  ;;  %v3011_v8 = vpop.permute.xlu0 %3010  ;;  %v5185_v41 = vld [vmem:[%s8898_s2 + $0xd0] sm:$0xff] }
 0xced   : > { %3191 = vmatpush1.msra.mxu0 %v3122_v3 }
 0xcee   : > { %3192 = vmatprep.subr.mxu0 %v3121_v36 }
 0xcef   : > { %3193 = vmatpush1.msra.mxu0 %v3120_v11 }
 0xcf0   : > { %3194 = vmatprep.subr.mxu0 %v3119_v26  ;;  %v3003_v2 = vpop.permute.xlu0 %3002 }
 0xcf1   : > { %3195 = vmatpush1.msra.mxu0 %v3118_v51  ;;  %v3105_v38 = vsel %vm678_vm9, %v3003_v2, %v3005_v22  ;;  %v3104_v29 = vsel %vm678_vm9, %v5715_v7, %v3003_v2 }
 0xcf4   : > { %v3039_v6 = vpop.permute.xlu0 %3038 }
 0xcf5   : > { %v3117_v42 = vsel %vm678_vm9, %v3039_v6, %v3041_v31  ;;  %v3116_v25 = vsel %vm678_vm9, %v3037_v60, %v3039_v6  ;;  %v3093_v31 = vpop.permute.xlu1 %3092  ;;  %v3111_v60 = vsel %vm678_vm9, %v7235_v62, %v7233_v35 }
 0xcf6   : > { %3196 = vmatprep.subr.mxu0 %v3117_v42 }
 0xcf7   : > { %3197 = vmatpush1.msra.mxu0 %v3116_v25 }
 0xcf8   : > { %3198 = vmatprep.subr.mxu0 %v3115_v34  ;;  %v3027_v13 = vpop.permute.xlu0 %3026 }
 0xcf9   : > { %3199 = vmatpush1.msra.mxu0 %v3114_v61  ;;  %v3113_v27 = vsel %vm678_vm9, %v3027_v13, %v3029_v9  ;;  %v3112_v5 = vsel %vm678_vm9, %v3025_v63, %v3027_v13  ;;  %v3107_v9 = vsel %vm678_vm9, %v3009_v24, %v3011_v8  ;;  %v3106_v63 = vsel %vm678_vm9, %v3007_v56, %v3009_v24  ;;  %v3101_v17 = vpop.permute.xlu1 %3100  ;;  %v5183_v56 = vld [vmem:[%s8898_s2 + $0xc0] sm:$0xff] }
 0xcfa   : > { %3200 = vmatprep.subr.mxu0 %v3113_v27 }
 0xcfb   : > { %3201 = vmatpush1.msra.mxu0 %v3112_v5 }
 0xcfc   : > { %3202 = vmatprep.subr.mxu0 %v3111_v60  ;;  %v2999_v40 = vpop.permute.xlu0 %2998 }
 0xcfd   : > { %3203 = vmatpush1.msra.mxu0 %v3110_v28  ;;  %v3103_v62 = vsel %vm678_vm9, %v2999_v40, %v3001_v1  ;;  %v3102_v55 = vsel %vm678_vm9, %v5715_v7, %v2999_v40  ;;  %v3091_v14 = vpop.permute.xlu1 %3090 }
 0xcfe   : > { %3204 = vmatprep.subr.mxu0 %v3109_v48  ;;  %v3134_v30 = vsel %vm678_vm9, %v3091_v14, %v3093_v31 }
 0xcff   : > { %3205 = vmatpush1.msra.mxu0 %v3108_v10 }
 0xd00   : > { %3206 = vmatprep.subr.mxu0 %v3107_v9  ;;  %v3097_v35 = vpop.permute.xlu0 %3096 }
 0xd01   : > { %3207 = vmatpush1.msra.mxu0 %v3106_v63 }
 0xd02   : > { %3208 = vmatprep.subr.mxu0 %v3105_v38 }
 0xd03   : > { %3209 = vmatpush1.msra.mxu0 %v3104_v29 }
 0xd04   : > { %3210 = vmatprep.subr.mxu0 %v3103_v62  ;;  %v3099_v33 = vpop.permute.xlu0 %3098 }
 0xd05   : > { %3211 = vmatpush1.msra.mxu0 %v3102_v55  ;;  %v3137_v44 = vsel %vm678_vm9, %v3099_v33, %v3101_v17  ;;  %v3136_v24 = vsel %vm678_vm9, %v3097_v35, %v3099_v33 }
 0xd06   : > { %3240 = vmatprep.subr.mxu0 %v3137_v44 }
 0xd07   : > { %3241 = vmatpush2.msra.mxu0 %v3136_v24 }
 0xd08   : > { %v3095_v37 = vpop.permute.xlu0 %3094 }
 0xd09   : > { %v3135_v53 = vsel %vm678_vm9, %v3093_v31, %v3095_v37 }
 0xd0a   : > { %3242 = vmatprep.subr.mxu0 %v3135_v53 }
 0xd0b   : > { %3243 = vmatpush2.msra.mxu0 %v3134_v30 }
 0xd0c   : > { %3245 = vmatmul.mubr.f32.vlgmr.msra.gmra.mxu0 %v5183_v56 }
 0xd0d   : > { %5188 = vmatprep.mubr.msk.f32.mxu0 %vm1015_vm1, %v5186_v58 }
 0xd10   : > { %3251 = vmatmul.mubr.f32.gmra.mxu0 %v5185_v41 }
 0xdcc   : > { %v3246_v8 = vpop.f32.mrf.mxu0 }
 0xdcd   : > { %v7303_v3 = vmax.f32 %v3246_v8, 0.0 }
 0xdce   : > { %v3248_v36 = vpop.f32.mrf.mxu0 }
 0xdcf   : > { %v7305_v11 = vmax.f32 %v3248_v36, 0.0  ;;  %3380 = vrot.lane.b32.xlu0 %v7303_v3, %s5278_s8  ;;  %v3282_v22 = vmul.f32 %v5400_v43, %v7303_v3  ;;  %v3278_v2 = vmul.f32 %v5413_v47, %v7303_v3  ;;  %v3274_v6 = vmul.f32 %v7303_v3, %v5423_v49 }
 0xdd0   : > { %v3270_v42 = vmul.f32 %v7303_v3, %v5426_v50  ;;  %v3252_v34 = vpop.f32.mrf.mxu0  ;;  %v3286_v13 = vmul.f32 %v5435_v54, %v7303_v3 }
 0xdd1   : > { %3382 = vrot.lane.b32.xlu1 %v7305_v11, %s5278_s8  ;;  %v3283_v26 = vmul.f32 %v7305_v11, %v5446_v57  ;;  %v3279_v51 = vmul.f32 %v7305_v11, %v5452_v59  ;;  %v3275_v1 = vmul.f32 %v5409_v45, %v7305_v11  ;;  %v3271_v25 = vmul.f32 %v5411_v46, %v7305_v11 }
 0xdd2   : > { %v3287_v61 = vmul.f32 %v7305_v11, %v5476_v4  ;;  %v3254_v27 = vpop.f32.mrf.mxu0  ;;  %v7348_v5 = vmax.f32 %v3252_v34, 0.0 }
 0xdd3   : > { %3338 = vrot.lane.b32.xlu0 %v7303_v3, %s5283_s29  ;;  %v7351_v31 = vmax.f32 %v3254_v27, 0.0 }
 0xdd4   : > { %v3284_v60 = vmul.f32 %v5400_v43, %v7348_v5  ;;  %v3280_v28 = vmul.f32 %v5413_v47, %v7348_v5  ;;  %v3276_v10 = vmul.f32 %v7348_v5, %v5423_v49  ;;  %v3272_v63 = vmul.f32 %v7348_v5, %v5426_v50 }
 0xdd5   : > { %3340 = vrot.lane.b32.xlu1 %v7305_v11, %s5283_s29  ;;  %v3285_v40 = vmul.f32 %v7351_v31, %v5446_v57  ;;  %v3281_v48 = vmul.f32 %v7351_v31, %v5452_v59  ;;  %v3277_v9 = vmul.f32 %v5409_v45, %v7351_v31  ;;  %v3273_v35 = vmul.f32 %v5411_v46, %v7351_v31 }
 0xdd6   : > { %v3288_v17 = vmul.f32 %v5435_v54, %v7348_v5  ;;  %v3289_v38 = vmul.f32 %v7351_v31, %v5476_v4 }
 0xdd7   : > { %3294 = vrot.lane.b32.xlu0 %v7303_v3, %s5279_s23 }
 0xdd9   : > { %3296 = vrot.lane.b32.xlu1 %v7305_v11, %s5279_s23 }
 0xddb   : > { %3368 = vrot.lane.b32.xlu0 %v3282_v22, %s5287_s13 }
 0xddd   : > { %3370 = vrot.lane.b32.xlu1 %v3283_v26, %s5287_s13 }
 0xddf   : > { %3352 = vrot.lane.b32.xlu0 %v3278_v2, %s5288_s14 }
 0xde1   : > { %3354 = vrot.lane.b32.xlu1 %v3279_v51, %s5288_s14 }
 0xde3   : > { %3326 = vrot.lane.b32.xlu0 %v3274_v6, %s5285_s11 }
 0xde5   : > { %3328 = vrot.lane.b32.xlu1 %v3275_v1, %s5285_s11 }
 0xde7   : > { %3310 = vrot.lane.b32.xlu0 %v3270_v42, %s5286_s12 }
 0xde9   : > { %3312 = vrot.lane.b32.xlu1 %v3271_v25, %s5286_s12 }
 0xdeb   : > { %3396 = vrot.lane.b32.xlu0 %v3286_v13, %s5289_s17 }
 0xded   : > { %3398 = vrot.lane.b32.xlu1 %v3287_v61, %s5289_s17 }
 0xdef   : > { %3384 = vrot.lane.b32.xlu0 %v7348_v5, %s5278_s8 }
 0xdf1   : > { %3386 = vrot.lane.b32.xlu1 %v7351_v31, %s5278_s8 }
 0xdf3   : > { %3342 = vrot.lane.b32.xlu0 %v7348_v5, %s5283_s29 }
 0xdf5   : > { %3344 = vrot.lane.b32.xlu1 %v7351_v31, %s5283_s29 }
 0xdf7   : > { %3298 = vrot.lane.b32.xlu0 %v7348_v5, %s5279_s23 }
 0xdf9   : > { %3300 = vrot.lane.b32.xlu1 %v7351_v31, %s5279_s23 }
 0xdfb   : > { %3372 = vrot.lane.b32.xlu0 %v3284_v60, %s5287_s13 }
 0xdfd   : > { %3374 = vrot.lane.b32.xlu1 %v3285_v40, %s5287_s13 }
 0xdff   : > { %3356 = vrot.lane.b32.xlu0 %v3280_v28, %s5288_s14 }
 0xe01   : > { %3358 = vrot.lane.b32.xlu1 %v3281_v48, %s5288_s14 }
 0xe03   : > { %3330 = vrot.lane.b32.xlu0 %v3276_v10, %s5285_s11 }
 0xe05   : > { %3332 = vrot.lane.b32.xlu1 %v3277_v9, %s5285_s11 }
 0xe07   : > { %3314 = vrot.lane.b32.xlu0 %v3272_v63, %s5286_s12 }
 0xe09   : > { %3316 = vrot.lane.b32.xlu1 %v3273_v35, %s5286_s12 }
 0xe0b   : > { %3400 = vrot.lane.b32.xlu0 %v3288_v17, %s5289_s17 }
 0xe0d   : > { %3402 = vrot.lane.b32.xlu1 %v3289_v38, %s5289_s17 }
 0xe41   : > { %v3381_v29 = vpop.permute.xlu0 %3380 }
 0xe42   : > { %3492 = vrot.lane.b32.xlu1 %v3381_v29, %s5284_s30 }
 0xe43   : > { %v3383_v62 = vpop.permute.xlu1 %3382 }
 0xe44   : > { %v3389_v14 = vsel %vm807_vm10, %v3383_v62, %v5387_v23  ;;  %v3388_v41 = vsel %vm807_vm10, %v3381_v29, %v3383_v62 }
 0xe45   : > { %v3339_v33 = vpop.permute.xlu0 %3338 }
 0xe46   : > { %3456 = vrot.lane.b32.xlu1 %v3339_v33, %s5284_s30 }
 0xe47   : > { %v3341_v55 = vpop.permute.xlu1 %3340 }
 0xe48   : > { %3460 = vrot.lane.b32.xlu0 %v3341_v55, %s5284_s30  ;;  %v3346_v22 = vsel %vm606_vm11, %v3339_v33, %v3341_v55 }
 0xe49   : > { %v7398_v44 = vpop.permute.xlu0 %3294 }
 0xe4b   : > { %v7400_v24 = vpop.permute.xlu1 %3296 }
 0xe4c   : > { %3496 = vrot.lane.b32.xlu0 %v3389_v14, %s5284_s30 }
 0xe4d   : > { %v3369_v37 = vpop.permute.xlu0 %3368 }
 0xe4e   : > { %3480 = vrot.lane.b32.xlu1 %v3369_v37, %s5284_s30 }
 0xe4f   : > { %v3371_v53 = vpop.permute.xlu1 %3370 }
 0xe50   : > { %v3376_v13 = vsel %vm792_vm14, %v3369_v37, %v3371_v53  ;;  %v3377_v28 = vsel %vm792_vm14, %v3371_v53, %v5519_v18 }
 0xe51   : > { %v3353_v56 = vpop.permute.xlu0 %3352 }
 0xe52   : > { %3468 = vrot.lane.b32.xlu1 %v3353_v56, %s5284_s30 }
 0xe53   : > { %v3355_v30 = vpop.permute.xlu1 %3354 }
 0xe54   : > { %v3360_v27 = vsel %vm772_vm15, %v3353_v56, %v3355_v30  ;;  %v3361_v63 = vsel %vm772_vm15, %v3355_v30, %v5525_v21 }
 0xe55   : > { %v3327_v58 = vpop.permute.xlu0 %3326 }
 0xe56   : > { %3494 = vrot.lane.b32.xlu1 %v3388_v41, %s5284_s30  ;;  %v3334_v51 = vsel %vm742_vm12, %v5515_v16, %v3327_v58 }
 0xe57   : > { %v3329_v8 = vpop.permute.xlu1 %3328 }
 0xe58   : > { %v3335_v40 = vsel %vm742_vm12, %v3327_v58, %v3329_v8 }
 0xe59   : > { %v3311_v36 = vpop.permute.xlu0 %3310 }
 0xe5a   : > { %3458 = vrot.lane.b32.xlu1 %v3346_v22, %s5284_s30  ;;  %v3318_v42 = vsel %vm722_vm13, %v5521_v19, %v3311_v36 }
 0xe5b   : > { %v3313_v26 = vpop.permute.xlu1 %3312 }
 0xe5c   : > { %v3319_v48 = vsel %vm722_vm13, %v3311_v36, %v3313_v26  ;;  %v3303_v36 = vsel %vm636_vm5, %v7398_v44, %v7400_v24 }
 0xe5d   : > { %v7411_v2 = vpop.permute.xlu0 %3396 }
 0xe5e   : > { %3444 = vrot.lane.b32.xlu1 %v3334_v51, %s5284_s30  ;;  %v3269_v51 = vmul.f32 %v5616_v39, %v7351_v31 }
 0xe5f   : > { %v7416_v6 = vpop.permute.xlu1 %3398 }
 0xe61   : > { %v3385_v1 = vpop.permute.xlu0 %3384 }
 0xe62   : > { %3498 = vrot.lane.b32.xlu0 %v3385_v1, %s5284_s30  ;;  %3432 = vrot.lane.b32.xlu1 %v3318_v42, %s5284_s30  ;;  %v3267_v42 = vmul.f32 %v5616_v39, %v7305_v11 }
 0xe63   : > { %v3387_v25 = vpop.permute.xlu1 %3386 }
 0xe64   : > { %v3391_v29 = vsel %vm807_vm10, %v3387_v25, %v5387_v23  ;;  %v3390_v14 = vsel %vm807_vm10, %v3385_v1, %v3387_v25 }
 0xe65   : > { %v3343_v34 = vpop.permute.xlu0 %3342 }
 0xe66   : > { %3462 = vrot.lane.b32.xlu0 %v3343_v34, %s5284_s30  ;;  %3482 = vrot.lane.b32.xlu1 %v3376_v13, %s5284_s30 }
 0xe67   : > { %v3345_v61 = vpop.permute.xlu1 %3344 }
 0xe68   : > { %v3347_v53 = vsel %vm606_vm11, %v3343_v34, %v3345_v61  ;;  %v3268_v34 = vmul.f32 %v7348_v5, %v5629_v52  ;;  %v3266_v5 = vmul.f32 %v7303_v3, %v5629_v52  ;;  %v3405_v3 = vsel %vm827_vm0, %v7416_v6, %v5523_v20 }
 0xe69   : > { %v3299_v9 = vpop.permute.xlu0 %3298 }
 0xe6a   : > { %3448 = vrot.lane.b32.xlu0 %v3329_v8, %s5284_s30  ;;  %3470 = vrot.lane.b32.xlu1 %v3360_v27, %s5284_s30  ;;  %v3304_v17 = vsel %vm636_vm5, %v5513_v15, %v3299_v9 }
 0xe6b   : > { %v3301_v60 = vpop.permute.xlu1 %3300 }
 0xe6c   : > { %v3305_v22 = vsel %vm636_vm5, %v3299_v9, %v3301_v60 }
 0xe6d   : > { %v3373_v38 = vpop.permute.xlu0 %3372 }
 0xe6e   : > { %3436 = vrot.lane.b32.xlu0 %v3313_v26, %s5284_s30  ;;  %3446 = vrot.lane.b32.xlu1 %v3335_v40, %s5284_s30  ;;  %v3302_v26 = vsel %vm636_vm5, %v5513_v15, %v7398_v44  ;;  %v3404_v44 = vsel %vm827_vm0, %v7411_v2, %v7416_v6 }
 0xe6f   : > { %v3375_v10 = vpop.permute.xlu1 %3374 }
 0xe70   : > { %v3379_v56 = vsel %vm792_vm14, %v3375_v10, %v5519_v18  ;;  %v3378_v1 = vsel %vm792_vm14, %v3373_v38, %v3375_v10 }
 0xe71   : > { %v3357_v33 = vpop.permute.xlu0 %3356 }
 0xe72   : > { %3484 = vrot.lane.b32.xlu0 %v3377_v28, %s5284_s30  ;;  %3434 = vrot.lane.b32.xlu1 %v3319_v48, %s5284_s30 }
 0xe73   : > { %v3359_v35 = vpop.permute.xlu1 %3358 }
 0xe74   : > { %v3363_v58 = vsel %vm772_vm15, %v3359_v35, %v5525_v21  ;;  %v3362_v25 = vsel %vm772_vm15, %v3357_v33, %v3359_v35 }
 0xe75   : > { %v3331_v37 = vpop.permute.xlu0 %3330 }
 0xe76   : > { %3472 = vrot.lane.b32.xlu0 %v3361_v63, %s5284_s30  ;;  %3466 = vrot.lane.b32.xlu1 %v3345_v61, %s5284_s30  ;;  %v3336_v30 = vsel %vm742_vm12, %v5515_v16, %v3331_v37  ;;  %v5190_v61 = vld [vmem:[%s8898_s2 + $0xe8] sm:$0xff] }
 0xe77   : > { %v3333_v62 = vpop.permute.xlu1 %3332  ;;  %5193 = vmatprep.mubr.msk.f32.mxu1 %vm1015_vm1, %v5190_v61 }
 0xe78   : > { %v3337_v13 = vsel %vm742_vm12, %v3331_v37, %v3333_v62 }
 0xe79   : > { %v3315_v41 = vpop.permute.xlu0 %3314 }
 0xe7a   : > { %3426 = vrot.lane.b32.xlu0 %v3304_v17, %s5284_s30  ;;  %3430 = vrot.lane.b32.xlu1 %v3301_v60, %s5284_s30  ;;  %v3320_v8 = vsel %vm722_vm13, %v5521_v19, %v3315_v41 }
 0xe7b   : > { %v3317_v55 = vpop.permute.xlu1 %3316 }
 0xe7d   : > { %v3401_v27 = vpop.permute.xlu0 %3400 }
 0xe7e   : > { %3486 = vrot.lane.b32.xlu0 %v3373_v38, %s5284_s30  ;;  %3502 = vrot.lane.b32.xlu1 %v3391_v29, %s5284_s30 }
 0xe7f   : > { %v3403_v31 = vpop.permute.xlu1 %3402 }
 0xe80   : > { %v3407_v11 = vsel %vm827_vm0, %v3403_v31, %v5523_v20 }
 0xe82   : > { %3474 = vrot.lane.b32.xlu0 %v3357_v33, %s5284_s30  ;;  %3454 = vrot.lane.b32.xlu1 %v3333_v62, %s5284_s30 }
 0xe86   : > { %3500 = vrot.lane.b32.xlu0 %v3390_v14, %s5284_s30  ;;  %3442 = vrot.lane.b32.xlu1 %v3317_v55, %s5284_s30 }
 0xe8a   : > { %3464 = vrot.lane.b32.xlu0 %v3347_v53, %s5284_s30  ;;  %3490 = vrot.lane.b32.xlu1 %v3379_v56, %s5284_s30 }
 0xe8e   : > { %3450 = vrot.lane.b32.xlu0 %v3336_v30, %s5284_s30  ;;  %3478 = vrot.lane.b32.xlu1 %v3363_v58, %s5284_s30 }
 0xe92   : > { %3438 = vrot.lane.b32.xlu0 %v3320_v8, %s5284_s30  ;;  %3422 = vrot.lane.b32.xlu1 %v3303_v36, %s5284_s30 }
 0xe96   : > { %3428 = vrot.lane.b32.xlu0 %v3305_v22, %s5284_s30  ;;  %3420 = vrot.lane.b32.xlu1 %v3302_v26, %s5284_s30 }
 0xe9a   : > { %3488 = vrot.lane.b32.xlu0 %v3378_v1, %s5284_s30  ;;  %3418 = vrot.lane.b32.xlu1 %v3269_v51, %s5284_s30 }
 0xe9e   : > { %3476 = vrot.lane.b32.xlu0 %v3362_v25, %s5284_s30  ;;  %3414 = vrot.lane.b32.xlu1 %v3267_v42, %s5284_s30 }
 0xea2   : > { %3424 = vrot.lane.b32.xlu0 %v7400_v24, %s5284_s30  ;;  %3506 = vrot.lane.b32.xlu1 %v3404_v44, %s5284_s30  ;;  %v3321_v24 = vsel %vm722_vm13, %v3315_v41, %v3317_v55 }
 0xea6   : > { %3416 = vrot.lane.b32.xlu0 %v3268_v34, %s5284_s30  ;;  %3514 = vrot.lane.b32.xlu1 %v3407_v11, %s5284_s30 }
 0xeaa   : > { %3452 = vrot.lane.b32.xlu0 %v3337_v13, %s5284_s30  ;;  %3504 = vrot.lane.b32.xlu1 %v7411_v2, %s5284_s30  ;;  %v3406_v2 = vsel %vm827_vm0, %v3401_v27, %v3403_v31 }
 0xeae   : > { %3440 = vrot.lane.b32.xlu0 %v3321_v24, %s5284_s30 }
 0xeb2   : > { %3412 = vrot.lane.b32.xlu0 %v3266_v5, %s5284_s30 }
 0xeb4   : > { %v3493_v60 = vpop.permute.xlu1 %3492 }
 0xeb6   : > { %3510 = vrot.lane.b32.xlu0 %v3401_v27, %s5284_s30 }
 0xeb8   : > { %v7515_v40 = vpop.permute.xlu1 %3456 }
 0xeba   : > { %3512 = vrot.lane.b32.xlu0 %v3406_v2, %s5284_s30  ;;  %v7521_v9 = vpop.permute.xlu0 %3460 }
 0xebe   : > { %3508 = vrot.lane.b32.xlu0 %v3405_v3, %s5284_s30  ;;  %v3497_v35 = vpop.permute.xlu0 %3496 }
 0xec0   : > { %v3481_v28 = vpop.permute.xlu1 %3480 }
 0xec4   : > { %v3469_v48 = vpop.permute.xlu1 %3468 }
 0xec8   : > { %v3495_v10 = vpop.permute.xlu1 %3494 }
 0xec9   : > { %v3545_v31 = vsel %vm678_vm9, %v3495_v10, %v3497_v35  ;;  %v3544_v11 = vsel %vm678_vm9, %v3493_v60, %v3495_v10 }
 0xecc   : > { %v7523_v63 = vpop.permute.xlu1 %3458 }
 0xed0   : > { %v7525_v17 = vpop.permute.xlu1 %3444 }
 0xed4   : > { %v3499_v38 = vpop.permute.xlu0 %3498  ;;  %v7527_v29 = vpop.permute.xlu1 %3432 }
 0xed8   : > { %v3463_v62 = vpop.permute.xlu0 %3462  ;;  %v3483_v33 = vpop.permute.xlu1 %3482 }
 0xed9   : > { %v3540_v60 = vsel %vm678_vm9, %v3481_v28, %v3483_v33 }
 0xedc   : > { %v7529_v55 = vpop.permute.xlu0 %3448  ;;  %v3471_v6 = vpop.permute.xlu1 %3470 }
 0xee0   : > { %v7531_v14 = vpop.permute.xlu0 %3436  ;;  %v7533_v37 = vpop.permute.xlu1 %3446 }
 0xee4   : > { %v3485_v53 = vpop.permute.xlu0 %3484  ;;  %v7535_v56 = vpop.permute.xlu1 %3434 }
 0xee5   : > { %v3541_v35 = vsel %vm678_vm9, %v3483_v33, %v3485_v53 }
 0xee8   : > { %v3473_v30 = vpop.permute.xlu0 %3472  ;;  %v3467_v58 = vpop.permute.xlu1 %3466 }
 0xeec   : > { %v7537_v41 = vpop.permute.xlu0 %3426  ;;  %v7539_v8 = vpop.permute.xlu1 %3430 }
 0xef0   : > { %v3487_v36 = vpop.permute.xlu0 %3486  ;;  %v3503_v22 = vpop.permute.xlu1 %3502 }
 0xef4   : > { %v3475_v26 = vpop.permute.xlu0 %3474  ;;  %v3455_v51 = vpop.permute.xlu1 %3454 }
 0xef8   : > { %v3501_v1 = vpop.permute.xlu0 %3500  ;;  %v3443_v42 = vpop.permute.xlu1 %3442 }
 0xef9   : > { %v3547_v25 = vsel %vm678_vm9, %v3501_v1, %v3503_v22  ;;  %v3546_v44 = vsel %vm678_vm9, %v3499_v38, %v3501_v1 }
 0xefa   : > { %3594 = vmatprep.subr.mxu1 %v3547_v25 }
 0xefb   : > { %3595 = vmatpush1.msra.mxu1 %v3546_v44 }
 0xefc   : > { %v3465_v34 = vpop.permute.xlu0 %3464  ;;  %3596 = vmatprep.subr.mxu1 %v3545_v31  ;;  %v3491_v13 = vpop.permute.xlu1 %3490  ;;  %v3537_v31 = vsel %vm678_vm9, %v3471_v6, %v3473_v30  ;;  %v3532_v30 = vsel %vm678_vm9, %v7515_v40, %v7523_v63 }
 0xefd   : > { %3597 = vmatpush1.msra.mxu1 %v3544_v11  ;;  %v3535_v53 = vsel %vm678_vm9, %v3465_v34, %v3467_v58  ;;  %v3534_v28 = vsel %vm678_vm9, %v3463_v62, %v3465_v34  ;;  %v3529_v62 = vsel %vm678_vm9, %v7533_v37, %v7529_v55  ;;  %v3528_v34 = vsel %vm678_vm9, %v7525_v17, %v7533_v37 }
 0xefe   : > { %v3524_v55 = vsel %vm678_vm9, %v7527_v29, %v7535_v56 }
 0xf00   : > { %v3451_v24 = vpop.permute.xlu0 %3450  ;;  %v3479_v61 = vpop.permute.xlu1 %3478 }
 0xf04   : > { %v3439_v5 = vpop.permute.xlu0 %3438  ;;  %v3423_v2 = vpop.permute.xlu1 %3422 }
 0xf08   : > { %v3429_v27 = vpop.permute.xlu0 %3428  ;;  %v3421_v10 = vpop.permute.xlu1 %3420 }
 0xf09   : > { %v3523_v17 = vsel %vm678_vm9, %v3429_v27, %v7539_v8  ;;  %v3522_v37 = vsel %vm678_vm9, %v7537_v41, %v3429_v27 }
 0xf0c   : > { %v3489_v3 = vpop.permute.xlu0 %3488  ;;  %v3419_v33 = vpop.permute.xlu1 %3418 }
 0xf0d   : > { %v3543_v22 = vsel %vm678_vm9, %v3489_v3, %v3491_v13  ;;  %v3542_v38 = vsel %vm678_vm9, %v3487_v36, %v3489_v3  ;;  %v3536_v36 = vsel %vm678_vm9, %v3469_v48, %v3471_v6 }
 0xf0e   : > { %3598 = vmatprep.subr.mxu1 %v3543_v22 }
 0xf0f   : > { %3599 = vmatpush1.msra.mxu1 %v3542_v38 }
 0xf10   : > { %v3477_v1 = vpop.permute.xlu0 %3476  ;;  %3600 = vmatprep.subr.mxu1 %v3541_v35  ;;  %v3415_v6 = vpop.permute.xlu1 %3414 }
 0xf11   : > { %3601 = vmatpush1.msra.mxu1 %v3540_v60  ;;  %v3539_v25 = vsel %vm678_vm9, %v3477_v1, %v3479_v61  ;;  %v3538_v44 = vsel %vm678_vm9, %v3475_v26, %v3477_v1  ;;  %v3533_v26 = vsel %vm678_vm9, %v7523_v63, %v7521_v9 }
 0xf12   : > { %3602 = vmatprep.subr.mxu1 %v3539_v25 }
 0xf13   : > { %3603 = vmatpush1.msra.mxu1 %v3538_v44  ;;  %v5192_v44 = vld [vmem:[%s8898_s2 + $0xf8] sm:$0xff] }
 0xf14   : > { %v3425_v11 = vpop.permute.xlu0 %3424  ;;  %3604 = vmatprep.subr.mxu1 %v3537_v31  ;;  %v5191_v31 = vld [vmem:[%s8898_s2 + $0xf0] sm:$0xff] }
 0xf15   : > { %3605 = vmatpush1.msra.mxu1 %v3536_v36 }
 0xf16   : > { %3606 = vmatprep.subr.mxu1 %v3535_v53 }
 0xf17   : > { %3607 = vmatpush1.msra.mxu1 %v3534_v28 }
 0xf18   : > { %v3417_v13 = vpop.permute.xlu0 %3416  ;;  %3608 = vmatprep.subr.mxu1 %v3533_v26 }
 0xf19   : > { %3609 = vmatpush1.msra.mxu1 %v3532_v30  ;;  %v3519_v38 = vsel %vm678_vm9, %v3417_v13, %v3419_v33  ;;  %v3518_v29 = vsel %vm678_vm9, %v5715_v7, %v3417_v13 }
 0xf1c   : > { %v3453_v48 = vpop.permute.xlu0 %3452 }
 0xf1d   : > { %v3531_v58 = vsel %vm678_vm9, %v3453_v48, %v3455_v51  ;;  %v3530_v61 = vsel %vm678_vm9, %v3451_v24, %v3453_v48  ;;  %v3507_v51 = vpop.permute.xlu1 %3506  ;;  %v3525_v24 = vsel %vm678_vm9, %v7535_v56, %v7531_v14 }
 0xf1e   : > { %3610 = vmatprep.subr.mxu1 %v3531_v58 }
 0xf1f   : > { %3611 = vmatpush1.msra.mxu1 %v3530_v61 }
 0xf20   : > { %v3441_v9 = vpop.permute.xlu0 %3440  ;;  %3612 = vmatprep.subr.mxu1 %v3529_v62 }
 0xf21   : > { %3613 = vmatpush1.msra.mxu1 %v3528_v34  ;;  %v3527_v40 = vsel %vm678_vm9, %v3441_v9, %v3443_v42  ;;  %v3526_v63 = vsel %vm678_vm9, %v3439_v5, %v3441_v9  ;;  %v3521_v42 = vsel %vm678_vm9, %v3423_v2, %v3425_v11  ;;  %v3520_v5 = vsel %vm678_vm9, %v3421_v10, %v3423_v2  ;;  %v3515_v22 = vpop.permute.xlu1 %3514  ;;  %v5189_v10 = vld [vmem:[%s8898_s2 + $0xe0] sm:$0xff] }
 0xf22   : > { %3614 = vmatprep.subr.mxu1 %v3527_v40 }
 0xf23   : > { %3615 = vmatpush1.msra.mxu1 %v3526_v63  ;;  %v8917_v63 = vld [vmem:[#allocation3_spill] sm:$0xff] }
 0xf24   : > { %v3413_v3 = vpop.permute.xlu0 %3412  ;;  %3616 = vmatprep.subr.mxu1 %v3525_v24 }
 0xf25   : > { %3617 = vmatpush1.msra.mxu1 %v3524_v55  ;;  %v3517_v56 = vsel %vm678_vm9, %v3413_v3, %v3415_v6  ;;  %v3516_v41 = vsel %vm678_vm9, %v5715_v7, %v3413_v3  ;;  %v3505_v35 = vpop.permute.xlu1 %3504 }
 0xf26   : > { %3618 = vmatprep.subr.mxu1 %v3523_v17  ;;  %v3548_v25 = vsel %vm678_vm9, %v3505_v35, %v3507_v51 }
 0xf27   : > { %3619 = vmatpush1.msra.mxu1 %v3522_v37 }
 0xf28   : > { %v3511_v14 = vpop.permute.xlu0 %3510  ;;  %3620 = vmatprep.subr.mxu1 %v3521_v42 }
 0xf29   : > { %3621 = vmatpush1.msra.mxu1 %v3520_v5 }
 0xf2a   : > { %3622 = vmatprep.subr.mxu1 %v3519_v38 }
 0xf2b   : > { %3623 = vmatpush1.msra.mxu1 %v3518_v29 }
 0xf2c   : > { %v3513_v8 = vpop.permute.xlu0 %3512  ;;  %3624 = vmatprep.subr.mxu1 %v3517_v56 }
 0xf2d   : > { %3625 = vmatpush1.msra.mxu1 %v3516_v41  ;;  %v3551_v27 = vsel %vm678_vm9, %v3513_v8, %v3515_v22  ;;  %v3550_v2 = vsel %vm678_vm9, %v3511_v14, %v3513_v8 }
 0xf2e   : > { %3654 = vmatprep.subr.mxu1 %v3551_v27 }
 0xf2f   : > { %3655 = vmatpush2.msra.mxu1 %v3550_v2 }
 0xf30   : > { %v3509_v1 = vpop.permute.xlu0 %3508 }
 0xf31   : > { %v3549_v60 = vsel %vm678_vm9, %v3507_v51, %v3509_v1 }
 0xf32   : > { %3656 = vmatprep.subr.mxu1 %v3549_v60 }
 0xf33   : > { %3657 = vmatpush2.msra.mxu1 %v3548_v25 }
 0xf34   : > { %3659 = vmatmul.mubr.f32.vlgmr.msra.gmra.mxu1 %v5189_v10 }
 0xf35   : > { %5194 = vmatprep.mubr.msk.f32.mxu1 %vm1015_vm1, %v5192_v44 }
 0xf38   : > { %3665 = vmatmul.mubr.f32.gmra.mxu1 %v5191_v31 }
 0xff4   : > { %v3660_v11 = vpop.f32.mrf.mxu1 }
 0xff5   : > { %v3661_v36 = vadd.f32 %v3660_v11, %v7003_v0 }
 0xff6   : > { %v3662_v53 = vpop.f32.mrf.mxu1 }
 0xff7   : > { %v7604_v28 = vmax.f32 %v3661_v36, 0.0  ;;  %v3663_v33 = vadd.f32 %v3662_v53, %v7005_v32 }
 0xff8   : > { %v3666_v58 = vpop.f32.mrf.mxu1 }
 0xff9   : > { %v7607_v26 = vmax.f32 %v3663_v33, 0.0  ;;  %3789 = vrot.lane.b32.xlu0 %v7604_v28, %s5278_s8  ;;  %v3691_v0 = vmul.f32 %v5400_v43, %v7604_v28  ;;  %v3687_v13 = vmul.f32 %v5413_v47, %v7604_v28  ;;  %v3683_v48 = vmul.f32 %v7604_v28, %v5423_v49 }
 0xffa   : > { %v3679_v61 = vmul.f32 %v7604_v28, %v5426_v50  ;;  %v3668_v9 = vpop.f32.mrf.mxu1  ;;  %v3667_v34 = vadd.f32 %v3666_v58, %v7048_v12  ;;  %v3695_v40 = vmul.f32 %v5435_v54, %v7604_v28 }
 0xffb   : > { %3791 = vrot.lane.b32.xlu1 %v7607_v26, %s5278_s8  ;;  %v3692_v32 = vmul.f32 %v7607_v26, %v5446_v57  ;;  %v3688_v30 = vmul.f32 %v7607_v26, %v5452_v59  ;;  %v3684_v6 = vmul.f32 %v5409_v45, %v7607_v26  ;;  %v3680_v62 = vmul.f32 %v5411_v46, %v7607_v26 }
 0xffc   : > { %v3669_v51 = vadd.f32 %v3668_v9, %v8917_v63  ;;  %v3696_v24 = vmul.f32 %v7607_v26, %v5476_v4  ;;  %v7652_v3 = vmax.f32 %v3667_v34, 0.0 }
 0xffd   : > { %3747 = vrot.lane.b32.xlu0 %v7604_v28, %s5283_s29 }
 0xffe   : > { %v7655_v55 = vmax.f32 %v3669_v51, 0.0  ;;  %v3693_v12 = vmul.f32 %v5400_v43, %v7652_v3  ;;  %v3689_v37 = vmul.f32 %v5413_v47, %v7652_v3  ;;  %v3685_v5 = vmul.f32 %v7652_v3, %v5423_v49 }
 0xfff   : > { %3749 = vrot.lane.b32.xlu1 %v7607_v26, %s5283_s29  ;;  %v3681_v22 = vmul.f32 %v7652_v3, %v5426_v50  ;;  %v3697_v29 = vmul.f32 %v5435_v54, %v7652_v3 }
0x1000   : > { %v3694_v17 = vmul.f32 %v7655_v55, %v5446_v57  ;;  %v3690_v42 = vmul.f32 %v7655_v55, %v5452_v59  ;;  %v3686_v14 = vmul.f32 %v5409_v45, %v7655_v55  ;;  %v3682_v38 = vmul.f32 %v5411_v46, %v7655_v55 }
0x1001   : > { %3703 = vrot.lane.b32.xlu0 %v7604_v28, %s5279_s23  ;;  %v3698_v56 = vmul.f32 %v7655_v55, %v5476_v4 }
0x1003   : > { %3705 = vrot.lane.b32.xlu1 %v7607_v26, %s5279_s23 }
0x1005   : > { %3777 = vrot.lane.b32.xlu0 %v3691_v0, %s5287_s13 }
0x1007   : > { %3779 = vrot.lane.b32.xlu1 %v3692_v32, %s5287_s13 }
0x1009   : > { %3761 = vrot.lane.b32.xlu0 %v3687_v13, %s5288_s14 }
0x100b   : > { %3763 = vrot.lane.b32.xlu1 %v3688_v30, %s5288_s14 }
0x100d   : > { %3735 = vrot.lane.b32.xlu0 %v3683_v48, %s5285_s11 }
0x100f   : > { %3737 = vrot.lane.b32.xlu1 %v3684_v6, %s5285_s11 }
0x1011   : > { %3719 = vrot.lane.b32.xlu0 %v3679_v61, %s5286_s12 }
0x1013   : > { %3721 = vrot.lane.b32.xlu1 %v3680_v62, %s5286_s12 }
0x1015   : > { %3805 = vrot.lane.b32.xlu0 %v3695_v40, %s5289_s17 }
0x1017   : > { %3807 = vrot.lane.b32.xlu1 %v3696_v24, %s5289_s17 }
0x1019   : > { %3793 = vrot.lane.b32.xlu0 %v7652_v3, %s5278_s8 }
0x101b   : > { %3795 = vrot.lane.b32.xlu1 %v7655_v55, %s5278_s8 }
0x101d   : > { %3751 = vrot.lane.b32.xlu0 %v7652_v3, %s5283_s29 }
0x101f   : > { %3753 = vrot.lane.b32.xlu1 %v7655_v55, %s5283_s29 }
0x1021   : > { %3707 = vrot.lane.b32.xlu0 %v7652_v3, %s5279_s23 }
0x1023   : > { %3709 = vrot.lane.b32.xlu1 %v7655_v55, %s5279_s23 }
0x1025   : > { %3781 = vrot.lane.b32.xlu0 %v3693_v12, %s5287_s13 }
0x1027   : > { %3783 = vrot.lane.b32.xlu1 %v3694_v17, %s5287_s13 }
0x1029   : > { %3765 = vrot.lane.b32.xlu0 %v3689_v37, %s5288_s14 }
0x102b   : > { %3767 = vrot.lane.b32.xlu1 %v3690_v42, %s5288_s14 }
0x102d   : > { %3739 = vrot.lane.b32.xlu0 %v3685_v5, %s5285_s11 }
0x102f   : > { %3741 = vrot.lane.b32.xlu1 %v3686_v14, %s5285_s11 }
0x1031   : > { %3723 = vrot.lane.b32.xlu0 %v3681_v22, %s5286_s12 }
0x1033   : > { %3725 = vrot.lane.b32.xlu1 %v3682_v38, %s5286_s12 }
0x1035   : > { %3809 = vrot.lane.b32.xlu0 %v3697_v29, %s5289_s17 }
0x1037   : > { %3811 = vrot.lane.b32.xlu1 %v3698_v56, %s5289_s17 }
0x106b   : > { %v3790_v8 = vpop.permute.xlu0 %3789 }
0x106c   : > { %3918 = vrot.lane.b32.xlu1 %v3790_v8, %s5284_s30 }
0x106d   : > { %v3792_v41 = vpop.permute.xlu1 %3791 }
0x106e   : > { %v3798_v60 = vsel %vm807_vm10, %v3792_v41, %v5387_v23  ;;  %v3797_v36 = vsel %vm807_vm10, %v3790_v8, %v3792_v41 }
0x106f   : > { %v3748_v27 = vpop.permute.xlu0 %3747 }
0x1070   : > { %3882 = vrot.lane.b32.xlu1 %v3748_v27, %s5284_s30 }
0x1071   : > { %v3750_v2 = vpop.permute.xlu1 %3749 }
0x1072   : > { %3886 = vrot.lane.b32.xlu0 %v3750_v2, %s5284_s30  ;;  %v3755_v0 = vsel %vm606_vm11, %v3748_v27, %v3750_v2 }
0x1073   : > { %v7702_v35 = vpop.permute.xlu0 %3703 }
0x1075   : > { %v7704_v1 = vpop.permute.xlu1 %3705 }
0x1076   : > { %3922 = vrot.lane.b32.xlu0 %v3798_v60, %s5284_s30 }
0x1077   : > { %v3778_v10 = vpop.permute.xlu0 %3777 }
0x1078   : > { %3906 = vrot.lane.b32.xlu1 %v3778_v10, %s5284_s30 }
0x1079   : > { %v3780_v25 = vpop.permute.xlu1 %3779 }
0x107a   : > { %v3785_v9 = vsel %vm792_vm14, %v3778_v10, %v3780_v25  ;;  %v3786_v12 = vsel %vm792_vm14, %v3780_v25, %v5519_v18 }
0x107b   : > { %v3762_v44 = vpop.permute.xlu0 %3761 }
0x107c   : > { %3894 = vrot.lane.b32.xlu1 %v3762_v44, %s5284_s30 }
0x107d   : > { %v3764_v31 = vpop.permute.xlu1 %3763 }
0x107e   : > { %v3769_v40 = vsel %vm772_vm15, %v3762_v44, %v3764_v31  ;;  %v3770_v42 = vsel %vm772_vm15, %v3764_v31, %v5525_v21  ;;  %v3712_v31 = vsel %vm636_vm5, %v7702_v35, %v7704_v1 }
0x107f   : > { %v3736_v11 = vpop.permute.xlu0 %3735 }
0x1080   : > { %3920 = vrot.lane.b32.xlu1 %v3797_v36, %s5284_s30  ;;  %v3743_v30 = vsel %vm742_vm12, %v5515_v16, %v3736_v11  ;;  %v3711_v36 = vsel %vm636_vm5, %v5513_v15, %v7702_v35 }
0x1081   : > { %v3738_v53 = vpop.permute.xlu1 %3737 }
0x1082   : > { %v3744_v51 = vsel %vm742_vm12, %v3736_v11, %v3738_v53 }
0x1083   : > { %v3720_v33 = vpop.permute.xlu0 %3719 }
0x1084   : > { %3884 = vrot.lane.b32.xlu1 %v3755_v0, %s5284_s30  ;;  %v3727_v58 = vsel %vm722_vm13, %v5521_v19, %v3720_v33 }
0x1085   : > { %v3722_v32 = vpop.permute.xlu1 %3721 }
0x1086   : > { %v3728_v24 = vsel %vm722_vm13, %v3720_v33, %v3722_v32  ;;  %v3678_v33 = vmul.f32 %v5616_v39, %v7655_v55 }
0x1087   : > { %v7715_v13 = vpop.permute.xlu0 %3805 }
0x1088   : > { %3870 = vrot.lane.b32.xlu1 %v3743_v30, %s5284_s30 }
0x1089   : > { %v7720_v48 = vpop.permute.xlu1 %3807 }
0x108a   : > { %v3813_v30 = vsel %vm827_vm0, %v7715_v13, %v7720_v48 }
0x108b   : > { %v3794_v6 = vpop.permute.xlu0 %3793 }
0x108c   : > { %3858 = vrot.lane.b32.xlu1 %v3727_v58, %s5284_s30  ;;  %3924 = vrot.lane.b32.xlu0 %v3794_v6, %s5284_s30 }
0x108d   : > { %v3796_v61 = vpop.permute.xlu1 %3795 }
0x108e   : > { %v3800_v38 = vsel %vm807_vm10, %v3796_v61, %v5387_v23  ;;  %v3799_v41 = vsel %vm807_vm10, %v3794_v6, %v3796_v61  ;;  %v3677_v6 = vmul.f32 %v7652_v3, %v5629_v52  ;;  %v3675_v3 = vmul.f32 %v7604_v28, %v5629_v52  ;;  %v4102_v28 = vld [vmem:[%s8902_s6] sm:$0xff] }
0x108f   : > { %v3752_v62 = vpop.permute.xlu0 %3751 }
0x1090   : > { %3908 = vrot.lane.b32.xlu1 %v3785_v9, %s5284_s30  ;;  %3888 = vrot.lane.b32.xlu0 %v3752_v62, %s5284_s30 }
0x1091   : > { %v3754_v34 = vpop.permute.xlu1 %3753 }
0x1092   : > { %v3756_v60 = vsel %vm606_vm11, %v3752_v62, %v3754_v34  ;;  %v5202_v62 = vld [vmem:[%s8898_s2 + $0x128] sm:$0xff] }
0x1093   : > { %v3708_v37 = vpop.permute.xlu0 %3707  ;;  %5205 = vmatprep.mubr.msk.f32.mxu1 %vm1015_vm1, %v5202_v62 }
0x1094   : > { %3896 = vrot.lane.b32.xlu1 %v3769_v40, %s5284_s30  ;;  %3874 = vrot.lane.b32.xlu0 %v3738_v53, %s5284_s30  ;;  %v3713_v14 = vsel %vm636_vm5, %v5513_v15, %v3708_v37  ;;  %v5290_v40 = vmov 0  }
0x1095   : > { %v3710_v63 = vpop.permute.xlu1 %3709  ;;  %5266 = vset.pattern.permute.xlu0 %v5290_v40  ;;  %5267 = vset.pattern.permute.xlu1 %v5290_v40 }
0x1096   : > { %v3714_v53 = vsel %vm636_vm5, %v3708_v37, %v3710_v63  ;;  %v3822_v37 = vld [vmem:[%s8901_s5] sm:$0xff] }
0x1097   : > { %v3782_v22 = vpop.permute.xlu0 %3781 }
0x1098   : > { %3872 = vrot.lane.b32.xlu1 %v3744_v51, %s5284_s30  ;;  %3862 = vrot.lane.b32.xlu0 %v3722_v32, %s5284_s30  ;;  %v3676_v32 = vmul.f32 %v5616_v39, %v7607_v26 }
0x1099   : > { %v3784_v17 = vpop.permute.xlu1 %3783 }
0x109a   : > { %v3788_v2 = vsel %vm792_vm14, %v3784_v17, %v5519_v18  ;;  %v3787_v0 = vsel %vm792_vm14, %v3782_v22, %v3784_v17 }
0x109b   : > { %v3766_v56 = vpop.permute.xlu0 %3765 }
0x109c   : > { %3860 = vrot.lane.b32.xlu1 %v3728_v24, %s5284_s30  ;;  %3910 = vrot.lane.b32.xlu0 %v3786_v12, %s5284_s30  ;;  %v3814_v24 = vsel %vm827_vm0, %v7720_v48, %v5523_v20  ;;  %v4103_v12 = vld [vmem:[%s8902_s6 + $0x8] sm:$0xff] }
0x109d   : > { %v3768_v5 = vpop.permute.xlu1 %3767 }
0x109e   : > { %v3772_v10 = vsel %vm772_vm15, %v3768_v5, %v5525_v21  ;;  %v3771_v35 = vsel %vm772_vm15, %v3766_v56, %v3768_v5 }
0x109f   : > { %v3740_v27 = vpop.permute.xlu0 %3739 }
0x10a0   : > { %3892 = vrot.lane.b32.xlu1 %v3754_v34, %s5284_s30  ;;  %3898 = vrot.lane.b32.xlu0 %v3770_v42, %s5284_s30  ;;  %v3745_v25 = vsel %vm742_vm12, %v5515_v16, %v3740_v27 }
0x10a1   : > { %v3742_v29 = vpop.permute.xlu1 %3741 }
0x10a2   : > { %v3746_v58 = vsel %vm742_vm12, %v3740_v27, %v3742_v29 }
0x10a3   : > { %v3724_v44 = vpop.permute.xlu0 %3723 }
0x10a4   : > { %3856 = vrot.lane.b32.xlu1 %v3710_v63, %s5284_s30  ;;  %3852 = vrot.lane.b32.xlu0 %v3713_v14, %s5284_s30  ;;  %v3729_v11 = vsel %vm722_vm13, %v5521_v19, %v3724_v44  ;;  %v3823_v63 = vld [vmem:[%s8901_s5 + $0x8] sm:$0xff] }
0x10a5   : > { %v3726_v8 = vpop.permute.xlu1 %3725 }
0x10a6   : > { %v3730_v61 = vsel %vm722_vm13, %v3724_v44, %v3726_v8 }
0x10a8   : > { %3928 = vrot.lane.b32.xlu1 %v3800_v38, %s5284_s30  ;;  %3912 = vrot.lane.b32.xlu0 %v3782_v22, %s5284_s30 }
0x10a9   : > { %v3812_v55 = vpop.permute.xlu1 %3811 }
0x10aa   : > { %v3816_v26 = vsel %vm827_vm0, %v3812_v55, %v5523_v20 }
0x10ac   : > { %3880 = vrot.lane.b32.xlu1 %v3742_v29, %s5284_s30  ;;  %3900 = vrot.lane.b32.xlu0 %v3766_v56, %s5284_s30 }
0x10b0   : > { %3868 = vrot.lane.b32.xlu1 %v3726_v8, %s5284_s30  ;;  %3926 = vrot.lane.b32.xlu0 %v3799_v41, %s5284_s30 }
0x10b4   : > { %3916 = vrot.lane.b32.xlu1 %v3788_v2, %s5284_s30  ;;  %3890 = vrot.lane.b32.xlu0 %v3756_v60, %s5284_s30 }
0x10b8   : > { %3904 = vrot.lane.b32.xlu1 %v3772_v10, %s5284_s30  ;;  %3876 = vrot.lane.b32.xlu0 %v3745_v25, %s5284_s30 }
0x10bc   : > { %3848 = vrot.lane.b32.xlu1 %v3712_v31, %s5284_s30  ;;  %3864 = vrot.lane.b32.xlu0 %v3729_v11, %s5284_s30 }
0x10c0   : > { %3846 = vrot.lane.b32.xlu1 %v3711_v36, %s5284_s30  ;;  %3854 = vrot.lane.b32.xlu0 %v3714_v53, %s5284_s30 }
0x10c4   : > { %3844 = vrot.lane.b32.xlu1 %v3678_v33, %s5284_s30  ;;  %3914 = vrot.lane.b32.xlu0 %v3787_v0, %s5284_s30 }
0x10c8   : > { %3840 = vrot.lane.b32.xlu1 %v3676_v32, %s5284_s30  ;;  %3902 = vrot.lane.b32.xlu0 %v3771_v35, %s5284_s30 }
0x10cc   : > { %3932 = vrot.lane.b32.xlu1 %v3813_v30, %s5284_s30  ;;  %3850 = vrot.lane.b32.xlu0 %v7704_v1, %s5284_s30  ;;  %v5196_v1 = vld [vmem:[%s8898_s2 + $0x108] sm:$0xff] }
0x10cd   : > { %5199 = vmatprep.mubr.msk.f32.mxu0 %vm1015_vm1, %v5196_v1 }
0x10d0   : > { %3940 = vrot.lane.b32.xlu1 %v3816_v26, %s5284_s30  ;;  %3842 = vrot.lane.b32.xlu0 %v3677_v6, %s5284_s30 }
0x10d4   : > { %3930 = vrot.lane.b32.xlu1 %v7715_v13, %s5284_s30  ;;  %3878 = vrot.lane.b32.xlu0 %v3746_v58, %s5284_s30  ;;  %v3810_v13 = vpop.permute.xlu0 %3809 }
0x10d5   : > { %v3815_v34 = vsel %vm827_vm0, %v3810_v13, %v3812_v55 }
0x10d8   : > { %3866 = vrot.lane.b32.xlu0 %v3730_v61, %s5284_s30  ;;  %4106 = vperm.xlu1 %5267, %v4102_v28  }
0x10dc   : > { %3838 = vrot.lane.b32.xlu0 %v3675_v3, %s5284_s30  ;;  %3831 = vperm.xlu1 %5267, %v3823_v63  }
0x10de   : > { %v3919_v9 = vpop.permute.xlu1 %3918 }
0x10e0   : > { %3936 = vrot.lane.b32.xlu0 %v3810_v13, %s5284_s30 }
0x10e2   : > { %v7829_v51 = vpop.permute.xlu1 %3882 }
0x10e4   : > { %3938 = vrot.lane.b32.xlu0 %v3815_v34, %s5284_s30  ;;  %v7843_v14 = vpop.permute.xlu0 %3886 }
0x10e8   : > { %3934 = vrot.lane.b32.xlu0 %v3814_v24, %s5284_s30  ;;  %v3923_v22 = vpop.permute.xlu0 %3922 }
0x10ea   : > { %v3907_v17 = vpop.permute.xlu1 %3906 }
0x10ec   : > { %4111 = vperm.xlu0 %5266, %v4103_v12  }
0x10ee   : > { %v7841_v42 = vpop.permute.xlu1 %3894 }
0x10f0   : > { %3826 = vperm.xlu0 %5266, %v3822_v37  }
0x10f2   : > { %v3921_v5 = vpop.permute.xlu1 %3920 }
0x10f3   : > { %v3971_v58 = vsel %vm678_vm9, %v3921_v5, %v3923_v22  ;;  %v3970_v3 = vsel %vm678_vm9, %v3919_v9, %v3921_v5 }
0x10f6   : > { %v7845_v48 = vpop.permute.xlu1 %3884 }
0x10fa   : > { %v7847_v38 = vpop.permute.xlu1 %3870 }
0x10fe   : > { %v7849_v29 = vpop.permute.xlu1 %3858  ;;  %v3925_v56 = vpop.permute.xlu0 %3924 }
0x1102   : > { %v3909_v8 = vpop.permute.xlu1 %3908  ;;  %v7851_v41 = vpop.permute.xlu0 %3888 }
0x1103   : > { %v3966_v5 = vsel %vm678_vm9, %v3907_v17, %v3909_v8 }
0x1106   : > { %v3897_v27 = vpop.permute.xlu1 %3896  ;;  %v7853_v2 = vpop.permute.xlu0 %3874 }
0x1107   : > { %v3962_v17 = vsel %vm678_vm9, %v7841_v42, %v3897_v27  ;;  %v3958_v42 = vsel %vm678_vm9, %v7829_v51, %v7845_v48 }
0x110a   : > { %v7855_v60 = vpop.permute.xlu1 %3872  ;;  %v7857_v10 = vpop.permute.xlu0 %3862 }
0x110e   : > { %v7859_v25 = vpop.permute.xlu1 %3860  ;;  %v3911_v44 = vpop.permute.xlu0 %3910 }
0x110f   : > { %v3967_v9 = vsel %vm678_vm9, %v3909_v8, %v3911_v44 }
0x1112   : > { %v3893_v31 = vpop.permute.xlu1 %3892  ;;  %v3899_v11 = vpop.permute.xlu0 %3898 }
0x1116   : > { %v7861_v36 = vpop.permute.xlu1 %3856  ;;  %v7863_v53 = vpop.permute.xlu0 %3852 }
0x111a   : > { %v3929_v33 = vpop.permute.xlu1 %3928  ;;  %v3913_v0 = vpop.permute.xlu0 %3912 }
0x111e   : > { %v7865_v32 = vpop.permute.xlu1 %3880  ;;  %v3901_v35 = vpop.permute.xlu0 %3900 }
0x1122   : > { %v3927_v30 = vpop.permute.xlu0 %3926  ;;  %v7867_v55 = vpop.permute.xlu1 %3868 }
0x1123   : > { %v3973_v6 = vsel %vm678_vm9, %v3927_v30, %v3929_v33  ;;  %v3972_v26 = vsel %vm678_vm9, %v3925_v56, %v3927_v30 }
0x1124   : > { %4020 = vmatprep.subr.mxu0 %v3973_v6  ;;  %4120 = vmatprep.subr.mxu1 %v3973_v6 }
0x1125   : > { %4021 = vmatpush1.msra.mxu0 %v3972_v26  ;;  %4121 = vmatpush1.msra.mxu1 %v3972_v26 }
0x1126   : > { %4022 = vmatprep.subr.mxu0 %v3971_v58  ;;  %4122 = vmatprep.subr.mxu1 %v3971_v58  ;;  %v3891_v61 = vpop.permute.xlu0 %3890  ;;  %v3917_v1 = vpop.permute.xlu1 %3916 }
0x1127   : > { %4023 = vmatpush1.msra.mxu0 %v3970_v3  ;;  %4123 = vmatpush1.msra.mxu1 %v3970_v3  ;;  %v3961_v8 = vsel %vm678_vm9, %v3891_v61, %v3893_v31 }
0x112a   : > { %v3877_v62 = vpop.permute.xlu0 %3876  ;;  %v3905_v28 = vpop.permute.xlu1 %3904 }
0x112e   : > { %v7873_v13 = vpop.permute.xlu0 %3864  ;;  %v7877_v40 = vpop.permute.xlu1 %3848 }
0x1132   : > { %v7875_v34 = vpop.permute.xlu0 %3854  ;;  %v7883_v22 = vpop.permute.xlu1 %3846 }
0x1133   : > { %v3948_v3 = vsel %vm678_vm9, %v7863_v53, %v7875_v34 }
0x1136   : > { %v3915_v63 = vpop.permute.xlu0 %3914  ;;  %v3845_v30 = vpop.permute.xlu1 %3844 }
0x1137   : > { %v3969_v24 = vsel %vm678_vm9, %v3915_v63, %v3917_v1  ;;  %v3968_v12 = vsel %vm678_vm9, %v3913_v0, %v3915_v63  ;;  %v3963_v0 = vsel %vm678_vm9, %v3897_v27, %v3899_v11  ;;  %v3959_v11 = vsel %vm678_vm9, %v7845_v48, %v7843_v14 }
0x1138   : > { %4024 = vmatprep.subr.mxu0 %v3969_v24  ;;  %4124 = vmatprep.subr.mxu1 %v3969_v24  ;;  %v3955_v14 = vsel %vm678_vm9, %v7855_v60, %v7853_v2  ;;  %v3954_v48 = vsel %vm678_vm9, %v7847_v38, %v7855_v60  ;;  %v3951_v2 = vsel %vm678_vm9, %v7859_v25, %v7857_v10 }
0x1139   : > { %4025 = vmatpush1.msra.mxu0 %v3968_v12  ;;  %4125 = vmatpush1.msra.mxu1 %v3968_v12  ;;  %v3950_v60 = vsel %vm678_vm9, %v7849_v29, %v7859_v25  ;;  %v3946_v29 = vsel %vm678_vm9, %v7883_v22, %v7877_v40  ;;  %v5198_v22 = vld [vmem:[%s8898_s2 + $0x118] sm:$0xff] }
0x113a   : > { %4026 = vmatprep.subr.mxu0 %v3967_v9  ;;  %4126 = vmatprep.subr.mxu1 %v3967_v9  ;;  %v3903_v37 = vpop.permute.xlu0 %3902  ;;  %v3841_v31 = vpop.permute.xlu1 %3840  ;;  %v5195_v9 = vld [vmem:[%s8898_s2 + $0x100] sm:$0xff] }
0x113b   : > { %4027 = vmatpush1.msra.mxu0 %v3966_v5  ;;  %4127 = vmatpush1.msra.mxu1 %v3966_v5  ;;  %v3965_v56 = vsel %vm678_vm9, %v3903_v37, %v3905_v28  ;;  %v3964_v33 = vsel %vm678_vm9, %v3901_v35, %v3903_v37  ;;  %v3960_v35 = vsel %vm678_vm9, %v7851_v41, %v3891_v61  ;;  %v5201_v37 = vld [vmem:[%s8898_s2 + $0x120] sm:$0xff] }
0x113c   : > { %4028 = vmatprep.subr.mxu0 %v3965_v56  ;;  %4128 = vmatprep.subr.mxu1 %v3965_v56  ;;  %v5204_v56 = vld [vmem:[%s8898_s2 + $0x138] sm:$0xff] }
0x113d   : > { %4029 = vmatpush1.msra.mxu0 %v3964_v33  ;;  %4129 = vmatpush1.msra.mxu1 %v3964_v33  ;;  %v5197_v33 = vld [vmem:[%s8898_s2 + $0x110] sm:$0xff] }
0x113e   : > { %4030 = vmatprep.subr.mxu0 %v3963_v0  ;;  %4130 = vmatprep.subr.mxu1 %v3963_v0  ;;  %v3851_v44 = vpop.permute.xlu0 %3850  ;;  %v3933_v61 = vpop.permute.xlu1 %3932  ;;  %v5203_v0 = vld [vmem:[%s8898_s2 + $0x130] sm:$0xff] }
0x113f   : > { %4031 = vmatpush1.msra.mxu0 %v3962_v17  ;;  %4131 = vmatpush1.msra.mxu1 %v3962_v17  ;;  %v3947_v10 = vsel %vm678_vm9, %v7877_v40, %v3851_v44 }
0x1140   : > { %4032 = vmatprep.subr.mxu0 %v3961_v8  ;;  %4132 = vmatprep.subr.mxu1 %v3961_v8 }
0x1141   : > { %4033 = vmatpush1.msra.mxu0 %v3960_v35  ;;  %4133 = vmatpush1.msra.mxu1 %v3960_v35 }
0x1142   : > { %4034 = vmatprep.subr.mxu0 %v3959_v11  ;;  %4134 = vmatprep.subr.mxu1 %v3959_v11  ;;  %v3843_v6 = vpop.permute.xlu0 %3842  ;;  %v3941_v1 = vpop.permute.xlu1 %3940 }
0x1143   : > { %4035 = vmatpush1.msra.mxu0 %v3958_v42  ;;  %4135 = vmatpush1.msra.mxu1 %v3958_v42  ;;  %v3944_v53 = vsel %vm678_vm9, %v5715_v7, %v3843_v6 }
0x1146   : > { %v3879_v27 = vpop.permute.xlu0 %3878  ;;  %v3931_v63 = vpop.permute.xlu1 %3930 }
0x1147   : > { %v3957_v41 = vsel %vm678_vm9, %v3879_v27, %v7865_v32  ;;  %v3956_v26 = vsel %vm678_vm9, %v3877_v62, %v3879_v27  ;;  %v3974_v5 = vsel %vm678_vm9, %v3931_v63, %v3933_v61 }
0x1148   : > { %4036 = vmatprep.subr.mxu0 %v3957_v41  ;;  %4136 = vmatprep.subr.mxu1 %v3957_v41 }
0x1149   : > { %4037 = vmatpush1.msra.mxu0 %v3956_v26  ;;  %4137 = vmatpush1.msra.mxu1 %v3956_v26 }
0x114a   : > { %4038 = vmatprep.subr.mxu0 %v3955_v14  ;;  %4138 = vmatprep.subr.mxu1 %v3955_v14  ;;  %v3867_v51 = vpop.permute.xlu0 %3866 }
0x114b   : > { %4039 = vmatpush1.msra.mxu0 %v3954_v48  ;;  %4139 = vmatpush1.msra.mxu1 %v3954_v48  ;;  %v3953_v32 = vsel %vm678_vm9, %v3867_v51, %v7867_v55  ;;  %v3952_v58 = vsel %vm678_vm9, %v7873_v13, %v3867_v51  ;;  %v3949_v55 = vsel %vm678_vm9, %v7875_v34, %v7861_v36 }
0x114c   : > { %4040 = vmatprep.subr.mxu0 %v3953_v32  ;;  %4140 = vmatprep.subr.mxu1 %v3953_v32  ;;  %v3945_v36 = vsel %vm678_vm9, %v3843_v6, %v3845_v30 }
0x114d   : > { %4041 = vmatpush1.msra.mxu0 %v3952_v58  ;;  %4141 = vmatpush1.msra.mxu1 %v3952_v58 }
0x114e   : > { %4042 = vmatprep.subr.mxu0 %v3951_v2  ;;  %4142 = vmatprep.subr.mxu1 %v3951_v2  ;;  %v3839_v38 = vpop.permute.xlu0 %3838 }
0x114f   : > { %4043 = vmatpush1.msra.mxu0 %v3950_v60  ;;  %4143 = vmatpush1.msra.mxu1 %v3950_v60  ;;  %v3943_v62 = vsel %vm678_vm9, %v3839_v38, %v3841_v31  ;;  %v3942_v28 = vsel %vm678_vm9, %v5715_v7, %v3839_v38 }
0x1150   : > { %4044 = vmatprep.subr.mxu0 %v3949_v55  ;;  %4144 = vmatprep.subr.mxu1 %v3949_v55 }
0x1151   : > { %4045 = vmatpush1.msra.mxu0 %v3948_v3  ;;  %4145 = vmatpush1.msra.mxu1 %v3948_v3 }
0x1152   : > { %4046 = vmatprep.subr.mxu0 %v3947_v10  ;;  %4146 = vmatprep.subr.mxu1 %v3947_v10  ;;  %v3937_v25 = vpop.permute.xlu0 %3936 }
0x1153   : > { %4047 = vmatpush1.msra.mxu0 %v3946_v29  ;;  %4147 = vmatpush1.msra.mxu1 %v3946_v29  ;;  %v4107_v17 = vpop.permute.xlu1 %4106 }
0x1154   : > { %4048 = vmatprep.subr.mxu0 %v3945_v36  ;;  %4148 = vmatprep.subr.mxu1 %v3945_v36 }
0x1155   : > { %4049 = vmatpush1.msra.mxu0 %v3944_v53  ;;  %4149 = vmatpush1.msra.mxu1 %v3944_v53 }
0x1156   : > { %4050 = vmatprep.subr.mxu0 %v3943_v62  ;;  %4150 = vmatprep.subr.mxu1 %v3943_v62  ;;  %v3939_v13 = vpop.permute.xlu0 %3938 }
0x1157   : > { %4051 = vmatpush1.msra.mxu0 %v3942_v28  ;;  %4151 = vmatpush1.msra.mxu1 %v3942_v28  ;;  %v3977_v34 = vsel %vm678_vm9, %v3939_v13, %v3941_v1  ;;  %v3976_v40 = vsel %vm678_vm9, %v3937_v25, %v3939_v13 }
0x1158   : > { %4080 = vmatprep.subr.mxu0 %v3977_v34  ;;  %4180 = vmatprep.subr.mxu1 %v3977_v34 }
0x1159   : > { %4081 = vmatpush2.msra.mxu0 %v3976_v40  ;;  %4181 = vmatpush2.msra.mxu1 %v3976_v40 }
0x115a   : > { %v3935_v24 = vpop.permute.xlu0 %3934 }
0x115b   : > { %v3975_v12 = vsel %vm678_vm9, %v3933_v61, %v3935_v24  ;;  %v3832_v24 = vpop.permute.xlu1 %3831 }
0x115c   : > { %4082 = vmatprep.subr.mxu0 %v3975_v12  ;;  %4182 = vmatprep.subr.mxu1 %v3975_v12 }
0x115d   : > { %4083 = vmatpush2.msra.mxu0 %v3974_v5  ;;  %4183 = vmatpush2.msra.mxu1 %v3974_v5 }
0x115e   : > { %4085 = vmatmul.mubr.f32.vlgmr.msra.gmra.mxu0 %v5195_v9  ;;  %4185 = vmatmul.mubr.f32.vlgmr.msra.gmra.mxu1 %v5201_v37 }
0x115f   : > { %5200 = vmatprep.mubr.msk.f32.mxu0 %vm1015_vm1, %v5198_v22  ;;  %5206 = vmatprep.mubr.msk.f32.mxu1 %vm1015_vm1, %v5204_v56 }
0x1162   : > { %4091 = vmatmul.mubr.f32.gmra.mxu0 %v5197_v33  ;;  %4191 = vmatmul.mubr.f32.gmra.mxu1 %v5203_v0 }
0x1167   : > { %v7959_v44 = vpop.permute.xlu0 %4111 }
0x116b   : > { %v3827_v11 = vpop.permute.xlu0 %3826 }
0x121e   : > { %v4086_v8 = vpop.f32.mrf.mxu0  ;;  %v4186_v35 = vpop.f32.mrf.mxu1 }
0x121f   : > { %v4187_v30 = vadd.f32 %v4186_v35, %v4107_v17  ;;  %v7964_v31 = vadd.f32 %v4086_v8, %v3827_v11 }
0x1220   : > { %v4188_v6 = vpop.f32.mrf.mxu1  ;;  %v4088_v27 = vpop.f32.mrf.mxu0 }
0x1221   : > { %v7961_v42 = vadd.f32 %v4188_v6, %v4107_v17  ;;  %4716 = vrot.lane.b32.xlu1 %v4187_v30, %s5278_s8  ;;  %v7968_v41 = vadd.f32 %v4088_v27, %v3827_v11  ;;  %v4618_v26 = vmul.f32 %v5400_v43, %v4187_v30  ;;  %v4602_v14 = vmul.f32 %v4187_v30, %v5629_v52 }
0x1222   : > { %v4214_v51 = vmul.f32 %v5400_v43, %v7964_v31  ;;  %v4614_v32 = vmul.f32 %v5413_v47, %v4187_v30  ;;  %v4210_v61 = vmul.f32 %v5413_v47, %v7964_v31  ;;  %v4610_v38 = vmul.f32 %v4187_v30, %v5423_v49  ;;  %v4192_v13 = vpop.f32.mrf.mxu1  ;;  %v4092_v40 = vpop.f32.mrf.mxu0 }
0x1223   : > { %4718 = vrot.lane.b32.xlu0 %v7961_v42, %s5278_s8  ;;  %v4619_v48 = vmul.f32 %v7961_v42, %v5446_v57  ;;  %v4215_v58 = vmul.f32 %v7968_v41, %v5446_v57  ;;  %v4615_v2 = vmul.f32 %v7961_v42, %v5452_v59  ;;  %v4211_v60 = vmul.f32 %v7968_v41, %v5452_v59 }
0x1224   : > { %v4206_v55 = vmul.f32 %v7964_v31, %v5423_v49  ;;  %v4611_v3 = vmul.f32 %v5409_v45, %v7961_v42  ;;  %v4606_v10 = vmul.f32 %v4187_v30, %v5426_v50  ;;  %v4207_v29 = vmul.f32 %v5409_v45, %v7968_v41  ;;  %v4194_v12 = vpop.f32.mrf.mxu1  ;;  %v4094_v5 = vpop.f32.mrf.mxu0 }
0x1225   : > { %4312 = vrot.lane.b32.xlu1 %v7964_v31, %s5278_s8  ;;  %v4202_v25 = vmul.f32 %v7964_v31, %v5426_v50  ;;  %v4607_v1 = vmul.f32 %v5411_v46, %v7961_v42  ;;  %v4622_v36 = vmul.f32 %v5435_v54, %v4187_v30  ;;  %v4203_v53 = vmul.f32 %v5411_v46, %v7968_v41 }
0x1226   : > { %v4218_v62 = vmul.f32 %v5435_v54, %v7964_v31  ;;  %v4623_v28 = vmul.f32 %v7961_v42, %v5476_v4  ;;  %v8042_v34 = vadd.f32 %v4192_v13, %v7959_v44  ;;  %v4219_v63 = vmul.f32 %v7968_v41, %v5476_v4 }
0x1227   : > { %4314 = vrot.lane.b32.xlu0 %v7968_v41, %s5278_s8  ;;  %v8049_v9 = vadd.f32 %v4092_v40, %v3832_v24  ;;  %v8053_v37 = vadd.f32 %v4194_v12, %v7959_v44  ;;  %v8059_v22 = vadd.f32 %v4094_v5, %v3832_v24  ;;  %v4603_v56 = vmul.f32 %v5616_v39, %v7961_v42 }
0x1228   : > { %v4620_v33 = vmul.f32 %v5400_v43, %v8042_v34  ;;  %v4616_v8 = vmul.f32 %v5413_v47, %v8042_v34 }
0x1229   : > { %4674 = vrot.lane.b32.xlu1 %v4187_v30, %s5283_s29  ;;  %v4621_v0 = vmul.f32 %v8053_v37, %v5446_v57  ;;  %v4216_v44 = vmul.f32 %v5400_v43, %v8049_v9  ;;  %v4217_v17 = vmul.f32 %v8059_v22, %v5446_v57  ;;  %v4617_v35 = vmul.f32 %v8053_v37, %v5452_v59 }
0x122a   : > { %v4212_v43 = vmul.f32 %v5413_v47, %v8049_v9  ;;  %v4213_v57 = vmul.f32 %v8059_v22, %v5452_v59  ;;  %v4613_v11 = vmul.f32 %v5409_v45, %v8053_v37  ;;  %v4208_v47 = vmul.f32 %v8049_v9, %v5423_v49 }
0x122b   : > { %4676 = vrot.lane.b32.xlu0 %v7961_v42, %s5283_s29  ;;  %v4209_v59 = vmul.f32 %v5409_v45, %v8059_v22  ;;  %v4204_v45 = vmul.f32 %v8049_v9, %v5426_v50 }
0x122d   : > { %4270 = vrot.lane.b32.xlu1 %v7964_v31, %s5283_s29 }
0x122f   : > { %4272 = vrot.lane.b32.xlu0 %v7968_v41, %s5283_s29 }
0x1231   : > { %4630 = vrot.lane.b32.xlu1 %v4187_v30, %s5279_s23  ;;  %v4612_v30 = vmul.f32 %v8042_v34, %v5423_v49 }
0x1233   : > { %4632 = vrot.lane.b32.xlu0 %v7961_v42, %s5279_s23  ;;  %v4608_v42 = vmul.f32 %v8042_v34, %v5426_v50 }
0x1235   : > { %4226 = vrot.lane.b32.xlu1 %v7964_v31, %s5279_s23 }
0x1237   : > { %4228 = vrot.lane.b32.xlu0 %v7968_v41, %s5279_s23 }
0x1239   : > { %4704 = vrot.lane.b32.xlu1 %v4618_v26, %s5287_s13  ;;  %v4609_v26 = vmul.f32 %v5411_v46, %v8053_v37 }
0x123b   : > { %4768 = vrot.lane.b32.xlu0 %v4602_v14, %s5284_s30 }
0x123d   : > { %4300 = vrot.lane.b32.xlu1 %v4214_v51, %s5287_s13  ;;  %v4205_v51 = vmul.f32 %v5411_v46, %v8059_v22 }
0x123f   : > { %4706 = vrot.lane.b32.xlu0 %v4619_v48, %s5287_s13 }
0x1241   : > { %4688 = vrot.lane.b32.xlu1 %v4614_v32, %s5288_s14  ;;  %v4624_v32 = vmul.f32 %v5435_v54, %v8042_v34 }
0x1243   : > { %4302 = vrot.lane.b32.xlu0 %v4215_v58, %s5287_s13 }
0x1245   : > { %4284 = vrot.lane.b32.xlu1 %v4210_v61, %s5288_s14  ;;  %v4625_v61 = vmul.f32 %v8053_v37, %v5476_v4 }
0x1247   : > { %4690 = vrot.lane.b32.xlu0 %v4615_v2, %s5288_s14  ;;  %v4220_v2 = vmul.f32 %v5435_v54, %v8049_v9 }
0x1249   : > { %4662 = vrot.lane.b32.xlu1 %v4610_v38, %s5285_s11  ;;  %v4221_v38 = vmul.f32 %v8059_v22, %v5476_v4 }
0x124b   : > { %4286 = vrot.lane.b32.xlu0 %v4211_v60, %s5288_s14 }
0x124d   : > { %4258 = vrot.lane.b32.xlu1 %v4206_v55, %s5285_s11  ;;  %v4604_v55 = vmul.f32 %v8042_v34, %v5629_v52 }
0x124f   : > { %4664 = vrot.lane.b32.xlu0 %v4611_v3, %s5285_s11 }
0x1251   : > { %4646 = vrot.lane.b32.xlu1 %v4606_v10, %s5286_s12  ;;  %v4605_v10 = vmul.f32 %v5616_v39, %v8053_v37 }
0x1253   : > { %4260 = vrot.lane.b32.xlu0 %v4207_v29, %s5285_s11  ;;  %v4200_v29 = vmul.f32 %v8049_v9, %v5629_v52 }
0x1255   : > { %4242 = vrot.lane.b32.xlu1 %v4202_v25, %s5286_s12  ;;  %v4201_v25 = vmul.f32 %v5616_v39, %v8059_v22 }
0x1257   : > { %4648 = vrot.lane.b32.xlu0 %v4607_v1, %s5286_s12 }
0x1259   : > { %4732 = vrot.lane.b32.xlu1 %v4622_v36, %s5289_s17 }
0x125b   : > { %4244 = vrot.lane.b32.xlu0 %v4203_v53, %s5286_s12 }
0x125d   : > { %4328 = vrot.lane.b32.xlu1 %v4218_v62, %s5289_s17 }
0x125f   : > { %4734 = vrot.lane.b32.xlu0 %v4623_v28, %s5289_s17 }
0x1261   : > { %4720 = vrot.lane.b32.xlu1 %v8042_v34, %s5278_s8 }
0x1263   : > { %4330 = vrot.lane.b32.xlu0 %v4219_v63, %s5289_s17 }
0x1265   : > { %4316 = vrot.lane.b32.xlu1 %v8049_v9, %s5278_s8 }
0x1267   : > { %4722 = vrot.lane.b32.xlu0 %v8053_v37, %s5278_s8 }
0x1269   : > { %4678 = vrot.lane.b32.xlu1 %v8042_v34, %s5283_s29 }
0x126b   : > { %4318 = vrot.lane.b32.xlu0 %v8059_v22, %s5278_s8 }
0x126d   : > { %4274 = vrot.lane.b32.xlu1 %v8049_v9, %s5283_s29 }
0x126f   : > { %4680 = vrot.lane.b32.xlu0 %v8053_v37, %s5283_s29 }
0x1271   : > { %4634 = vrot.lane.b32.xlu1 %v8042_v34, %s5279_s23 }
0x1273   : > { %4276 = vrot.lane.b32.xlu0 %v8059_v22, %s5283_s29 }
0x1275   : > { %4230 = vrot.lane.b32.xlu1 %v8049_v9, %s5279_s23 }
0x1277   : > { %4636 = vrot.lane.b32.xlu0 %v8053_v37, %s5279_s23 }
0x1279   : > { %4770 = vrot.lane.b32.xlu1 %v4603_v56, %s5284_s30 }
0x127b   : > { %4232 = vrot.lane.b32.xlu0 %v8059_v22, %s5279_s23 }
0x127d   : > { %4708 = vrot.lane.b32.xlu1 %v4620_v33, %s5287_s13 }
0x127f   : > { %4710 = vrot.lane.b32.xlu0 %v4621_v0, %s5287_s13 }
0x1281   : > { %4304 = vrot.lane.b32.xlu1 %v4216_v44, %s5287_s13 }
0x1283   : > { %4306 = vrot.lane.b32.xlu0 %v4217_v17, %s5287_s13 }
0x1285   : > { %4692 = vrot.lane.b32.xlu1 %v4616_v8, %s5288_s14 }
0x1287   : > { %4694 = vrot.lane.b32.xlu0 %v4617_v35, %s5288_s14 }
0x1289   : > { %4288 = vrot.lane.b32.xlu1 %v4212_v43, %s5288_s14 }
0x128b   : > { %4290 = vrot.lane.b32.xlu0 %v4213_v57, %s5288_s14  ;;  %s5212_s14 = sshll.u32 %s8935_s16, 3 }
0x128c   : > { %s368_s25 = scalar_lea.vmem %s8905_s9, %s5212_s14 }
0x128d   : > { %4666 = vrot.lane.b32.xlu1 %v4612_v30, %s5285_s11 }
0x128f   : > { %4668 = vrot.lane.b32.xlu0 %v4613_v11, %s5285_s11 }
0x1291   : > { %4262 = vrot.lane.b32.xlu1 %v4208_v47, %s5285_s11 }
0x1293   : > { %v8117_v6 = vpop.permute.xlu1 %4716  ;;  %4264 = vrot.lane.b32.xlu0 %v4209_v59, %s5285_s11 }
0x1295   : > { %4650 = vrot.lane.b32.xlu1 %v4608_v42, %s5286_s12  ;;  %v8123_v27 = vpop.permute.xlu0 %4718 }
0x1296   : > { %v4725_v5 = vsel %vm807_vm10, %v8123_v27, %v5387_v23  ;;  %v4724_v59 = vsel %vm807_vm10, %v8117_v6, %v8123_v27 }
0x1297   : > { %4652 = vrot.lane.b32.xlu0 %v4609_v26, %s5286_s12  ;;  %v4313_v49 = vpop.permute.xlu1 %4312 }
0x1299   : > { %4246 = vrot.lane.b32.xlu1 %v4204_v45, %s5286_s12  ;;  %v8131_v14 = vpop.permute.xlu0 %4314 }
0x129a   : > { %v4320_v33 = vsel %vm807_vm10, %v4313_v49, %v8131_v14  ;;  %v4321_v45 = vsel %vm807_vm10, %v8131_v14, %v5387_v23 }
0x129b   : > { %4248 = vrot.lane.b32.xlu0 %v4205_v51, %s5286_s12  ;;  %v4675_v48 = vpop.permute.xlu1 %4674 }
0x129d   : > { %4736 = vrot.lane.b32.xlu1 %v4624_v32, %s5289_s17  ;;  %v4677_v58 = vpop.permute.xlu0 %4676 }
0x129e   : > { %v4682_v17 = vsel %vm606_vm11, %v4675_v48, %v4677_v58 }
0x129f   : > { %4738 = vrot.lane.b32.xlu0 %v4625_v61, %s5289_s17  ;;  %v4271_v50 = vpop.permute.xlu1 %4270 }
0x12a1   : > { %4332 = vrot.lane.b32.xlu1 %v4220_v2, %s5289_s17  ;;  %v4273_v46 = vpop.permute.xlu0 %4272 }
0x12a2   : > { %v4278_v43 = vsel %vm606_vm11, %v4271_v50, %v4273_v46 }
0x12a3   : > { %4334 = vrot.lane.b32.xlu0 %v4221_v38, %s5289_s17  ;;  %v4631_v60 = vpop.permute.xlu1 %4630 }
0x12a4   : > { %v4638_v34 = vsel %vm636_vm5, %v5513_v15, %v4631_v60 }
0x12a5   : > { %4772 = vrot.lane.b32.xlu1 %v4604_v55, %s5284_s30  ;;  %v4633_v3 = vpop.permute.xlu0 %4632 }
0x12a6   : > { %v4639_v26 = vsel %vm636_vm5, %v4631_v60, %v4633_v3 }
0x12a7   : > { %4774 = vrot.lane.b32.xlu0 %v4605_v10, %s5284_s30  ;;  %v8154_v54 = vpop.permute.xlu1 %4226 }
0x12a8   : > { %v4234_v24 = vsel %vm636_vm5, %v5513_v15, %v8154_v54 }
0x12a9   : > { %4356 = vrot.lane.b32.xlu1 %v4200_v29, %s5284_s30  ;;  %v8159_v4 = vpop.permute.xlu0 %4228 }
0x12aa   : > { %v4235_v2 = vsel %vm636_vm5, %v8154_v54, %v8159_v4 }
0x12ab   : > { %4358 = vrot.lane.b32.xlu0 %v4201_v25, %s5284_s30  ;;  %v8164_v1 = vpop.permute.xlu1 %4704 }
0x12ad   : > { %4432 = vrot.lane.b32.xlu1 %v4313_v49, %s5284_s30  ;;  %v8167_v36 = vpop.permute.xlu0 %4768 }
0x12af   : > { %4848 = vrot.lane.b32.xlu0 %v8117_v6, %s5284_s30  ;;  %v8171_v53 = vpop.permute.xlu1 %4300 }
0x12b1   : > { %4396 = vrot.lane.b32.xlu1 %v4271_v50, %s5284_s30  ;;  %v8174_v62 = vpop.permute.xlu0 %4706 }
0x12b2   : > { %v4712_v55 = vsel %vm792_vm14, %v8164_v1, %v8174_v62 }
0x12b3   : > { %4812 = vrot.lane.b32.xlu0 %v4675_v48, %s5284_s30  ;;  %v8177_v13 = vpop.permute.xlu1 %4688 }
0x12b5   : > { %4420 = vrot.lane.b32.xlu1 %v8171_v53, %s5284_s30  ;;  %v8181_v28 = vpop.permute.xlu0 %4302 }
0x12b6   : > { %v4308_v54 = vsel %vm792_vm14, %v8171_v53, %v8181_v28 }
0x12b7   : > { %4776 = vrot.lane.b32.xlu0 %v4638_v34, %s5284_s30  ;;  %v8186_v40 = vpop.permute.xlu1 %4284 }
0x12b9   : > { %4408 = vrot.lane.b32.xlu1 %v8186_v40, %s5284_s30  ;;  %v8190_v63 = vpop.permute.xlu0 %4690 }
0x12ba   : > { %v4696_v25 = vsel %vm772_vm15, %v8177_v13, %v8190_v63 }
0x12bb   : > { %4360 = vrot.lane.b32.xlu0 %v4234_v24, %s5284_s30  ;;  %v8196_v12 = vpop.permute.xlu1 %4662 }
0x12bc   : > { %v4670_v48 = vsel %vm742_vm12, %v5515_v16, %v8196_v12 }
0x12bd   : > { %4364 = vrot.lane.b32.xlu1 %v8159_v4, %s5284_s30  ;;  %v8200_v9 = vpop.permute.xlu0 %4286 }
0x12be   : > { %v4292_v53 = vsel %vm772_vm15, %v8186_v40, %v8200_v9  ;;  %v4713_v40 = vsel %vm792_vm14, %v8174_v62, %v5519_v18 }
0x12bf   : > { %4836 = vrot.lane.b32.xlu0 %v8164_v1, %s5284_s30  ;;  %v8204_v37 = vpop.permute.xlu1 %4258 }
0x12c0   : > { %v4266_v11 = vsel %vm742_vm12, %v5515_v16, %v8204_v37 }
0x12c1   : > { %4852 = vrot.lane.b32.xlu1 %v4725_v5, %s5284_s30  ;;  %v8210_v22 = vpop.permute.xlu0 %4664 }
0x12c3   : > { %4824 = vrot.lane.b32.xlu0 %v8177_v13, %s5284_s30  ;;  %v8214_v56 = vpop.permute.xlu1 %4646  ;;  %v4671_v13 = vsel %vm742_vm12, %v8196_v12, %v8210_v22  ;;  %v4309_v12 = vsel %vm792_vm14, %v8181_v28, %v5519_v18 }
0x12c5   : > { %4434 = vrot.lane.b32.xlu1 %v4320_v33, %s5284_s30  ;;  %v8219_v0 = vpop.permute.xlu0 %4260 }
0x12c7   : > { %v8221_v44 = vpop.permute.xlu1 %4242  ;;  %4816 = vrot.lane.b32.xlu0 %v4677_v58, %s5284_s30  ;;  %v4654_v58 = vsel %vm722_vm13, %v5521_v19, %v8214_v56 }
0x12c8   : > { %v4250_v6 = vsel %vm722_vm13, %v5521_v19, %v8221_v44 }
0x12c9   : > { %4814 = vrot.lane.b32.xlu1 %v4682_v17, %s5284_s30  ;;  %v8226_v8 = vpop.permute.xlu0 %4648 }
0x12ca   : > { %v4655_v62 = vsel %vm722_vm13, %v8214_v56, %v8226_v8  ;;  %v4293_v56 = vsel %vm772_vm15, %v8200_v9, %v5525_v21 }
0x12cb   : > { %v8228_v35 = vpop.permute.xlu1 %4732  ;;  %4400 = vrot.lane.b32.xlu0 %v4273_v46, %s5284_s30 }
0x12cd   : > { %4398 = vrot.lane.b32.xlu1 %v4278_v43, %s5284_s30  ;;  %v8233_v57 = vpop.permute.xlu0 %4244  ;;  %v4267_v43 = vsel %vm742_vm12, %v8204_v37, %v8219_v0  ;;  %v4697_v37 = vsel %vm772_vm15, %v8190_v63, %v5525_v21 }
0x12ce   : > { %v4251_v28 = vsel %vm722_vm13, %v8221_v44, %v8233_v57 }
0x12cf   : > { %v8235_v30 = vpop.permute.xlu1 %4328  ;;  %4780 = vrot.lane.b32.xlu0 %v4633_v3, %s5284_s30 }
0x12d1   : > { %4384 = vrot.lane.b32.xlu1 %v4266_v11, %s5284_s30  ;;  %v8242_v47 = vpop.permute.xlu0 %4734 }
0x12d3   : > { %v8247_v42 = vpop.permute.xlu1 %4720  ;;  %4850 = vrot.lane.b32.xlu0 %v4724_v59, %s5284_s30 }
0x12d5   : > { %4778 = vrot.lane.b32.xlu1 %v4639_v26, %s5284_s30  ;;  %v8252_v49 = vpop.permute.xlu0 %4330 }
0x12d7   : > { %v8257_v51 = vpop.permute.xlu1 %4316  ;;  %4436 = vrot.lane.b32.xlu0 %v4321_v45, %s5284_s30 }
0x12d9   : > { %4372 = vrot.lane.b32.xlu1 %v4250_v6, %s5284_s30  ;;  %v8264_v27 = vpop.permute.xlu0 %4722 }
0x12db   : > { %v8269_v32 = vpop.permute.xlu1 %4678  ;;  %4800 = vrot.lane.b32.xlu0 %v4670_v48, %s5284_s30 }
0x12dd   : > { %4854 = vrot.lane.b32.xlu1 %v8247_v42, %s5284_s30  ;;  %v8274_v14 = vpop.permute.xlu0 %4318 }
0x12df   : > { %v8279_v61 = vpop.permute.xlu1 %4274  ;;  %4788 = vrot.lane.b32.xlu0 %v4654_v58, %s5284_s30 }
0x12e1   : > { %4438 = vrot.lane.b32.xlu1 %v8257_v51, %s5284_s30  ;;  %v8284_v50 = vpop.permute.xlu0 %4680 }
0x12e3   : > { %v8289_v46 = vpop.permute.xlu1 %4634  ;;  %4362 = vrot.lane.b32.xlu0 %v4235_v2, %s5284_s30 }
0x12e4   : > { %v4640_v44 = vsel %vm636_vm5, %v5513_v15, %v8289_v46 }
0x12e5   : > { %4402 = vrot.lane.b32.xlu1 %v8279_v61, %s5284_s30  ;;  %v8294_v38 = vpop.permute.xlu0 %4276 }
0x12e7   : > { %v8296_v60 = vpop.permute.xlu1 %4230  ;;  %4818 = vrot.lane.b32.xlu0 %v8269_v32, %s5284_s30 }
0x12e8   : > { %v4236_v63 = vsel %vm636_vm5, %v5513_v15, %v8296_v60 }
0x12e9   : > { %4838 = vrot.lane.b32.xlu1 %v4712_v55, %s5284_s30  ;;  %v8304_v3 = vpop.permute.xlu0 %4636  ;;  %v4726_v55 = vsel %vm807_vm10, %v8247_v42, %v8264_v27  ;;  %v4683_v42 = vsel %vm606_vm11, %v8269_v32, %v8284_v50 }
0x12eb   : > { %v8306_v10 = vpop.permute.xlu1 %4770  ;;  %4804 = vrot.lane.b32.xlu0 %v8210_v22, %s5284_s30 }
0x12ed   : > { %4422 = vrot.lane.b32.xlu1 %v4308_v54, %s5284_s30  ;;  %v8314_v29 = vpop.permute.xlu0 %4232 }
0x12ef   : > { %v8316_v4 = vpop.permute.xlu1 %4708  ;;  %4388 = vrot.lane.b32.xlu0 %v8219_v0, %s5284_s30 }
0x12f1   : > { %4826 = vrot.lane.b32.xlu1 %v4696_v25, %s5284_s30  ;;  %v8324_v1 = vpop.permute.xlu0 %4710 }
0x12f3   : > { %v8326_v34 = vpop.permute.xlu1 %4304  ;;  %4792 = vrot.lane.b32.xlu0 %v8226_v8, %s5284_s30 }
0x12f5   : > { %4410 = vrot.lane.b32.xlu1 %v4292_v53, %s5284_s30  ;;  %v8334_v24 = vpop.permute.xlu0 %4306  ;;  %v4322_v53 = vsel %vm807_vm10, %v8257_v51, %v8274_v14  ;;  %v4279_v51 = vsel %vm606_vm11, %v8279_v61, %v8294_v38  ;;  %v4323_v61 = vsel %vm807_vm10, %v8274_v14, %v5387_v23 }
0x12f7   : > { %v8336_v5 = vpop.permute.xlu1 %4692  ;;  %4376 = vrot.lane.b32.xlu0 %v8233_v57, %s5284_s30 }
0x12f9   : > { %4802 = vrot.lane.b32.xlu1 %v4671_v13, %s5284_s30  ;;  %v8344_v33 = vpop.permute.xlu0 %4694 }
0x12fb   : > { %v8349_v17 = vpop.permute.xlu1 %4288  ;;  %4840 = vrot.lane.b32.xlu0 %v4713_v40, %s5284_s30 }
0x12fd   : > { %4386 = vrot.lane.b32.xlu1 %v4267_v43, %s5284_s30  ;;  %v8356_v11 = vpop.permute.xlu0 %4290 }
0x12ff   : > { %v8361_v22 = vpop.permute.xlu1 %4666  ;;  %4424 = vrot.lane.b32.xlu0 %v4309_v12, %s5284_s30 }
0x1301   : > { %4790 = vrot.lane.b32.xlu1 %v4655_v62, %s5284_s30  ;;  %v8368_v59 = vpop.permute.xlu0 %4668 }
0x1303   : > { %v8373_v0 = vpop.permute.xlu1 %4262  ;;  %4828 = vrot.lane.b32.xlu0 %v4697_v37, %s5284_s30  ;;  %v4727_v37 = vsel %vm807_vm10, %v8264_v27, %v5387_v23  ;;  %v4641_v27 = vsel %vm636_vm5, %v8289_v46, %v8304_v3 }
0x1305   : > { %4374 = vrot.lane.b32.xlu1 %v4251_v28, %s5284_s30  ;;  %v8380_v26 = vpop.permute.xlu0 %4264 }
0x1307   : > { %v8385_v8 = vpop.permute.xlu1 %4650  ;;  %4412 = vrot.lane.b32.xlu0 %v4293_v56, %s5284_s30 }
0x1308   : > { %v4656_v46 = vsel %vm722_vm13, %v5521_v19, %v8385_v8 }
0x1309   : > { %4366 = vrot.lane.b32.xlu1 %v4236_v63, %s5284_s30  ;;  %v8392_v45 = vpop.permute.xlu0 %4652  ;;  %v4672_v63 = vsel %vm742_vm12, %v5515_v16, %v8361_v22 }
0x130b   : > { %v8397_v57 = vpop.permute.xlu1 %4246  ;;  %4782 = vrot.lane.b32.xlu0 %v4640_v44, %s5284_s30 }
0x130c   : > { %v4252_v23 = vsel %vm722_vm13, %v5521_v19, %v8397_v57  ;;  %v4714_v19 = vsel %vm792_vm14, %v8316_v4, %v8324_v1 }
0x130d   : > { %4426 = vrot.lane.b32.xlu1 %v8326_v34, %s5284_s30  ;;  %v8402_v9 = vpop.permute.xlu0 %4248 }
0x130f   : > { %v8404_v6 = vpop.permute.xlu1 %4736  ;;  %4842 = vrot.lane.b32.xlu0 %v8316_v4, %s5284_s30 }
0x1311   : > { %4414 = vrot.lane.b32.xlu1 %v8349_v17, %s5284_s30  ;;  %v8410_v48 = vpop.permute.xlu0 %4738 }
0x1313   : > { %v8412_v15 = vpop.permute.xlu1 %4332  ;;  %4830 = vrot.lane.b32.xlu0 %v8336_v5, %s5284_s30 }
0x1315   : > { %4866 = vrot.lane.b32.xlu1 %v8404_v6, %s5284_s30  ;;  %v8418_v58 = vpop.permute.xlu0 %4334 }
0x1317   : > { %v8420_v2 = vpop.permute.xlu1 %4772  ;;  %4822 = vrot.lane.b32.xlu0 %v8284_v50, %s5284_s30  ;;  %v4268_v50 = vsel %vm742_vm12, %v5515_v16, %v8373_v0  ;;  %v4237_v16 = vsel %vm636_vm5, %v8296_v60, %v8314_v29 }
0x1319   : > { %4856 = vrot.lane.b32.xlu1 %v4726_v55, %s5284_s30  ;;  %v8428_v54 = vpop.permute.xlu0 %4774 }
0x131b   : > { %v8430_v25 = vpop.permute.xlu1 %4356  ;;  %4406 = vrot.lane.b32.xlu0 %v8294_v38, %s5284_s30 }
0x131c   : > { %8918 = vst [vmem:[#allocation3_spill] sm:$0xff] %v8430_v25 }
0x131d   : > { %4440 = vrot.lane.b32.xlu1 %v4322_v53, %s5284_s30  ;;  %v8438_v13 = vpop.permute.xlu0 %4358 }
0x131e   : > { %8919 = vst [vmem:[#allocation4_spill] sm:$0xff] %v8438_v13 }
0x131f   : > { %v8440_v40 = vpop.permute.xlu1 %4432  ;;  %4786 = vrot.lane.b32.xlu0 %v8304_v3, %s5284_s30 }
0x1321   : > { %4820 = vrot.lane.b32.xlu1 %v4683_v42, %s5284_s30  ;;  %v8448_v43 = vpop.permute.xlu0 %4848 }
0x1323   : > { %v4397_v12 = vpop.permute.xlu1 %4396  ;;  %4370 = vrot.lane.b32.xlu0 %v8314_v29, %s5284_s30  ;;  %v4310_v29 = vsel %vm792_vm14, %v8326_v34, %v8334_v24 }
0x1325   : > { %4404 = vrot.lane.b32.xlu1 %v4279_v51, %s5284_s30  ;;  %v4813_v62 = vpop.permute.xlu0 %4812 }
0x1327   : > { %v8459_v32 = vpop.permute.xlu1 %4420  ;;  %4858 = vrot.lane.b32.xlu0 %v4727_v37, %s5284_s30 }
0x1329   : > { %4390 = vrot.lane.b32.xlu1 %v4268_v50, %s5284_s30  ;;  %v4777_v28 = vpop.permute.xlu0 %4776 }
0x132b   : > { %v8469_v38 = vpop.permute.xlu1 %4408  ;;  %4442 = vrot.lane.b32.xlu0 %v4323_v61, %s5284_s30 }
0x132d   : > { %4784 = vrot.lane.b32.xlu1 %v4641_v27, %s5284_s30  ;;  %v8476_v56 = vpop.permute.xlu0 %4360 }
0x132f   : > { %v8481_v44 = vpop.permute.xlu1 %4364  ;;  %4806 = vrot.lane.b32.xlu0 %v4672_v63, %s5284_s30 }
0x1331   : > { %4378 = vrot.lane.b32.xlu1 %v4252_v23, %s5284_s30  ;;  %v8488_v14 = vpop.permute.xlu0 %4836 }
0x1333   : > { %v4853_v3 = vpop.permute.xlu1 %4852  ;;  %4794 = vrot.lane.b32.xlu0 %v4656_v46, %s5284_s30 }
0x1335   : > { %4368 = vrot.lane.b32.xlu1 %v4237_v16, %s5284_s30  ;;  %v8498_v55 = vpop.permute.xlu0 %4824 }
0x1337   : > { %v8500_v53 = vpop.permute.xlu1 %4434  ;;  %4810 = vrot.lane.b32.xlu0 %v8368_v59, %s5284_s30 }
0x1339   : > { %4844 = vrot.lane.b32.xlu1 %v4714_v19, %s5284_s30  ;;  %v4817_v42 = vpop.permute.xlu0 %4816  ;;  %v4199_v19 = vmul.f32 %v5616_v39, %v7968_v41  ;;  %v4741_v39 = vsel %vm827_vm0, %v8242_v47, %v5523_v20 }
0x133b   : > { %v4815_v51 = vpop.permute.xlu1 %4814  ;;  %4394 = vrot.lane.b32.xlu0 %v8380_v26, %s5284_s30 }
0x133c   : > { %v8511_v60 = vsel %vm678_vm9, %v4813_v62, %v4815_v51  ;;  %v8517_v37 = vsel %vm678_vm9, %v4815_v51, %v4817_v42  ;;  %v4698_v62 = vsel %vm772_vm15, %v8336_v5, %v8344_v33  ;;  %v4715_v5 = vsel %vm792_vm14, %v8324_v1, %v5519_v18 }
0x133d   : > { %4428 = vrot.lane.b32.xlu1 %v4310_v29, %s5284_s30  ;;  %v4401_v4 = vpop.permute.xlu0 %4400  ;;  %v4311_v1 = vsel %vm792_vm14, %v8334_v24, %v5519_v18  ;;  %v4673_v24 = vsel %vm742_vm12, %v8361_v22, %v8368_v59  ;;  %v4198_v22 = vmul.f32 %v7964_v31, %v5629_v52  ;;  %v4740_v52 = vsel %vm827_vm0, %v8228_v35, %v8242_v47  ;;  %v8634_v47 = vld [vmem:[%s8900_s4] sm:$0x3] }
0x133e   : > { %8923 = vst [vmem:[#allocation7_spill] sm:$0xff] %v8634_v47 }
0x133f   : > { %v4399_v50 = vpop.permute.xlu1 %4398  ;;  %4798 = vrot.lane.b32.xlu0 %v8392_v45, %s5284_s30 }
0x1340   : > { %v8523_v61 = vsel %vm678_vm9, %v4397_v12, %v4399_v50  ;;  %v8529_v27 = vsel %vm678_vm9, %v4399_v50, %v4401_v4  ;;  %v4294_v12 = vsel %vm772_vm15, %v8349_v17, %v8356_v11  ;;  %v4295_v50 = vsel %vm772_vm15, %v8356_v11, %v5525_v21 }
0x1341   : > { %4832 = vrot.lane.b32.xlu1 %v4698_v62, %s5284_s30  ;;  %v4781_v34 = vpop.permute.xlu0 %4780 }
0x1343   : > { %v8532_v63 = vpop.permute.xlu1 %4384  ;;  %4382 = vrot.lane.b32.xlu0 %v8402_v9, %s5284_s30 }
0x1345   : > { %4416 = vrot.lane.b32.xlu1 %v4294_v12, %s5284_s30  ;;  %v8540_v23 = vpop.permute.xlu0 %4850 }
0x1346   : > { %v8547_v46 = vsel %vm678_vm9, %v8540_v23, %v4853_v3 }
0x1347   : > { %v4779_v16 = vpop.permute.xlu1 %4778  ;;  %4846 = vrot.lane.b32.xlu0 %v4715_v5, %s5284_s30 }
0x1348   : > { %v8553_v17 = vsel %vm678_vm9, %v4777_v28, %v4779_v16  ;;  %v8556_v42 = vsel %vm678_vm9, %v4779_v16, %v4781_v34  ;;  %v4699_v28 = vsel %vm772_vm15, %v8344_v33, %v5525_v21  ;;  %v4269_v33 = vsel %vm742_vm12, %v8373_v0, %v8380_v26 }
0x1349   : > { %4354 = vrot.lane.b32.xlu1 %v4199_v19, %s5284_s30  ;;  %v4437_v51 = vpop.permute.xlu0 %4436  ;;  %v4657_v0 = vsel %vm722_vm13, %v8385_v8, %v8392_v45  ;;  %v8922_v45 = vlaneseq  ;;  %v4336_v16 = vsel %vm827_vm0, %v8235_v30, %v8252_v49 }
0x134a   : > { %v8564_v3 = vsel %vm678_vm9, %v8500_v53, %v4437_v51 }
0x134b   : > { %v8566_v29 = vpop.permute.xlu1 %4372  ;;  %4430 = vrot.lane.b32.xlu0 %v4311_v1, %s5284_s30  ;;  %v8627_v12 = vshrl.u32 %v8922_v45, 7  ;;  %v4742_v1 = vsel %vm827_vm0, %v8404_v6, %v8410_v48  ;;  %v4900_v45 = vsel %vm678_vm9, %v8448_v43, %v8540_v23 }
0x134d   : > { %4864 = vrot.lane.b32.xlu1 %v4741_v39, %s5284_s30  ;;  %v4801_v41 = vpop.permute.xlu0 %4800 }
0x134f   : > { %v8576_v18 = vpop.permute.xlu1 %4854  ;;  %4834 = vrot.lane.b32.xlu0 %v4699_v28, %s5284_s30 }
0x1351   : > { %4808 = vrot.lane.b32.xlu1 %v4673_v24, %s5284_s30  ;;  %v8583_v4 = vpop.permute.xlu0 %4788  ;;  %v4743_v24 = vsel %vm827_vm0, %v8410_v48, %v5523_v20  ;;  %v4339_v48 = vsel %vm827_vm0, %v8418_v58, %v5523_v20 }
0x1353   : > { %v8588_v62 = vpop.permute.xlu1 %4438  ;;  %4418 = vrot.lane.b32.xlu0 %v4295_v50, %s5284_s30  ;;  %v4338_v50 = vsel %vm827_vm0, %v8412_v15, %v8418_v58 }
0x1355   : > { %4392 = vrot.lane.b32.xlu1 %v4269_v33, %s5284_s30  ;;  %v4363_v34 = vpop.permute.xlu0 %4362 }
0x1356   : > { %v8599_v59 = vsel %vm678_vm9, %v8476_v56, %v4363_v34  ;;  %v8603_v21 = vsel %vm678_vm9, %v4363_v34, %v8481_v44  ;;  %v4253_v44 = vsel %vm722_vm13, %v8397_v57, %v8402_v9  ;;  %v4761_v57 = vsub.s32 1, %v8627_v12 }
0x1357   : > { %8920 = vst [vmem:[#allocation5_spill] sm:$0xff] %v8599_v59  ;;  %8921 = vst [vmem:[#allocation6_spill] sm:$0xff] %v8603_v21  ;;  %v8605_v11 = vpop.permute.xlu1 %4402  ;;  %4352 = vrot.lane.b32.xlu0 %v4198_v22, %s5284_s30 }
0x1359   : > { %4796 = vrot.lane.b32.xlu1 %v4657_v0, %s5284_s30  ;;  %v8612_v26 = vpop.permute.xlu0 %4818 }
0x135b   : > { %v4839_v31 = vpop.permute.xlu1 %4838  ;;  %4862 = vrot.lane.b32.xlu0 %v4740_v52, %s5284_s30  ;;  %v4744_v52 = vld [vmem:[#allocation2] sm:$0x1] }
0x135c   : > { %v8620_v56 = vsel %vm678_vm9, %v8488_v14, %v4839_v31 }
0x135d   : > { %4380 = vrot.lane.b32.xlu1 %v4253_v44, %s5284_s30  ;;  %v4805_v8 = vpop.permute.xlu0 %4804 }
0x135f   : > { %v4423_v5 = vpop.permute.xlu1 %4422  ;;  %4860 = vrot.lane.b32.xlu0 %v8228_v35, %s5284_s30  ;;  %v4762_v35 = vrot.slane %v8634_v47, %v4761_v57 }
0x1360   : > { %v8638_v14 = vsel %vm678_vm9, %v8459_v32, %v4423_v5  ;;  %v8651_v32 = vld [vmem:[%s8899_s3] sm:$0x77] }
0x1361   : > { %4450 = vrot.lane.b32.xlu1 %v8412_v15, %s5284_s30  ;;  %v4389_v9 = vpop.permute.xlu0 %4388  ;;  %8924 = vst [vmem:[#allocation8_spill] sm:$0xff] %v8651_v32  ;;  %5208 = vmatprep.mubr.msk.f32.mxu1 %vm1015_vm1, %v4762_v35  ;;  %v4347_v39 = vcombine.high %v8651_v32, %v8651_v32 }
0x1363   : > { %v4827_v19 = vpop.permute.xlu1 %4826  ;;  %4446 = vrot.lane.b32.xlu0 %v4336_v16, %s5284_s30  ;;  %5207 = vmatprep.mubr.msk.f32.mxu0 %vm1015_vm1, %v4347_v39 }
0x1364   : > { %v8655_v51 = vsel %vm678_vm9, %v8498_v55, %v4827_v19 }
0x1365   : > { %4868 = vrot.lane.b32.xlu1 %v4742_v1, %s5284_s30  ;;  %v4793_v28 = vpop.permute.xlu0 %4792 }
0x1367   : > { %v4411_v55 = vpop.permute.xlu1 %4410  ;;  %4870 = vrot.lane.b32.xlu0 %v4743_v24, %s5284_s30 }
0x1368   : > { %v8671_v6 = vsel %vm678_vm9, %v8469_v38, %v4411_v55  ;;  %v4337_v38 = vsel %vm827_vm0, %v8252_v49, %v5523_v20  ;;  %v4340_v20 = vld [vmem:[%s8903_s7] sm:$0x7] }
0x1369   : > { %4452 = vrot.lane.b32.xlu1 %v4338_v50, %s5284_s30  ;;  %v4377_v33 = vpop.permute.xlu0 %4376 }
0x136b   : > { %v4803_v34 = vpop.permute.xlu1 %4802  ;;  %4454 = vrot.lane.b32.xlu0 %v4339_v48, %s5284_s30 }
0x136c   : > { %v8682_v22 = vsel %vm678_vm9, %v4801_v41, %v4803_v34  ;;  %v8688_v0 = vsel %vm678_vm9, %v4803_v34, %v4805_v8 }
0x136d   : > { %4448 = vrot.lane.b32.xlu1 %v4337_v38, %s5284_s30  ;;  %v4841_v15 = vpop.permute.xlu0 %4840 }
0x136e   : > { %v8692_v44 = vsel %vm678_vm9, %v4839_v31, %v4841_v15 }
0x136f   : > { %v4387_v58 = vpop.permute.xlu1 %4386  ;;  %4444 = vrot.lane.b32.xlu0 %v8235_v30, %s5284_s30  ;;  %s5140_s30 = sshll.u32 %s8935_s16, 1 }
0x1370   : > { %v8698_v41 = vsel %vm678_vm9, %v8532_v63, %v4387_v58  ;;  %v8704_v49 = vsel %vm678_vm9, %v4387_v58, %v4389_v9  ;;  %s372_s21 = scalar_lea.vmem %s8906_s10, %s5140_s30 }
0x1371   : > { %4747 = vperm.xlu1 %5267, %v4744_v52   ;;  %v4425_v8 = vpop.permute.xlu0 %4424 }
0x1372   : > { %v8707_v31 = vsel %vm678_vm9, %v4423_v5, %v4425_v8 }
0x1373   : > { %v4791_v57 = vpop.permute.xlu1 %4790  ;;  %4343 = vperm.xlu0 %5266, %v4340_v20  }
0x1374   : > { %v8711_v30 = vsel %vm678_vm9, %v8583_v4, %v4791_v57  ;;  %v8714_v63 = vsel %vm678_vm9, %v4791_v57, %v4793_v28 }
0x1375   : > { %v4829_v16 = vpop.permute.xlu0 %4828 }
0x1376   : > { %v8717_v35 = vsel %vm678_vm9, %v4827_v19, %v4829_v16 }
0x1377   : > { %v4375_v9 = vpop.permute.xlu1 %4374 }
0x1378   : > { %v8721_v1 = vsel %vm678_vm9, %v8566_v29, %v4375_v9  ;;  %v8724_v5 = vsel %vm678_vm9, %v4375_v9, %v4377_v33 }
0x1379   : > { %v4413_v39 = vpop.permute.xlu0 %4412 }
0x137a   : > { %v8727_v24 = vsel %vm678_vm9, %v4411_v55, %v4413_v39 }
0x137b   : > { %v8729_v4 = vpop.permute.xlu1 %4366 }
0x137d   : > { %v8731_v28 = vpop.permute.xlu0 %4782 }
0x137f   : > { %v4427_v50 = vpop.permute.xlu1 %4426 }
0x1381   : > { %v4843_v48 = vpop.permute.xlu0 %4842 }
0x1383   : > { %v8733_v19 = vpop.permute.xlu1 %4414 }
0x1385   : > { %v4831_v34 = vpop.permute.xlu0 %4830 }
0x1387   : > { %v8735_v38 = vpop.permute.xlu1 %4866 }
0x1388   : > { %8925 = vst [vmem:[#allocation9_spill] sm:$0xff] %v8735_v38 }
0x1389   : > { %v8737_v29 = vpop.permute.xlu0 %4822 }
0x138b   : > { %v4857_v15 = vpop.permute.xlu1 %4856 }
0x138c   : > { %v4902_v9 = vsel %vm678_vm9, %v8576_v18, %v4857_v15  ;;  %v4484_v18 = vsel %vm678_vm9, %v8440_v40, %v8500_v53 }
0x138d   : > { %v8739_v33 = vpop.permute.xlu0 %4406 }
0x138f   : > { %v4441_v52 = vpop.permute.xlu1 %4440 }
0x1391   : > { %v8741_v58 = vpop.permute.xlu0 %4786 }
0x1393   : > { %v4821_v55 = vpop.permute.xlu1 %4820 }
0x1395   : > { %v8743_v20 = vpop.permute.xlu0 %4370 }
0x1397   : > { %v8745_v8 = vpop.permute.xlu1 %4404 }
0x1399   : > { %v4859_v57 = vpop.permute.xlu0 %4858 }
0x139a   : > { %v4903_v16 = vsel %vm678_vm9, %v4857_v15, %v4859_v57  ;;  %v4486_v57 = vsel %vm678_vm9, %v8588_v62, %v4441_v52 }
0x139b   : > { %v8750_v39 = vpop.permute.xlu1 %4390  ;;  %4946 = vmatprep.subr.mxu1 %v4903_v16 }
0x139c   : > { %4947 = vmatpush1.msra.mxu1 %v4902_v9 }
0x139d   : > { %4948 = vmatprep.subr.mxu1 %v8547_v46  ;;  %v4443_v32 = vpop.permute.xlu0 %4442 }
0x139e   : > { %4949 = vmatpush1.msra.mxu1 %v4900_v45  ;;  %v4487_v47 = vsel %vm678_vm9, %v4441_v52, %v4443_v32 }
0x139f   : > { %v8759_v38 = vpop.permute.xlu1 %4784  ;;  %4530 = vmatprep.subr.mxu0 %v4487_v47 }
0x13a0   : > { %4531 = vmatpush1.msra.mxu0 %v4486_v57 }
0x13a1   : > { %4532 = vmatprep.subr.mxu0 %v8564_v3  ;;  %v4807_v43 = vpop.permute.xlu0 %4806 }
0x13a2   : > { %4533 = vmatpush1.msra.mxu0 %v4484_v18 }
0x13a3   : > { %v8765_v23 = vpop.permute.xlu1 %4378 }
0x13a5   : > { %v8767_v46 = vpop.permute.xlu0 %4794 }
0x13a7   : > { %v8769_v45 = vpop.permute.xlu1 %4368 }
0x13a9   : > { %v4811_v32 = vpop.permute.xlu0 %4810 }
0x13ab   : > { %v4845_v62 = vpop.permute.xlu1 %4844 }
0x13ac   : > { %v4898_v3 = vsel %vm678_vm9, %v4843_v48, %v4845_v62 }
0x13ad   : > { %v4395_v15 = vpop.permute.xlu0 %4394 }
0x13af   : > { %v4429_v52 = vpop.permute.xlu1 %4428 }
0x13b0   : > { %v4482_v59 = vsel %vm678_vm9, %v4427_v50, %v4429_v52  ;;  %v4474_v50 = vsel %vm678_vm9, %v8605_v11, %v8745_v8 }
0x13b1   : > { %v4799_v47 = vpop.permute.xlu0 %4798 }
0x13b3   : > { %v4833_v16 = vpop.permute.xlu1 %4832 }
0x13b5   : > { %v8771_v9 = vpop.permute.xlu0 %4382 }
0x13b7   : > { %v4417_v57 = vpop.permute.xlu1 %4416 }
0x13b9   : > { %v4847_v40 = vpop.permute.xlu0 %4846 }
0x13ba   : > { %v4899_v53 = vsel %vm678_vm9, %v4845_v62, %v4847_v40 }
0x13bb   : > { %v8775_v18 = vpop.permute.xlu1 %4354  ;;  %4950 = vmatprep.subr.mxu1 %v4899_v53 }
0x13bc   : > { %4951 = vmatpush1.msra.mxu1 %v4898_v3  ;;  %v8932_v3 = vld [vmem:[#allocation8_spill] sm:$0xff] }
0x13bd   : > { %4952 = vmatprep.subr.mxu1 %v8692_v44  ;;  %v4431_v25 = vpop.permute.xlu0 %4430  ;;  %v4894_v44 = vsel %vm678_vm9, %v4831_v34, %v4833_v16 }
0x13be   : > { %4953 = vmatpush1.msra.mxu1 %v8620_v56  ;;  %v4483_v13 = vsel %vm678_vm9, %v4429_v52, %v4431_v25  ;;  %v4890_v56 = vsel %vm678_vm9, %v8612_v26, %v4821_v55  ;;  %v4475_v26 = vsel %vm678_vm9, %v8745_v8, %v8739_v33 }
0x13bf   : > { %v8781_v21 = vpop.permute.xlu1 %4864  ;;  %4534 = vmatprep.subr.mxu0 %v4483_v13 }
0x13c0   : > { %4535 = vmatpush1.msra.mxu0 %v4482_v59  ;;  %v4891_v59 = vsel %vm678_vm9, %v4821_v55, %v8737_v29  ;;  %v8929_v55 = vld [vmem:[#allocation3_spill] sm:$0xff] }
0x13c1   : > { %4536 = vmatprep.subr.mxu0 %v8707_v31  ;;  %v4835_v48 = vpop.permute.xlu0 %4834 }
0x13c2   : > { %4537 = vmatpush1.msra.mxu0 %v8638_v14  ;;  %v4895_v62 = vsel %vm678_vm9, %v4833_v16, %v4835_v48  ;;  %v4478_v14 = vsel %vm678_vm9, %v8733_v19, %v4417_v57 }
0x13c3   : > { %v4809_v40 = vpop.permute.xlu1 %4808  ;;  %4954 = vmatprep.subr.mxu1 %v4895_v62 }
0x13c4   : > { %4955 = vmatpush1.msra.mxu1 %v4894_v44 }
0x13c5   : > { %4956 = vmatprep.subr.mxu1 %v8717_v35  ;;  %v4419_v25 = vpop.permute.xlu0 %4418  ;;  %v4887_v35 = vsel %vm678_vm9, %v4809_v40, %v4811_v32 }
0x13c6   : > { %4957 = vmatpush1.msra.mxu1 %v8655_v51  ;;  %v4479_v13 = vsel %vm678_vm9, %v4417_v57, %v4419_v25 }
0x13c7   : > { %v4393_v31 = vpop.permute.xlu1 %4392  ;;  %4538 = vmatprep.subr.mxu0 %v4479_v13  ;;  %4958 = vmatprep.subr.mxu1 %v4891_v59 }
0x13c8   : > { %4539 = vmatpush1.msra.mxu0 %v4478_v14  ;;  %4959 = vmatpush1.msra.mxu1 %v4890_v56 }
0x13c9   : > { %4540 = vmatprep.subr.mxu0 %v8727_v24  ;;  %4960 = vmatprep.subr.mxu1 %v8517_v37  ;;  %v8798_v51 = vpop.permute.xlu0 %4352  ;;  %v4886_v24 = vsel %vm678_vm9, %v4807_v43, %v4809_v40  ;;  %v4471_v37 = vsel %vm678_vm9, %v4393_v31, %v4395_v15 }
0x13ca   : > { %4541 = vmatpush1.msra.mxu0 %v8671_v6  ;;  %4961 = vmatpush1.msra.mxu1 %v8511_v60  ;;  %v4470_v6 = vsel %vm678_vm9, %v8750_v39, %v4393_v31  ;;  %v8930_v39 = vld [vmem:[#allocation9_spill] sm:$0xff]  ;;  %v4456_v15 = vsel %vm678_vm9, %v5715_v7, %v8798_v51 }
0x13cb   : > { %v4797_v19 = vpop.permute.xlu1 %4796  ;;  %4542 = vmatprep.subr.mxu0 %v4475_v26  ;;  %4962 = vmatprep.subr.mxu1 %v4887_v35 }
0x13cc   : > { %4543 = vmatpush1.msra.mxu0 %v4474_v50  ;;  %4963 = vmatpush1.msra.mxu1 %v4886_v24  ;;  %v4883_v11 = vsel %vm678_vm9, %v4797_v19, %v4799_v47  ;;  %v4882_v34 = vsel %vm678_vm9, %v8767_v46, %v4797_v19  ;;  %v8933_v24 = vlaneseq }
0x13cd   : > { %4544 = vmatprep.subr.mxu0 %v8529_v27  ;;  %4964 = vmatprep.subr.mxu1 %v8688_v0  ;;  %v4863_v60 = vpop.permute.xlu0 %4862  ;;  %v4878_v0 = vsel %vm678_vm9, %v8731_v28, %v8759_v38  ;;  %v4875_v28 = vsel %vm678_vm9, %v8420_v2, %v8428_v54  ;;  %v8926_v54 = vld [vmem:[#allocation6_spill] sm:$0xff] }
0x13ce   : > { %4545 = vmatpush1.msra.mxu0 %v8523_v61  ;;  %4965 = vmatpush1.msra.mxu1 %v8682_v22  ;;  %v4879_v22 = vsel %vm678_vm9, %v8759_v38, %v8741_v58  ;;  %v4462_v38 = vsel %vm678_vm9, %v8729_v4, %v8769_v45  ;;  %v4872_v4 = vsel %vm678_vm9, %v5715_v7, %v8167_v36  ;;  %v8927_v58 = vld [vmem:[#allocation5_spill] sm:$0xff]  ;;  %vm5042_vm2 = vcmp.lt.s32.totalorder %v8933_v24, 256 }
0x13cf   : > { %v4381_v29 = vpop.permute.xlu1 %4380  ;;  %4546 = vmatprep.subr.mxu0 %v4471_v37  ;;  %4966 = vmatprep.subr.mxu1 %v4883_v11  ;;  %v4905_v32 = vsel %vm678_vm9, %v4863_v60, %v8781_v21 }
0x13d0   : > { %4547 = vmatpush1.msra.mxu0 %v4470_v6  ;;  %4967 = vmatpush1.msra.mxu1 %v4882_v34  ;;  %v4467_v27 = vsel %vm678_vm9, %v4381_v29, %v8771_v9 }
0x13d1   : > { %4548 = vmatprep.subr.mxu0 %v8704_v49  ;;  %4968 = vmatprep.subr.mxu1 %v8714_v63  ;;  %v4861_v61 = vpop.permute.xlu0 %4860  ;;  %v4466_v49 = vsel %vm678_vm9, %v8765_v23, %v4381_v29  ;;  %v4458_v23 = vsel %vm678_vm9, %v5715_v7, %v8929_v55 }
0x13d2   : > { %4549 = vmatpush1.msra.mxu0 %v8698_v41  ;;  %4969 = vmatpush1.msra.mxu1 %v8711_v30  ;;  %v4463_v30 = vsel %vm678_vm9, %v8769_v45, %v8743_v20  ;;  %v4457_v45 = vsel %vm678_vm9, %v8798_v51, %v8775_v18  ;;  %v4904_v52 = vsel %vm678_vm9, %v4861_v61, %v4863_v60  ;;  %v5291_v18 = vmov 1966171168  }
0x13d3   : > { %v4451_v63 = vpop.permute.xlu1 %4450  ;;  %4550 = vmatprep.subr.mxu0 %v4467_v27  ;;  %4970 = vmatprep.subr.mxu1 %v4879_v22  ;;  %v5026_v48 = vunpack.c.l.s4 %v5291_v18 }
0x13d4   : > { %4551 = vmatpush1.msra.mxu0 %v4466_v49  ;;  %4971 = vmatpush1.msra.mxu1 %v4878_v0 }
0x13d5   : > { %4552 = vmatprep.subr.mxu0 %v8724_v5  ;;  %4972 = vmatprep.subr.mxu1 %v8556_v42  ;;  %v4447_v41 = vpop.permute.xlu0 %4446  ;;  %v4874_v42 = vsel %vm678_vm9, %v5715_v7, %v8420_v2  ;;  %v8928_v2 = vld [vmem:[#allocation4_spill] sm:$0xff]  ;;  %v5027_v44 = vunpack.c.0.s8 %v5026_v48 }
0x13d6   : > { %4553 = vmatpush1.msra.mxu0 %v8721_v1  ;;  %4973 = vmatpush1.msra.mxu1 %v8553_v17  ;;  %v4752_v17 = vsub.s32 0, %v8627_v12  ;;  %v4873_v1 = vsel %vm678_vm9, %v8167_v36, %v8306_v10  ;;  %v4459_v20 = vsel %vm678_vm9, %v8929_v55, %v8928_v2  ;;  %v8931_v36 = vld [vmem:[#allocation7_spill] sm:$0xff] }
0x13d7   : > { %v4869_v5 = vpop.permute.xlu1 %4868  ;;  %4554 = vmatprep.subr.mxu0 %v4463_v30  ;;  %4974 = vmatprep.subr.mxu1 %v4875_v28  ;;  %v5030_v14 = vsub.s32 %v5027_v44, %v8627_v12 }
0x13d8   : > { %4555 = vmatpush1.msra.mxu0 %v4462_v38  ;;  %4975 = vmatpush1.msra.mxu1 %v4874_v42  ;;  %v4906_v10 = vsel %vm678_vm9, %v8930_v39, %v4869_v5  ;;  %v4758_v46 = vrot.slane %v8931_v36, %v4752_v17 }
0x13d9   : > { %4556 = vmatprep.subr.mxu0 %v8926_v54  ;;  %4976 = vmatprep.subr.mxu1 %v4873_v1  ;;  %v4871_v33 = vpop.permute.xlu0 %4870 }
0x13da   : > { %4557 = vmatpush1.msra.mxu0 %v8927_v58  ;;  %4977 = vmatpush1.msra.mxu1 %v4872_v4  ;;  %v4907_v8 = vsel %vm678_vm9, %v4869_v5, %v4871_v33 }
0x13db   : > { %v4453_v43 = vpop.permute.xlu1 %4452  ;;  %4558 = vmatprep.subr.mxu0 %v4459_v20  ;;  %5006 = vmatprep.subr.mxu1 %v4907_v8 }
0x13dc   : > { %4559 = vmatpush1.msra.mxu0 %v4458_v23  ;;  %5007 = vmatpush2.msra.mxu1 %v4906_v10  ;;  %v4490_v9 = vsel %vm678_vm9, %v4451_v63, %v4453_v43 }
0x13dd   : > { %4560 = vmatprep.subr.mxu0 %v4457_v45  ;;  %5008 = vmatprep.subr.mxu1 %v4905_v32  ;;  %v4455_v47 = vpop.permute.xlu0 %4454 }
0x13de   : > { %4561 = vmatpush1.msra.mxu0 %v4456_v15  ;;  %5009 = vmatpush2.msra.mxu1 %v4904_v52  ;;  %v4491_v16 = vsel %vm678_vm9, %v4453_v43, %v4455_v47 }
0x13df   : > { %v4449_v57 = vpop.permute.xlu1 %4448  ;;  %4590 = vmatprep.subr.mxu0 %v4491_v16  ;;  %5011 = vmatmul.mubr.f32.vlgmr.msra.gmra.mxu1 %v4758_v46 }
0x13e0   : > { %4591 = vmatpush2.msra.mxu0 %v4490_v9  ;;  %v4489_v21 = vsel %vm678_vm9, %v4447_v41, %v4449_v57 }
0x13e1   : > { %4592 = vmatprep.subr.mxu0 %v4489_v21  ;;  %v4445_v7 = vpop.permute.xlu0 %4444 }
0x13e2   : > { %v4488_v53 = vsel %vm678_vm9, %v4445_v7, %v4447_v41 }
0x13e3   : > { %4593 = vmatpush2.msra.mxu0 %v4488_v53 }
0x13e4   : > { %4595 = vmatmul.mubr.f32.vlgmr.msra.gmra.mxu0 %v8932_v3 }
0x13ec   : > { %v4748_v62 = vpop.permute.xlu1 %4747 }
0x13ed   : > { %v4753_v25 = vrot.slane %v4748_v62, %v4752_v17 }
0x13ee   : > { %v4344_v26 = vpop.permute.xlu0 %4343 }
0x149f   : > { %v5012_v40 = vpop.f32.mrf.mxu1 }
0x14a0   : > { %v5013_v59 = vadd.f32 %v5012_v40, %v4753_v25 }
0x14a1   : > { %v5014_v13 = vpop.f32.mrf.mxu1 }
0x14a2   : > { %v5015_v56 = vadd.f32 %v5014_v13, %v4753_v25 }
0x14a4   : > { %v5024_v31 = vcombine.low %v5013_v59, %v5015_v56  ;;  %v4596_v51 = vpop.f32.mrf.mxu0 }
0x14a5   : > { %v4597_v19 = vadd.f32 %v4596_v51, %v4344_v26 }
0x14a6   : > { %v5031_v35 = vrot.slane %v5024_v31, %v5030_v14  ;;  %v4598_v50 = vpop.f32.mrf.mxu0 }
0x14a7   : > { %v4599_v60 = vadd.f32 %v4598_v50, %v4344_v26 }
0x14a8   : > { %v5038_v37 = vrot.slane %v5031_v35, %v5030_v14 }
0x14a9   : > { %v5019_v12 = vcombine.low %v4597_v19, %v4599_v60 }
0x14aa   : > { %5044 = vst.msk [vmem:[%s372_s21] sm:$0x3] %vm5042_vm2, %v5038_v37 }
0x14ab   : > { %5021 = vst [vmem:[%s368_s25] sm:$0x77] %v5019_v12 }
0x14ac PF: > { %s23_s15 = sadd.s32 1, %s5275_s15  }
0x14ad   : > { %p20_p4 = scmp.ge.s32.totalorder %s23_s15, 4  }
0x14af   :  { %22 = sbr.rel (!%p20_p4) target bundleno = 3 (0x3), region = 108 }

</bundles_post_ra>
